<compile_context>
chip_gen: v5e
topology: v5e:2x2
jax: 0.10.0
libtpu: 0.0.40
codegen_flags: <defaults>
</compile_context>

<pallas_src>
import jax
import jax.numpy as jnp
from jax.experimental import pallas as pl
from jax.experimental.pallas import tpu as pltpu

EPS = 1e-5
LANE = 128


# ------------------------------ in-kernel helpers ----------------------------

def _silu(x):
    return x * jax.nn.sigmoid(x)


def _layernorm(x, g, b):
    mu = jnp.mean(x, axis=-1, keepdims=True)
    xc = x - mu
    var = jnp.mean(xc * xc, axis=-1, keepdims=True)
    return xc * jax.lax.rsqrt(var + EPS) * g + b


# ------------------------ packed-parameter bookkeeping ------------------------

def _round_up(n, m):
    return -(-n // m) * m


def _proj_layout(E, H, Z):
    """Column layout of the fused mx projection [r | u | hx | z]; every segment
    starts on a 128-lane boundary so in-kernel slices never start mid-vreg."""
    segs = [("r", H), ("u", E), ("hx", E), ("z", Z)]
    off, o = {}, 0
    for n, s in segs:
        off[n] = o
        o += _round_up(s, LANE)
    return off, o          # offsets, padded total width PPAD


def _vec_layout(E, H, Z, F, PPAD):
    """Per-layer packing of all small vectors into one row; 128-lane aligned."""
    names = [
        ("attn_ln_g", E), ("attn_ln_b", E), ("bv", H), ("omega", E),
        ("b_proj", PPAD), ("gq", Z), ("bq", Z), ("gk", Z), ("bk", Z),
        ("bh", E), ("ffn_ln_g", E), ("ffn_ln_b", E), ("b1", F), ("b2", E),
    ]
    off, o = {}, 0
    for n, s in names:
        off[n] = (o, s)
        o += _round_up(s, LANE)
    return names, off, o


# -------------------------------- fused kernel --------------------------------

def build_mega_kernel(cfg, store_inner):
    E, H, F, Z, L = cfg["E"], cfg["H"], cfg["F"], cfg["Z"], cfg["L"]
    NL = cfg["num_layers"]
    POFF, PPAD = _proj_layout(E, H, Z)
    _, VOFF, _ = _vec_layout(E, H, Z, F, PPAD)
    attn_scale = Z ** -0.5
    R0, U0, X0, Z0 = POFF["r"], POFF["u"], POFF["hx"], POFF["z"]
    bf16 = jnp.bfloat16
    final_idx = NL if store_inner else 0

    def kernel(x0_ref, wv_ref, wproj_ref, wh_ref, w1_ref, w2_ref,
               toe_ref, relb_ref, vec_ref, wf_ref, fvec_ref, out_ref):
        def vec(i, name):
            o, s = VOFF[name]
            return vec_ref[i:i + 1, o:o + s]            # (1, s) f32, lane-aligned

        x = x0_ref[0]                                    # (L, E) f32 embedding

        for i in range(NL):                              # static unroll over layers
            # ============== MovingAverageGatedAttention (prenorm) ============
            xn = _layernorm(x, vec(i, "attn_ln_g"), vec(i, "attn_ln_b"))
            v = _silu(jnp.dot(xn.astype(bf16), wv_ref[i],
                              preferred_element_type=jnp.float32)
                      + vec(i, "bv"))                                   # (L, H)

            # Bidirectional (C)EMA depthwise long-conv: contraction against a
            # host-precomputed banded Toeplitz (L, L, E) -> one broadcast mul
            # plus one sublane reduce; no serialized XLU roll chain.
            mx = jnp.sum(toe_ref[i] * xn[None, :, :], axis=1)           # (L, E)
            mx = _silu(mx + xn * vec(i, "omega"))

            # fused, 128-lane-padded mx projection -> [r, u, hx, z]
            proj = jnp.dot(mx.astype(bf16), wproj_ref[i],
                           preferred_element_type=jnp.float32) + vec(i, "b_proj")
            r = _silu(proj[:, R0:R0 + H])
            u = jax.nn.sigmoid(proj[:, U0:U0 + E])
            hx = proj[:, X0:X0 + E]
            z = _silu(proj[:, Z0:Z0 + Z])

            q = z * vec(i, "gq") + vec(i, "bq")
            k = z * vec(i, "gk") + vec(i, "bk")
            qk = jax.lax.dot_general((q * attn_scale).astype(bf16),
                                     k.astype(bf16),
                                     (((1,), (1,)), ((), ())),
                                     preferred_element_type=jnp.float32)
            qk = qk + relb_ref[i].astype(jnp.float32)
            qk = qk - jnp.max(qk, axis=-1, keepdims=True)
            e = jnp.exp(qk)
            attn = e * pl.reciprocal(jnp.sum(e, axis=-1, keepdims=True), approx=True)
            h = jnp.dot(attn.astype(bf16), v.astype(bf16),
                        preferred_element_type=jnp.float32)              # (L, H)
            h = _silu(hx + jnp.dot((h * r).astype(bf16), wh_ref[i],
                                   preferred_element_type=jnp.float32)
                      + vec(i, "bh"))
            x_attn = x + u * (h - x)                    # gated residual

            # ============================ NFFN (prenorm) ======================
            yn = _layernorm(x_attn, vec(i, "ffn_ln_g"), vec(i, "ffn_ln_b"))
            hdn = _silu(jnp.dot(yn.astype(bf16), w1_ref[i],
                                preferred_element_type=jnp.float32) + vec(i, "b1"))
            x = (jnp.dot(hdn.astype(bf16), w2_ref[i],
                         preferred_element_type=jnp.float32)
                 + vec(i, "b2") + x_attn)
            if store_inner:
                out_ref[i, 0] = x

        # ============ final SequenceNorm + silu(final_proj(xn) + xn) ==========
        fg = fvec_ref[0:1, 0:E]
        fb = fvec_ref[0:1, LANE:LANE + E]
        bfin = fvec_ref[0:1, 2 * LANE:2 * LANE + E]
        xn = _layernorm(x, fg, fb)
        out_ref[final_idx, 0] = _silu(
            jnp.dot(xn.astype(bf16), wf_ref[...],
                    preferred_element_type=jnp.float32) + bfin + xn)

    return kernel


# ------------------------------ pallas_call glue ------------------------------

def _cost_estimate(cfg, B, nslabs, x0, weights):
    E, H, F, Z, L = cfg["E"], cfg["H"], cfg["F"], cfg["Z"], cfg["L"]
    NL = cfg["num_layers"]
    _, PPAD = _proj_layout(E, H, Z)
    per_layer = (2 * L * (E * H + E * PPAD + H * E + E * F + F * E)   # matmuls
                 + 2 * L * L * (Z + H)                                 # attention
                 + 2 * L * L * E)                                      # EMA Toeplitz
    flops = B * (NL * per_layer + 2 * L * E * E)
    transcendentals = B * (NL * (L * L + 2 * L * H + 4 * L * E + L * Z + L * F)
                           + L * E)
    bytes_accessed = (int(x0.size) * x0.dtype.itemsize
                      + sum(int(w.size) * w.dtype.itemsize for w in weights)
                      + nslabs * B * L * E * 4)
    return pl.CostEstimate(flops=int(flops), transcendentals=int(transcendentals),
                           bytes_accessed=int(bytes_accessed))


def mega_scraw_encoder_forward(tokens, src_lengths, params, cfg, last_state_only=False):
    del src_lengths                      # padding_mask is None in the reference forward
    B, L = tokens.shape
    E, NL = cfg["E"], cfg["num_layers"]

    # RealNumberEmbedding in the wrapper -> lane-dense (B, L, E) kernel input.
    x0 = (tokens[:, :, None].astype(jnp.float32)
          * params["embed_w"][None, None, :]) * (E ** -0.5)

    nslabs = 1 if last_state_only else NL + 1
    kernel = build_mega_kernel(cfg, store_inner=not last_state_only)
    weights = [params["wv_s"], params["wproj_s"], params["wh_s"], params["w1_s"],
               params["w2_s"], params["toe_s"], params["relb_s"], params["vec_s"],
               params["wf"], params["fvec"]]

    def resident(a):                     # full array, same block every grid step
        nd = a.ndim
        return pl.BlockSpec(a.shape, lambda b, _n=nd: (0,) * _n)

    out = pl.pallas_call(
        kernel,
        grid=(B,),
        in_specs=[pl.BlockSpec((1, L, E), lambda b: (b, 0, 0))]
                 + [resident(a) for a in weights],
        out_specs=pl.BlockSpec((nslabs, 1, L, E), lambda b: (0, b, 0, 0)),
        out_shape=jax.ShapeDtypeStruct((nslabs, B, L, E), jnp.float32),
        compiler_params=pltpu.CompilerParams(
            dimension_semantics=("parallel",),
            vmem_limit_bytes=32 * 1024 * 1024),
        cost_estimate=_cost_estimate(cfg, B, nslabs, x0, weights),
    )(x0, *weights)

    y = out[nslabs - 1]                                   # after final norm/proj
    sentence_rep = y[:, 0, :]                             # sen_rep_type == 'cls'
    if last_state_only:
        inner_states = [y]
    else:
        inner_states = [x0] + [out[i] for i in range(NL)]
    return inner_states, sentence_rep


# ------------------------ parameter construction (glue) -----------------------

def compute_ema_kernels(delta, alpha, beta, gamma, theta, L, E, N):
    """Compact bidirectional (C)EMA conv kernels, stacked (2L, E):
    rows [0:L] = forward kernel by lag, rows [L:2L] = backward kernel by lag."""
    p = jax.nn.sigmoid(delta)                             # (2E, N)
    a = jax.nn.sigmoid(alpha)
    qd = 1.0 - p * a
    t = jnp.arange(L, dtype=jnp.float32)
    decay = jnp.exp(t[None, None, :] * jnp.log(qd)[:, :, None])      # (2E, N, L)
    rot = jnp.cos(t[None, None, :] * theta[:, :, None])              # real part of phase
    kern = (p * beta)[:, :, None] * decay * rot
    k = jnp.einsum("dnl,dn->dl", kern, gamma) * (N ** -0.5)          # (2E, L)
    return jnp.concatenate([k[:E].T, k[E:].T], axis=0).astype(jnp.float32)


def ema_toeplitz(k2l, L):
    """Banded Toeplitz (L, L, E): T[t, s, e] multiplies x[s, e] in the
    bidirectional depthwise EMA conv (diag tap = k_fwd[0] + k_bwd[0])."""
    kf, kb = k2l[:L], k2l[L:]
    t = jnp.arange(L)
    rel = t[:, None] - t[None, :]                          # t - s
    arel = jnp.abs(rel)
    fwd = kf[arel]                                         # (L, L, E)
    bwd = kb[arel]
    return jnp.where(rel[..., None] > 0, fwd,
                     jnp.where(rel[..., None] < 0, bwd, fwd + bwd)).astype(jnp.float32)


def rel_bias_matrix(rel_param, L, max_pos):
    """SimpleRelativePositionalBias: bias[i, j] = rel_param[max_pos - 1 + (j - i)]."""
    idx = jnp.arange(L)
    rel = idx[None, :] - idx[:, None]
    return rel_param[(max_pos - 1) + rel]


def init_params(key, cfg):
    E, H, F, Z, N, L = cfg["E"], cfg["H"], cfg["F"], cfg["Z"], cfg["N"], cfg["L"]
    NL, max_pos = cfg["num_layers"], cfg["max_pos"]
    assert E <= LANE, "final-norm vector packing assumes embedding_dim <= 128"
    POFF, PPAD = _proj_layout(E, H, Z)
    names, VOFF, VTOT = _vec_layout(E, H, Z, F, PPAD)
    keys = iter(jax.random.split(key, 1024))

    def nrm(shape, std=0.02):
        return (std * jax.random.normal(next(keys), shape)).astype(jnp.float32)

    def pad_cols(w, width):
        return jnp.pad(w, ((0, 0), (0, width - w.shape[1])))

    wv_l, wproj_l, wh_l, w1_l, w2_l, toe_l, relb_l, vec_l = ([] for _ in range(8))
    for _ in range(NL):
        # --- MovingAverageGatedAttention ---
        wv = nrm((E, H))
        wr, wu, whx, wz = nrm((E, H)), nrm((E, E)), nrm((E, E)), nrm((E, Z))
        wproj = jnp.concatenate([pad_cols(wr, _round_up(H, LANE)),
                                 pad_cols(wu, _round_up(E, LANE)),
                                 pad_cols(whx, _round_up(E, LANE)),
                                 pad_cols(wz, _round_up(Z, LANE))], axis=1)  # (E, PPAD)
        wh = nrm((H, E))
        w1, w2 = nrm((E, F)), nrm((F, E))
        k2l = compute_ema_kernels(nrm((2 * E, N), 1.0), nrm((2 * E, N), 1.0),
                                  nrm((2 * E, N), 0.1), nrm((2 * E, N), 1.0),
                                  nrm((2 * E, N), 0.1), L, E, N)
        toe_l.append(ema_toeplitz(k2l, L))
        relb_l.append(rel_bias_matrix(nrm((2 * max_pos - 1,)), L, max_pos))
        vparts = {
            "attn_ln_g": jnp.ones((E,), jnp.float32),
            "attn_ln_b": jnp.zeros((E,), jnp.float32),
            "bv": jnp.zeros((H,), jnp.float32),
            "omega": nrm((E,), 1.0),
            "b_proj": jnp.zeros((PPAD,), jnp.float32),
            "gq": 1.0 + nrm((Z,)), "bq": jnp.zeros((Z,), jnp.float32),
            "gk": 1.0 + nrm((Z,)), "bk": jnp.zeros((Z,), jnp.float32),
            "bh": jnp.zeros((E,), jnp.float32),
            "ffn_ln_g": jnp.ones((E,), jnp.float32),
            "ffn_ln_b": jnp.zeros((E,), jnp.float32),
            "b1": jnp.zeros((F,), jnp.float32),
            "b2": jnp.zeros((E,), jnp.float32),
        }
        vrow = jnp.zeros((VTOT,), jnp.float32)
        for n, s in names:
            o = VOFF[n][0]
            vrow = vrow.at[o:o + s].set(vparts[n])
        vec_l.append(vrow)
        wv_l.append(wv); wproj_l.append(wproj); wh_l.append(wh)
        w1_l.append(w1); w2_l.append(w2)

    bf16 = jnp.bfloat16
    fvec = jnp.zeros((3 * LANE,), jnp.float32).at[0:E].set(1.0)  # [ln_g | ln_b | b_final]
    params = {
        "embed_w": jax.random.normal(next(keys), (E,)).astype(jnp.float32),
        "wv_s": jnp.stack(wv_l).astype(bf16),        # (NL, E, H)
        "wproj_s": jnp.stack(wproj_l).astype(bf16),  # (NL, E, PPAD), 128-lane padded
        "wh_s": jnp.stack(wh_l).astype(bf16),        # (NL, H, E)
        "w1_s": jnp.stack(w1_l).astype(bf16),        # (NL, E, F)
        "w2_s": jnp.stack(w2_l).astype(bf16),        # (NL, F, E)
        "toe_s": jnp.stack(toe_l),                   # (NL, L, L, E) f32 EMA Toeplitz
        "relb_s": jnp.stack(relb_l).astype(bf16),    # (NL, L, L) bf16
        "vec_s": jnp.stack(vec_l),                   # (NL, VTOT) f32
        "wf": nrm((E, E)).astype(bf16),
        "fvec": fvec[None, :],                       # (1, 384) f32
    }
    return params


# ----------------------------------- main --------------------------------------

if __name__ == "__main__":
    cfg = dict(B=2, L=16, E=32, H=64, F=64, Z=16, N=4, num_layers=2, max_pos=64)
    root = jax.random.PRNGKey(0)
    k_tok, k_par = jax.random.split(root)
    tokens = jax.random.normal(k_tok, (cfg["B"], cfg["L"]), dtype=jnp.float32)
    src_lengths = jnp.full((cfg["B"],), cfg["L"], dtype=jnp.int32)
    params = init_params(k_par, cfg)

    inner_states, sentence_rep = mega_scraw_encoder_forward(tokens, src_lengths, params, cfg)
    jax.block_until_ready((inner_states, sentence_rep))

    assert sentence_rep.shape == (cfg["B"], cfg["E"])
    assert len(inner_states) == cfg["num_layers"] + 1
    assert all(s.shape == (cfg["B"], cfg["L"], cfg["E"]) for s in inner_states)
    assert bool(jnp.all(jnp.isfinite(sentence_rep)))
    assert all(bool(jnp.all(jnp.isfinite(s))) for s in inner_states)

    # last_state_only path (single-slab writeback variant)
    last_states, rep2 = mega_scraw_encoder_forward(tokens, src_lengths, params, cfg,
                                                   last_state_only=True)
    jax.block_until_ready((last_states, rep2))
    assert len(last_states) == 1
    assert last_states[0].shape == (cfg["B"], cfg["L"], cfg["E"])
    assert bool(jnp.allclose(rep2, sentence_rep, atol=1e-5, rtol=1e-5))
    print("KERNEL_OK")
</pallas_src>

<mosaic_0001>
module attributes {stable_mosaic.version = 11 : i64} {
  func.func @kernel(%arg0: i32, %arg1: memref<1x16x32xf32, #tpu.memory_space<vmem>>, %arg2: memref<2x32x64xbf16, #tpu.memory_space<vmem>>, %arg3: memref<2x32x512xbf16, #tpu.memory_space<vmem>>, %arg4: memref<2x64x32xbf16, #tpu.memory_space<vmem>>, %arg5: memref<2x32x64xbf16, #tpu.memory_space<vmem>>, %arg6: memref<2x64x32xbf16, #tpu.memory_space<vmem>>, %arg7: memref<2x16x16x32xf32, #tpu.memory_space<vmem>>, %arg8: memref<2x16x16xbf16, #tpu.memory_space<vmem>>, %arg9: memref<2x2176xf32, #tpu.memory_space<vmem>>, %arg10: memref<32x32xbf16, #tpu.memory_space<vmem>>, %arg11: memref<1x384xf32, #tpu.memory_space<vmem>>, %arg12: memref<3x1x16x32xf32, #tpu.memory_space<vmem>>) attributes {dimension_semantics = [#tpu.dimension_semantics<parallel>], iteration_bounds = array<i64: 2>, scalar_prefetch = 0 : i64, scratch_operands = 0 : i64, tpu.core_type = #tpu.core_type<tc>, window_params = [{transform_indices = @transform_0, window_bounds = array<i64: 1, 16, 32>}, {pipeline_mode = #tpu.pipeline_mode<synchronous>, transform_indices = @transform_1, window_bounds = array<i64: 2, 32, 64>}, {pipeline_mode = #tpu.pipeline_mode<synchronous>, transform_indices = @transform_2, window_bounds = array<i64: 2, 32, 512>}, {pipeline_mode = #tpu.pipeline_mode<synchronous>, transform_indices = @transform_3, window_bounds = array<i64: 2, 64, 32>}, {pipeline_mode = #tpu.pipeline_mode<synchronous>, transform_indices = @transform_4, window_bounds = array<i64: 2, 32, 64>}, {pipeline_mode = #tpu.pipeline_mode<synchronous>, transform_indices = @transform_5, window_bounds = array<i64: 2, 64, 32>}, {pipeline_mode = #tpu.pipeline_mode<synchronous>, transform_indices = @transform_6, window_bounds = array<i64: 2, 16, 16, 32>}, {pipeline_mode = #tpu.pipeline_mode<synchronous>, transform_indices = @transform_7, window_bounds = array<i64: 2, 16, 16>}, {pipeline_mode = #tpu.pipeline_mode<synchronous>, transform_indices = @transform_8, window_bounds = array<i64: 2, 2176>}, {pipeline_mode = #tpu.pipeline_mode<synchronous>, transform_indices = @transform_9, window_bounds = array<i64: 32, 32>}, {pipeline_mode = #tpu.pipeline_mode<synchronous>, transform_indices = @transform_10, window_bounds = array<i64: 1, 384>}, {transform_indices = @transform_11, window_bounds = array<i64: 3, 1, 16, 32>}]} {
    %c0 = arith.constant 0 : index
    %c0_0 = arith.constant 0 : index
    %c0_1 = arith.constant 0 : index
    %0 = vector.load %arg1[%c0, %c0_0, %c0_1] : memref<1x16x32xf32, #tpu.memory_space<vmem>>, vector<1x16x32xf32>
    %1 = vector.shape_cast %0 : vector<1x16x32xf32> to vector<16x32xf32>
    %c0_2 = arith.constant 0 : index
    %c0_3 = arith.constant 0 : index
    %2 = vector.load %arg9[%c0_2, %c0_3] : memref<2x2176xf32, #tpu.memory_space<vmem>>, vector<1x32xf32>
    %c0_4 = arith.constant 0 : index
    %c128 = arith.constant 128 : index
    %3 = vector.load %arg9[%c0_4, %c128] : memref<2x2176xf32, #tpu.memory_space<vmem>>, vector<1x32xf32>
    %cst = arith.constant dense<0.000000e+00> : vector<16xf32>
    %4 = vector.multi_reduction <add>, %1, %cst [1] : vector<16x32xf32> to vector<16xf32>
    %5 = vector.shape_cast %4 : vector<16xf32> to vector<16x1xf32>
    %cst_5 = arith.constant 3.200000e+01 : f32
    %6 = vector.broadcast %cst_5 : f32 to vector<16x1xf32>
    %7 = arith.divf %5, %6 : vector<16x1xf32>
    %8 = vector.broadcast %7 : vector<16x1xf32> to vector<16x32xf32>
    %9 = arith.subf %1, %8 : vector<16x32xf32>
    %10 = arith.mulf %9, %9 : vector<16x32xf32>
    %cst_6 = arith.constant dense<0.000000e+00> : vector<16xf32>
    %11 = vector.multi_reduction <add>, %10, %cst_6 [1] : vector<16x32xf32> to vector<16xf32>
    %12 = vector.shape_cast %11 : vector<16xf32> to vector<16x1xf32>
    %cst_7 = arith.constant 3.200000e+01 : f32
    %13 = vector.broadcast %cst_7 : f32 to vector<16x1xf32>
    %14 = arith.divf %12, %13 : vector<16x1xf32>
    %cst_8 = arith.constant 9.99999974E-6 : f32
    %15 = vector.broadcast %cst_8 : f32 to vector<16x1xf32>
    %16 = arith.addf %14, %15 : vector<16x1xf32>
    %17 = math.rsqrt %16 : vector<16x1xf32>
    %18 = vector.broadcast %17 : vector<16x1xf32> to vector<16x32xf32>
    %19 = arith.mulf %9, %18 : vector<16x32xf32>
    %20 = vector.broadcast %2 : vector<1x32xf32> to vector<16x32xf32>
    %21 = arith.mulf %19, %20 : vector<16x32xf32>
    %22 = vector.broadcast %3 : vector<1x32xf32> to vector<16x32xf32>
    %23 = arith.addf %21, %22 : vector<16x32xf32>
    %24 = arith.truncf %23 : vector<16x32xf32> to vector<16x32xbf16>
    %c0_9 = arith.constant 0 : index
    %c0_10 = arith.constant 0 : index
    %c0_11 = arith.constant 0 : index
    %25 = vector.load %arg2[%c0_9, %c0_10, %c0_11] : memref<2x32x64xbf16, #tpu.memory_space<vmem>>, vector<1x32x64xbf16>
    %26 = vector.shape_cast %25 : vector<1x32x64xbf16> to vector<32x64xbf16>
    %cst_12 = arith.constant dense<0.000000e+00> : vector<16x64xf32>
    %27 = tpu.matmul %24, %26, %cst_12 {dimension_numbers = #tpu.dot_dimension_numbers<[1], [0], [0], [1], [0, 0, 1, 1], [], []>} : vector<16x32xbf16>, vector<32x64xbf16>, vector<16x64xf32> -> vector<16x64xf32>
    %c0_13 = arith.constant 0 : index
    %c256 = arith.constant 256 : index
    %28 = vector.load %arg9[%c0_13, %c256] : memref<2x2176xf32, #tpu.memory_space<vmem>>, vector<1x64xf32>
    %29 = vector.broadcast %28 : vector<1x64xf32> to vector<16x64xf32>
    %30 = arith.addf %27, %29 : vector<16x64xf32>
    %31 = arith.negf %30 : vector<16x64xf32>
    %32 = math.exp %31 : vector<16x64xf32>
    %cst_14 = arith.constant 1.000000e+00 : f32
    %33 = vector.broadcast %cst_14 : f32 to vector<16x64xf32>
    %34 = arith.addf %33, %32 : vector<16x64xf32>
    %35 = arith.divf %33, %34 : vector<16x64xf32>
    %36 = arith.mulf %30, %35 : vector<16x64xf32>
    %c0_15 = arith.constant 0 : index
    %c0_16 = arith.constant 0 : index
    %c0_17 = arith.constant 0 : index
    %c0_18 = arith.constant 0 : index
    %37 = vector.load %arg7[%c0_15, %c0_16, %c0_17, %c0_18] : memref<2x16x16x32xf32, #tpu.memory_space<vmem>>, vector<1x16x16x32xf32>
    %38 = vector.shape_cast %37 : vector<1x16x16x32xf32> to vector<16x16x32xf32>
    %39 = vector.shape_cast %23 : vector<16x32xf32> to vector<1x16x32xf32>
    %40 = vector.broadcast %39 : vector<1x16x32xf32> to vector<16x16x32xf32>
    %41 = arith.mulf %38, %40 : vector<16x16x32xf32>
    %cst_19 = arith.constant dense<0.000000e+00> : vector<16x32xf32>
    %42 = vector.multi_reduction <add>, %41, %cst_19 [1] : vector<16x16x32xf32> to vector<16x32xf32>
    %c0_20 = arith.constant 0 : index
    %c384 = arith.constant 384 : index
    %43 = vector.load %arg9[%c0_20, %c384] : memref<2x2176xf32, #tpu.memory_space<vmem>>, vector<1x32xf32>
    %44 = vector.broadcast %43 : vector<1x32xf32> to vector<16x32xf32>
    %45 = arith.mulf %23, %44 : vector<16x32xf32>
    %46 = arith.addf %42, %45 : vector<16x32xf32>
    %47 = arith.negf %46 : vector<16x32xf32>
    %48 = math.exp %47 : vector<16x32xf32>
    %cst_21 = arith.constant 1.000000e+00 : f32
    %49 = vector.broadcast %cst_21 : f32 to vector<16x32xf32>
    %50 = arith.addf %49, %48 : vector<16x32xf32>
    %51 = arith.divf %49, %50 : vector<16x32xf32>
    %52 = arith.mulf %46, %51 : vector<16x32xf32>
    %53 = arith.truncf %52 : vector<16x32xf32> to vector<16x32xbf16>
    %c0_22 = arith.constant 0 : index
    %c0_23 = arith.constant 0 : index
    %c0_24 = arith.constant 0 : index
    %54 = vector.load %arg3[%c0_22, %c0_23, %c0_24] : memref<2x32x512xbf16, #tpu.memory_space<vmem>>, vector<1x32x512xbf16>
    %55 = vector.shape_cast %54 : vector<1x32x512xbf16> to vector<32x512xbf16>
    %cst_25 = arith.constant dense<0.000000e+00> : vector<16x512xf32>
    %56 = tpu.matmul %53, %55, %cst_25 {dimension_numbers = #tpu.dot_dimension_numbers<[1], [0], [0], [1], [0, 0, 1, 1], [], []>} : vector<16x32xbf16>, vector<32x512xbf16>, vector<16x512xf32> -> vector<16x512xf32>
    %c0_26 = arith.constant 0 : index
    %c512 = arith.constant 512 : index
    %57 = vector.load %arg9[%c0_26, %c512] : memref<2x2176xf32, #tpu.memory_space<vmem>>, vector<1x512xf32>
    %58 = vector.broadcast %57 : vector<1x512xf32> to vector<16x512xf32>
    %59 = arith.addf %56, %58 : vector<16x512xf32>
    %60 = vector.extract_strided_slice %59 {offsets = [0, 0], sizes = [16, 64], strides = [1, 1]} : vector<16x512xf32> to vector<16x64xf32>
    %61 = arith.negf %60 : vector<16x64xf32>
    %62 = math.exp %61 : vector<16x64xf32>
    %cst_27 = arith.constant 1.000000e+00 : f32
    %63 = vector.broadcast %cst_27 : f32 to vector<16x64xf32>
    %64 = arith.addf %63, %62 : vector<16x64xf32>
    %65 = arith.divf %63, %64 : vector<16x64xf32>
    %66 = arith.mulf %60, %65 : vector<16x64xf32>
    %67 = vector.extract_strided_slice %59 {offsets = [0, 128], sizes = [16, 32], strides = [1, 1]} : vector<16x512xf32> to vector<16x32xf32>
    %68 = arith.negf %67 : vector<16x32xf32>
    %69 = math.exp %68 : vector<16x32xf32>
    %cst_28 = arith.constant 1.000000e+00 : f32
    %70 = vector.broadcast %cst_28 : f32 to vector<16x32xf32>
    %71 = arith.addf %70, %69 : vector<16x32xf32>
    %72 = arith.divf %70, %71 : vector<16x32xf32>
    %73 = vector.extract_strided_slice %59 {offsets = [0, 256], sizes = [16, 32], strides = [1, 1]} : vector<16x512xf32> to vector<16x32xf32>
    %74 = vector.extract_strided_slice %59 {offsets = [0, 384], sizes = [16, 16], strides = [1, 1]} : vector<16x512xf32> to vector<16x16xf32>
    %75 = arith.negf %74 : vector<16x16xf32>
    %76 = math.exp %75 : vector<16x16xf32>
    %cst_29 = arith.constant 1.000000e+00 : f32
    %77 = vector.broadcast %cst_29 : f32 to vector<16x16xf32>
    %78 = arith.addf %77, %76 : vector<16x16xf32>
    %79 = arith.divf %77, %78 : vector<16x16xf32>
    %80 = arith.mulf %74, %79 : vector<16x16xf32>
    %c0_30 = arith.constant 0 : index
    %c1024 = arith.constant 1024 : index
    %81 = vector.load %arg9[%c0_30, %c1024] : memref<2x2176xf32, #tpu.memory_space<vmem>>, vector<1x16xf32>
    %82 = vector.broadcast %81 : vector<1x16xf32> to vector<16x16xf32>
    %83 = arith.mulf %80, %82 : vector<16x16xf32>
    %c0_31 = arith.constant 0 : index
    %c1152 = arith.constant 1152 : index
    %84 = vector.load %arg9[%c0_31, %c1152] : memref<2x2176xf32, #tpu.memory_space<vmem>>, vector<1x16xf32>
    %85 = vector.broadcast %84 : vector<1x16xf32> to vector<16x16xf32>
    %86 = arith.addf %83, %85 : vector<16x16xf32>
    %c0_32 = arith.constant 0 : index
    %c1280 = arith.constant 1280 : index
    %87 = vector.load %arg9[%c0_32, %c1280] : memref<2x2176xf32, #tpu.memory_space<vmem>>, vector<1x16xf32>
    %88 = vector.broadcast %87 : vector<1x16xf32> to vector<16x16xf32>
    %89 = arith.mulf %80, %88 : vector<16x16xf32>
    %c0_33 = arith.constant 0 : index
    %c1408 = arith.constant 1408 : index
    %90 = vector.load %arg9[%c0_33, %c1408] : memref<2x2176xf32, #tpu.memory_space<vmem>>, vector<1x16xf32>
    %91 = vector.broadcast %90 : vector<1x16xf32> to vector<16x16xf32>
    %92 = arith.addf %89, %91 : vector<16x16xf32>
    %cst_34 = arith.constant 2.500000e-01 : f32
    %93 = vector.broadcast %cst_34 : f32 to vector<16x16xf32>
    %94 = arith.mulf %86, %93 : vector<16x16xf32>
    %95 = arith.truncf %94 : vector<16x16xf32> to vector<16x16xbf16>
    %96 = arith.truncf %92 : vector<16x16xf32> to vector<16x16xbf16>
    %cst_35 = arith.constant dense<0.000000e+00> : vector<16x16xf32>
    %97 = tpu.matmul %95, %96, %cst_35 {dimension_numbers = #tpu.dot_dimension_numbers<[1], [1], [0], [0], [0, 0, 1, 0], [], []>} : vector<16x16xbf16>, vector<16x16xbf16>, vector<16x16xf32> -> vector<16x16xf32>
    %c0_36 = arith.constant 0 : index
    %c0_37 = arith.constant 0 : index
    %c0_38 = arith.constant 0 : index
    %98 = vector.load %arg8[%c0_36, %c0_37, %c0_38] : memref<2x16x16xbf16, #tpu.memory_space<vmem>>, vector<1x16x16xbf16>
    %99 = vector.shape_cast %98 : vector<1x16x16xbf16> to vector<16x16xbf16>
    %100 = arith.extf %99 : vector<16x16xbf16> to vector<16x16xf32>
    %101 = arith.addf %97, %100 : vector<16x16xf32>
    %cst_39 = arith.constant dense<0xFF800000> : vector<16xf32>
    %102 = vector.multi_reduction <maximumf>, %101, %cst_39 [1] : vector<16x16xf32> to vector<16xf32>
    %103 = vector.shape_cast %102 : vector<16xf32> to vector<16x1xf32>
    %104 = vector.broadcast %103 : vector<16x1xf32> to vector<16x16xf32>
    %105 = arith.subf %101, %104 : vector<16x16xf32>
    %106 = math.exp %105 : vector<16x16xf32>
    %cst_40 = arith.constant dense<0.000000e+00> : vector<16xf32>
    %107 = vector.multi_reduction <add>, %106, %cst_40 [1] : vector<16x16xf32> to vector<16xf32>
    %108 = vector.shape_cast %107 : vector<16xf32> to vector<16x1xf32>
    %109 = tpu.reciprocal %108 {approx = true} : vector<16x1xf32> -> vector<16x1xf32>
    %110 = vector.broadcast %109 : vector<16x1xf32> to vector<16x16xf32>
    %111 = arith.mulf %106, %110 : vector<16x16xf32>
    %112 = arith.truncf %111 : vector<16x16xf32> to vector<16x16xbf16>
    %113 = arith.truncf %36 : vector<16x64xf32> to vector<16x64xbf16>
    %cst_41 = arith.constant dense<0.000000e+00> : vector<16x64xf32>
    %114 = tpu.matmul %112, %113, %cst_41 {dimension_numbers = #tpu.dot_dimension_numbers<[1], [0], [0], [1], [0, 0, 1, 1], [], []>} : vector<16x16xbf16>, vector<16x64xbf16>, vector<16x64xf32> -> vector<16x64xf32>
    %115 = arith.mulf %114, %66 : vector<16x64xf32>
    %116 = arith.truncf %115 : vector<16x64xf32> to vector<16x64xbf16>
    %c0_42 = arith.constant 0 : index
    %c0_43 = arith.constant 0 : index
    %c0_44 = arith.constant 0 : index
    %117 = vector.load %arg4[%c0_42, %c0_43, %c0_44] : memref<2x64x32xbf16, #tpu.memory_space<vmem>>, vector<1x64x32xbf16>
    %118 = vector.shape_cast %117 : vector<1x64x32xbf16> to vector<64x32xbf16>
    %cst_45 = arith.constant dense<0.000000e+00> : vector<16x32xf32>
    %119 = tpu.matmul %116, %118, %cst_45 {dimension_numbers = #tpu.dot_dimension_numbers<[1], [0], [0], [1], [0, 0, 1, 1], [], []>} : vector<16x64xbf16>, vector<64x32xbf16>, vector<16x32xf32> -> vector<16x32xf32>
    %120 = arith.addf %73, %119 : vector<16x32xf32>
    %c0_46 = arith.constant 0 : index
    %c1536 = arith.constant 1536 : index
    %121 = vector.load %arg9[%c0_46, %c1536] : memref<2x2176xf32, #tpu.memory_space<vmem>>, vector<1x32xf32>
    %122 = vector.broadcast %121 : vector<1x32xf32> to vector<16x32xf32>
    %123 = arith.addf %120, %122 : vector<16x32xf32>
    %124 = arith.negf %123 : vector<16x32xf32>
    %125 = math.exp %124 : vector<16x32xf32>
    %cst_47 = arith.constant 1.000000e+00 : f32
    %126 = vector.broadcast %cst_47 : f32 to vector<16x32xf32>
    %127 = arith.addf %126, %125 : vector<16x32xf32>
    %128 = arith.divf %126, %127 : vector<16x32xf32>
    %129 = arith.mulf %123, %128 : vector<16x32xf32>
    %130 = arith.subf %129, %1 : vector<16x32xf32>
    %131 = arith.mulf %72, %130 : vector<16x32xf32>
    %132 = arith.addf %1, %131 : vector<16x32xf32>
    %c0_48 = arith.constant 0 : index
    %c1664 = arith.constant 1664 : index
    %133 = vector.load %arg9[%c0_48, %c1664] : memref<2x2176xf32, #tpu.memory_space<vmem>>, vector<1x32xf32>
    %c0_49 = arith.constant 0 : index
    %c1792 = arith.constant 1792 : index
    %134 = vector.load %arg9[%c0_49, %c1792] : memref<2x2176xf32, #tpu.memory_space<vmem>>, vector<1x32xf32>
    %cst_50 = arith.constant dense<0.000000e+00> : vector<16xf32>
    %135 = vector.multi_reduction <add>, %132, %cst_50 [1] : vector<16x32xf32> to vector<16xf32>
    %136 = vector.shape_cast %135 : vector<16xf32> to vector<16x1xf32>
    %cst_51 = arith.constant 3.200000e+01 : f32
    %137 = vector.broadcast %cst_51 : f32 to vector<16x1xf32>
    %138 = arith.divf %136, %137 : vector<16x1xf32>
    %139 = vector.broadcast %138 : vector<16x1xf32> to vector<16x32xf32>
    %140 = arith.subf %132, %139 : vector<16x32xf32>
    %141 = arith.mulf %140, %140 : vector<16x32xf32>
    %cst_52 = arith.constant dense<0.000000e+00> : vector<16xf32>
    %142 = vector.multi_reduction <add>, %141, %cst_52 [1] : vector<16x32xf32> to vector<16xf32>
    %143 = vector.shape_cast %142 : vector<16xf32> to vector<16x1xf32>
    %cst_53 = arith.constant 3.200000e+01 : f32
    %144 = vector.broadcast %cst_53 : f32 to vector<16x1xf32>
    %145 = arith.divf %143, %144 : vector<16x1xf32>
    %cst_54 = arith.constant 9.99999974E-6 : f32
    %146 = vector.broadcast %cst_54 : f32 to vector<16x1xf32>
    %147 = arith.addf %145, %146 : vector<16x1xf32>
    %148 = math.rsqrt %147 : vector<16x1xf32>
    %149 = vector.broadcast %148 : vector<16x1xf32> to vector<16x32xf32>
    %150 = arith.mulf %140, %149 : vector<16x32xf32>
    %151 = vector.broadcast %133 : vector<1x32xf32> to vector<16x32xf32>
    %152 = arith.mulf %150, %151 : vector<16x32xf32>
    %153 = vector.broadcast %134 : vector<1x32xf32> to vector<16x32xf32>
    %154 = arith.addf %152, %153 : vector<16x32xf32>
    %155 = arith.truncf %154 : vector<16x32xf32> to vector<16x32xbf16>
    %c0_55 = arith.constant 0 : index
    %c0_56 = arith.constant 0 : index
    %c0_57 = arith.constant 0 : index
    %156 = vector.load %arg5[%c0_55, %c0_56, %c0_57] : memref<2x32x64xbf16, #tpu.memory_space<vmem>>, vector<1x32x64xbf16>
    %157 = vector.shape_cast %156 : vector<1x32x64xbf16> to vector<32x64xbf16>
    %cst_58 = arith.constant dense<0.000000e+00> : vector<16x64xf32>
    %158 = tpu.matmul %155, %157, %cst_58 {dimension_numbers = #tpu.dot_dimension_numbers<[1], [0], [0], [1], [0, 0, 1, 1], [], []>} : vector<16x32xbf16>, vector<32x64xbf16>, vector<16x64xf32> -> vector<16x64xf32>
    %c0_59 = arith.constant 0 : index
    %c1920 = arith.constant 1920 : index
    %159 = vector.load %arg9[%c0_59, %c1920] : memref<2x2176xf32, #tpu.memory_space<vmem>>, vector<1x64xf32>
    %160 = vector.broadcast %159 : vector<1x64xf32> to vector<16x64xf32>
    %161 = arith.addf %158, %160 : vector<16x64xf32>
    %162 = arith.negf %161 : vector<16x64xf32>
    %163 = math.exp %162 : vector<16x64xf32>
    %cst_60 = arith.constant 1.000000e+00 : f32
    %164 = vector.broadcast %cst_60 : f32 to vector<16x64xf32>
    %165 = arith.addf %164, %163 : vector<16x64xf32>
    %166 = arith.divf %164, %165 : vector<16x64xf32>
    %167 = arith.mulf %161, %166 : vector<16x64xf32>
    %168 = arith.truncf %167 : vector<16x64xf32> to vector<16x64xbf16>
    %c0_61 = arith.constant 0 : index
    %c0_62 = arith.constant 0 : index
    %c0_63 = arith.constant 0 : index
    %169 = vector.load %arg6[%c0_61, %c0_62, %c0_63] : memref<2x64x32xbf16, #tpu.memory_space<vmem>>, vector<1x64x32xbf16>
    %170 = vector.shape_cast %169 : vector<1x64x32xbf16> to vector<64x32xbf16>
    %cst_64 = arith.constant dense<0.000000e+00> : vector<16x32xf32>
    %171 = tpu.matmul %168, %170, %cst_64 {dimension_numbers = #tpu.dot_dimension_numbers<[1], [0], [0], [1], [0, 0, 1, 1], [], []>} : vector<16x64xbf16>, vector<64x32xbf16>, vector<16x32xf32> -> vector<16x32xf32>
    %c0_65 = arith.constant 0 : index
    %c2048 = arith.constant 2048 : index
    %172 = vector.load %arg9[%c0_65, %c2048] : memref<2x2176xf32, #tpu.memory_space<vmem>>, vector<1x32xf32>
    %173 = vector.broadcast %172 : vector<1x32xf32> to vector<16x32xf32>
    %174 = arith.addf %171, %173 : vector<16x32xf32>
    %175 = arith.addf %174, %132 : vector<16x32xf32>
    %c0_66 = arith.constant 0 : index
    %c0_67 = arith.constant 0 : index
    %c0_68 = arith.constant 0 : index
    %c0_69 = arith.constant 0 : index
    %176 = vector.load %arg12[%c0_66, %c0_67, %c0_68, %c0_69] : memref<3x1x16x32xf32, #tpu.memory_space<vmem>>, vector<1x1x16x32xf32>
    %177 = vector.shape_cast %176 : vector<1x1x16x32xf32> to vector<16x32xf32>
    %178 = vector.shape_cast %175 : vector<16x32xf32> to vector<1x1x16x32xf32>
    tpu.vector_store %arg12[%c0_66, %c0_67, %c0_68, %c0_69], %178 {strides = array<i32>} : memref<3x1x16x32xf32, #tpu.memory_space<vmem>>, vector<1x1x16x32xf32>,
    %c1 = arith.constant 1 : index
    %c0_70 = arith.constant 0 : index
    %179 = vector.load %arg9[%c1, %c0_70] : memref<2x2176xf32, #tpu.memory_space<vmem>>, vector<1x32xf32>
    %c1_71 = arith.constant 1 : index
    %c128_72 = arith.constant 128 : index
    %180 = vector.load %arg9[%c1_71, %c128_72] : memref<2x2176xf32, #tpu.memory_space<vmem>>, vector<1x32xf32>
    %cst_73 = arith.constant dense<0.000000e+00> : vector<16xf32>
    %181 = vector.multi_reduction <add>, %175, %cst_73 [1] : vector<16x32xf32> to vector<16xf32>
    %182 = vector.shape_cast %181 : vector<16xf32> to vector<16x1xf32>
    %cst_74 = arith.constant 3.200000e+01 : f32
    %183 = vector.broadcast %cst_74 : f32 to vector<16x1xf32>
    %184 = arith.divf %182, %183 : vector<16x1xf32>
    %185 = vector.broadcast %184 : vector<16x1xf32> to vector<16x32xf32>
    %186 = arith.subf %175, %185 : vector<16x32xf32>
    %187 = arith.mulf %186, %186 : vector<16x32xf32>
    %cst_75 = arith.constant dense<0.000000e+00> : vector<16xf32>
    %188 = vector.multi_reduction <add>, %187, %cst_75 [1] : vector<16x32xf32> to vector<16xf32>
    %189 = vector.shape_cast %188 : vector<16xf32> to vector<16x1xf32>
    %cst_76 = arith.constant 3.200000e+01 : f32
    %190 = vector.broadcast %cst_76 : f32 to vector<16x1xf32>
    %191 = arith.divf %189, %190 : vector<16x1xf32>
    %cst_77 = arith.constant 9.99999974E-6 : f32
    %192 = vector.broadcast %cst_77 : f32 to vector<16x1xf32>
    %193 = arith.addf %191, %192 : vector<16x1xf32>
    %194 = math.rsqrt %193 : vector<16x1xf32>
    %195 = vector.broadcast %194 : vector<16x1xf32> to vector<16x32xf32>
    %196 = arith.mulf %186, %195 : vector<16x32xf32>
    %197 = vector.broadcast %179 : vector<1x32xf32> to vector<16x32xf32>
    %198 = arith.mulf %196, %197 : vector<16x32xf32>
    %199 = vector.broadcast %180 : vector<1x32xf32> to vector<16x32xf32>
    %200 = arith.addf %198, %199 : vector<16x32xf32>
    %201 = arith.truncf %200 : vector<16x32xf32> to vector<16x32xbf16>
    %c1_78 = arith.constant 1 : index
    %c0_79 = arith.constant 0 : index
    %c0_80 = arith.constant 0 : index
    %202 = vector.load %arg2[%c1_78, %c0_79, %c0_80] : memref<2x32x64xbf16, #tpu.memory_space<vmem>>, vector<1x32x64xbf16>
    %203 = vector.shape_cast %202 : vector<1x32x64xbf16> to vector<32x64xbf16>
    %cst_81 = arith.constant dense<0.000000e+00> : vector<16x64xf32>
    %204 = tpu.matmul %201, %203, %cst_81 {dimension_numbers = #tpu.dot_dimension_numbers<[1], [0], [0], [1], [0, 0, 1, 1], [], []>} : vector<16x32xbf16>, vector<32x64xbf16>, vector<16x64xf32> -> vector<16x64xf32>
    %c1_82 = arith.constant 1 : index
    %c256_83 = arith.constant 256 : index
    %205 = vector.load %arg9[%c1_82, %c256_83] : memref<2x2176xf32, #tpu.memory_space<vmem>>, vector<1x64xf32>
    %206 = vector.broadcast %205 : vector<1x64xf32> to vector<16x64xf32>
    %207 = arith.addf %204, %206 : vector<16x64xf32>
    %208 = arith.negf %207 : vector<16x64xf32>
    %209 = math.exp %208 : vector<16x64xf32>
    %cst_84 = arith.constant 1.000000e+00 : f32
    %210 = vector.broadcast %cst_84 : f32 to vector<16x64xf32>
    %211 = arith.addf %210, %209 : vector<16x64xf32>
    %212 = arith.divf %210, %211 : vector<16x64xf32>
    %213 = arith.mulf %207, %212 : vector<16x64xf32>
    %c1_85 = arith.constant 1 : index
    %c0_86 = arith.constant 0 : index
    %c0_87 = arith.constant 0 : index
    %c0_88 = arith.constant 0 : index
    %214 = vector.load %arg7[%c1_85, %c0_86, %c0_87, %c0_88] : memref<2x16x16x32xf32, #tpu.memory_space<vmem>>, vector<1x16x16x32xf32>
    %215 = vector.shape_cast %214 : vector<1x16x16x32xf32> to vector<16x16x32xf32>
    %216 = vector.shape_cast %200 : vector<16x32xf32> to vector<1x16x32xf32>
    %217 = vector.broadcast %216 : vector<1x16x32xf32> to vector<16x16x32xf32>
    %218 = arith.mulf %215, %217 : vector<16x16x32xf32>
    %cst_89 = arith.constant dense<0.000000e+00> : vector<16x32xf32>
    %219 = vector.multi_reduction <add>, %218, %cst_89 [1] : vector<16x16x32xf32> to vector<16x32xf32>
    %c1_90 = arith.constant 1 : index
    %c384_91 = arith.constant 384 : index
    %220 = vector.load %arg9[%c1_90, %c384_91] : memref<2x2176xf32, #tpu.memory_space<vmem>>, vector<1x32xf32>
    %221 = vector.broadcast %220 : vector<1x32xf32> to vector<16x32xf32>
    %222 = arith.mulf %200, %221 : vector<16x32xf32>
    %223 = arith.addf %219, %222 : vector<16x32xf32>
    %224 = arith.negf %223 : vector<16x32xf32>
    %225 = math.exp %224 : vector<16x32xf32>
    %cst_92 = arith.constant 1.000000e+00 : f32
    %226 = vector.broadcast %cst_92 : f32 to vector<16x32xf32>
    %227 = arith.addf %226, %225 : vector<16x32xf32>
    %228 = arith.divf %226, %227 : vector<16x32xf32>
    %229 = arith.mulf %223, %228 : vector<16x32xf32>
    %230 = arith.truncf %229 : vector<16x32xf32> to vector<16x32xbf16>
    %c1_93 = arith.constant 1 : index
    %c0_94 = arith.constant 0 : index
    %c0_95 = arith.constant 0 : index
    %231 = vector.load %arg3[%c1_93, %c0_94, %c0_95] : memref<2x32x512xbf16, #tpu.memory_space<vmem>>, vector<1x32x512xbf16>
    %232 = vector.shape_cast %231 : vector<1x32x512xbf16> to vector<32x512xbf16>
    %cst_96 = arith.constant dense<0.000000e+00> : vector<16x512xf32>
    %233 = tpu.matmul %230, %232, %cst_96 {dimension_numbers = #tpu.dot_dimension_numbers<[1], [0], [0], [1], [0, 0, 1, 1], [], []>} : vector<16x32xbf16>, vector<32x512xbf16>, vector<16x512xf32> -> vector<16x512xf32>
    %c1_97 = arith.constant 1 : index
    %c512_98 = arith.constant 512 : index
    %234 = vector.load %arg9[%c1_97, %c512_98] : memref<2x2176xf32, #tpu.memory_space<vmem>>, vector<1x512xf32>
    %235 = vector.broadcast %234 : vector<1x512xf32> to vector<16x512xf32>
    %236 = arith.addf %233, %235 : vector<16x512xf32>
    %237 = vector.extract_strided_slice %236 {offsets = [0, 0], sizes = [16, 64], strides = [1, 1]} : vector<16x512xf32> to vector<16x64xf32>
    %238 = arith.negf %237 : vector<16x64xf32>
    %239 = math.exp %238 : vector<16x64xf32>
    %cst_99 = arith.constant 1.000000e+00 : f32
    %240 = vector.broadcast %cst_99 : f32 to vector<16x64xf32>
    %241 = arith.addf %240, %239 : vector<16x64xf32>
    %242 = arith.divf %240, %241 : vector<16x64xf32>
    %243 = arith.mulf %237, %242 : vector<16x64xf32>
    %244 = vector.extract_strided_slice %236 {offsets = [0, 128], sizes = [16, 32], strides = [1, 1]} : vector<16x512xf32> to vector<16x32xf32>
    %245 = arith.negf %244 : vector<16x32xf32>
    %246 = math.exp %245 : vector<16x32xf32>
    %cst_100 = arith.constant 1.000000e+00 : f32
    %247 = vector.broadcast %cst_100 : f32 to vector<16x32xf32>
    %248 = arith.addf %247, %246 : vector<16x32xf32>
    %249 = arith.divf %247, %248 : vector<16x32xf32>
    %250 = vector.extract_strided_slice %236 {offsets = [0, 256], sizes = [16, 32], strides = [1, 1]} : vector<16x512xf32> to vector<16x32xf32>
    %251 = vector.extract_strided_slice %236 {offsets = [0, 384], sizes = [16, 16], strides = [1, 1]} : vector<16x512xf32> to vector<16x16xf32>
    %252 = arith.negf %251 : vector<16x16xf32>
    %253 = math.exp %252 : vector<16x16xf32>
    %cst_101 = arith.constant 1.000000e+00 : f32
    %254 = vector.broadcast %cst_101 : f32 to vector<16x16xf32>
    %255 = arith.addf %254, %253 : vector<16x16xf32>
    %256 = arith.divf %254, %255 : vector<16x16xf32>
    %257 = arith.mulf %251, %256 : vector<16x16xf32>
    %c1_102 = arith.constant 1 : index
    %c1024_103 = arith.constant 1024 : index
    %258 = vector.load %arg9[%c1_102, %c1024_103] : memref<2x2176xf32, #tpu.memory_space<vmem>>, vector<1x16xf32>
    %259 = vector.broadcast %258 : vector<1x16xf32> to vector<16x16xf32>
    %260 = arith.mulf %257, %259 : vector<16x16xf32>
    %c1_104 = arith.constant 1 : index
    %c1152_105 = arith.constant 1152 : index
    %261 = vector.load %arg9[%c1_104, %c1152_105] : memref<2x2176xf32, #tpu.memory_space<vmem>>, vector<1x16xf32>
    %262 = vector.broadcast %261 : vector<1x16xf32> to vector<16x16xf32>
    %263 = arith.addf %260, %262 : vector<16x16xf32>
    %c1_106 = arith.constant 1 : index
    %c1280_107 = arith.constant 1280 : index
    %264 = vector.load %arg9[%c1_106, %c1280_107] : memref<2x2176xf32, #tpu.memory_space<vmem>>, vector<1x16xf32>
    %265 = vector.broadcast %264 : vector<1x16xf32> to vector<16x16xf32>
    %266 = arith.mulf %257, %265 : vector<16x16xf32>
    %c1_108 = arith.constant 1 : index
    %c1408_109 = arith.constant 1408 : index
    %267 = vector.load %arg9[%c1_108, %c1408_109] : memref<2x2176xf32, #tpu.memory_space<vmem>>, vector<1x16xf32>
    %268 = vector.broadcast %267 : vector<1x16xf32> to vector<16x16xf32>
    %269 = arith.addf %266, %268 : vector<16x16xf32>
    %cst_110 = arith.constant 2.500000e-01 : f32
    %270 = vector.broadcast %cst_110 : f32 to vector<16x16xf32>
    %271 = arith.mulf %263, %270 : vector<16x16xf32>
    %272 = arith.truncf %271 : vector<16x16xf32> to vector<16x16xbf16>
    %273 = arith.truncf %269 : vector<16x16xf32> to vector<16x16xbf16>
    %cst_111 = arith.constant dense<0.000000e+00> : vector<16x16xf32>
    %274 = tpu.matmul %272, %273, %cst_111 {dimension_numbers = #tpu.dot_dimension_numbers<[1], [1], [0], [0], [0, 0, 1, 0], [], []>} : vector<16x16xbf16>, vector<16x16xbf16>, vector<16x16xf32> -> vector<16x16xf32>
    %c1_112 = arith.constant 1 : index
    %c0_113 = arith.constant 0 : index
    %c0_114 = arith.constant 0 : index
    %275 = vector.load %arg8[%c1_112, %c0_113, %c0_114] : memref<2x16x16xbf16, #tpu.memory_space<vmem>>, vector<1x16x16xbf16>
    %276 = vector.shape_cast %275 : vector<1x16x16xbf16> to vector<16x16xbf16>
    %277 = arith.extf %276 : vector<16x16xbf16> to vector<16x16xf32>
    %278 = arith.addf %274, %277 : vector<16x16xf32>
    %cst_115 = arith.constant dense<0xFF800000> : vector<16xf32>
    %279 = vector.multi_reduction <maximumf>, %278, %cst_115 [1] : vector<16x16xf32> to vector<16xf32>
    %280 = vector.shape_cast %279 : vector<16xf32> to vector<16x1xf32>
    %281 = vector.broadcast %280 : vector<16x1xf32> to vector<16x16xf32>
    %282 = arith.subf %278, %281 : vector<16x16xf32>
    %283 = math.exp %282 : vector<16x16xf32>
    %cst_116 = arith.constant dense<0.000000e+00> : vector<16xf32>
    %284 = vector.multi_reduction <add>, %283, %cst_116 [1] : vector<16x16xf32> to vector<16xf32>
    %285 = vector.shape_cast %284 : vector<16xf32> to vector<16x1xf32>
    %286 = tpu.reciprocal %285 {approx = true} : vector<16x1xf32> -> vector<16x1xf32>
    %287 = vector.broadcast %286 : vector<16x1xf32> to vector<16x16xf32>
    %288 = arith.mulf %283, %287 : vector<16x16xf32>
    %289 = arith.truncf %288 : vector<16x16xf32> to vector<16x16xbf16>
    %290 = arith.truncf %213 : vector<16x64xf32> to vector<16x64xbf16>
    %cst_117 = arith.constant dense<0.000000e+00> : vector<16x64xf32>
    %291 = tpu.matmul %289, %290, %cst_117 {dimension_numbers = #tpu.dot_dimension_numbers<[1], [0], [0], [1], [0, 0, 1, 1], [], []>} : vector<16x16xbf16>, vector<16x64xbf16>, vector<16x64xf32> -> vector<16x64xf32>
    %292 = arith.mulf %291, %243 : vector<16x64xf32>
    %293 = arith.truncf %292 : vector<16x64xf32> to vector<16x64xbf16>
    %c1_118 = arith.constant 1 : index
    %c0_119 = arith.constant 0 : index
    %c0_120 = arith.constant 0 : index
    %294 = vector.load %arg4[%c1_118, %c0_119, %c0_120] : memref<2x64x32xbf16, #tpu.memory_space<vmem>>, vector<1x64x32xbf16>
    %295 = vector.shape_cast %294 : vector<1x64x32xbf16> to vector<64x32xbf16>
    %cst_121 = arith.constant dense<0.000000e+00> : vector<16x32xf32>
    %296 = tpu.matmul %293, %295, %cst_121 {dimension_numbers = #tpu.dot_dimension_numbers<[1], [0], [0], [1], [0, 0, 1, 1], [], []>} : vector<16x64xbf16>, vector<64x32xbf16>, vector<16x32xf32> -> vector<16x32xf32>
    %297 = arith.addf %250, %296 : vector<16x32xf32>
    %c1_122 = arith.constant 1 : index
    %c1536_123 = arith.constant 1536 : index
    %298 = vector.load %arg9[%c1_122, %c1536_123] : memref<2x2176xf32, #tpu.memory_space<vmem>>, vector<1x32xf32>
    %299 = vector.broadcast %298 : vector<1x32xf32> to vector<16x32xf32>
    %300 = arith.addf %297, %299 : vector<16x32xf32>
    %301 = arith.negf %300 : vector<16x32xf32>
    %302 = math.exp %301 : vector<16x32xf32>
    %cst_124 = arith.constant 1.000000e+00 : f32
    %303 = vector.broadcast %cst_124 : f32 to vector<16x32xf32>
    %304 = arith.addf %303, %302 : vector<16x32xf32>
    %305 = arith.divf %303, %304 : vector<16x32xf32>
    %306 = arith.mulf %300, %305 : vector<16x32xf32>
    %307 = arith.subf %306, %175 : vector<16x32xf32>
    %308 = arith.mulf %249, %307 : vector<16x32xf32>
    %309 = arith.addf %175, %308 : vector<16x32xf32>
    %c1_125 = arith.constant 1 : index
    %c1664_126 = arith.constant 1664 : index
    %310 = vector.load %arg9[%c1_125, %c1664_126] : memref<2x2176xf32, #tpu.memory_space<vmem>>, vector<1x32xf32>
    %c1_127 = arith.constant 1 : index
    %c1792_128 = arith.constant 1792 : index
    %311 = vector.load %arg9[%c1_127, %c1792_128] : memref<2x2176xf32, #tpu.memory_space<vmem>>, vector<1x32xf32>
    %cst_129 = arith.constant dense<0.000000e+00> : vector<16xf32>
    %312 = vector.multi_reduction <add>, %309, %cst_129 [1] : vector<16x32xf32> to vector<16xf32>
    %313 = vector.shape_cast %312 : vector<16xf32> to vector<16x1xf32>
    %cst_130 = arith.constant 3.200000e+01 : f32
    %314 = vector.broadcast %cst_130 : f32 to vector<16x1xf32>
    %315 = arith.divf %313, %314 : vector<16x1xf32>
    %316 = vector.broadcast %315 : vector<16x1xf32> to vector<16x32xf32>
    %317 = arith.subf %309, %316 : vector<16x32xf32>
    %318 = arith.mulf %317, %317 : vector<16x32xf32>
    %cst_131 = arith.constant dense<0.000000e+00> : vector<16xf32>
    %319 = vector.multi_reduction <add>, %318, %cst_131 [1] : vector<16x32xf32> to vector<16xf32>
    %320 = vector.shape_cast %319 : vector<16xf32> to vector<16x1xf32>
    %cst_132 = arith.constant 3.200000e+01 : f32
    %321 = vector.broadcast %cst_132 : f32 to vector<16x1xf32>
    %322 = arith.divf %320, %321 : vector<16x1xf32>
    %cst_133 = arith.constant 9.99999974E-6 : f32
    %323 = vector.broadcast %cst_133 : f32 to vector<16x1xf32>
    %324 = arith.addf %322, %323 : vector<16x1xf32>
    %325 = math.rsqrt %324 : vector<16x1xf32>
    %326 = vector.broadcast %325 : vector<16x1xf32> to vector<16x32xf32>
    %327 = arith.mulf %317, %326 : vector<16x32xf32>
    %328 = vector.broadcast %310 : vector<1x32xf32> to vector<16x32xf32>
    %329 = arith.mulf %327, %328 : vector<16x32xf32>
    %330 = vector.broadcast %311 : vector<1x32xf32> to vector<16x32xf32>
    %331 = arith.addf %329, %330 : vector<16x32xf32>
    %332 = arith.truncf %331 : vector<16x32xf32> to vector<16x32xbf16>
    %c1_134 = arith.constant 1 : index
    %c0_135 = arith.constant 0 : index
    %c0_136 = arith.constant 0 : index
    %333 = vector.load %arg5[%c1_134, %c0_135, %c0_136] : memref<2x32x64xbf16, #tpu.memory_space<vmem>>, vector<1x32x64xbf16>
    %334 = vector.shape_cast %333 : vector<1x32x64xbf16> to vector<32x64xbf16>
    %cst_137 = arith.constant dense<0.000000e+00> : vector<16x64xf32>
    %335 = tpu.matmul %332, %334, %cst_137 {dimension_numbers = #tpu.dot_dimension_numbers<[1], [0], [0], [1], [0, 0, 1, 1], [], []>} : vector<16x32xbf16>, vector<32x64xbf16>, vector<16x64xf32> -> vector<16x64xf32>
    %c1_138 = arith.constant 1 : index
    %c1920_139 = arith.constant 1920 : index
    %336 = vector.load %arg9[%c1_138, %c1920_139] : memref<2x2176xf32, #tpu.memory_space<vmem>>, vector<1x64xf32>
    %337 = vector.broadcast %336 : vector<1x64xf32> to vector<16x64xf32>
    %338 = arith.addf %335, %337 : vector<16x64xf32>
    %339 = arith.negf %338 : vector<16x64xf32>
    %340 = math.exp %339 : vector<16x64xf32>
    %cst_140 = arith.constant 1.000000e+00 : f32
    %341 = vector.broadcast %cst_140 : f32 to vector<16x64xf32>
    %342 = arith.addf %341, %340 : vector<16x64xf32>
    %343 = arith.divf %341, %342 : vector<16x64xf32>
    %344 = arith.mulf %338, %343 : vector<16x64xf32>
    %345 = arith.truncf %344 : vector<16x64xf32> to vector<16x64xbf16>
    %c1_141 = arith.constant 1 : index
    %c0_142 = arith.constant 0 : index
    %c0_143 = arith.constant 0 : index
    %346 = vector.load %arg6[%c1_141, %c0_142, %c0_143] : memref<2x64x32xbf16, #tpu.memory_space<vmem>>, vector<1x64x32xbf16>
    %347 = vector.shape_cast %346 : vector<1x64x32xbf16> to vector<64x32xbf16>
    %cst_144 = arith.constant dense<0.000000e+00> : vector<16x32xf32>
    %348 = tpu.matmul %345, %347, %cst_144 {dimension_numbers = #tpu.dot_dimension_numbers<[1], [0], [0], [1], [0, 0, 1, 1], [], []>} : vector<16x64xbf16>, vector<64x32xbf16>, vector<16x32xf32> -> vector<16x32xf32>
    %c1_145 = arith.constant 1 : index
    %c2048_146 = arith.constant 2048 : index
    %349 = vector.load %arg9[%c1_145, %c2048_146] : memref<2x2176xf32, #tpu.memory_space<vmem>>, vector<1x32xf32>
    %350 = vector.broadcast %349 : vector<1x32xf32> to vector<16x32xf32>
    %351 = arith.addf %348, %350 : vector<16x32xf32>
    %352 = arith.addf %351, %309 : vector<16x32xf32>
    %c1_147 = arith.constant 1 : index
    %c0_148 = arith.constant 0 : index
    %c0_149 = arith.constant 0 : index
    %c0_150 = arith.constant 0 : index
    %353 = vector.load %arg12[%c1_147, %c0_148, %c0_149, %c0_150] : memref<3x1x16x32xf32, #tpu.memory_space<vmem>>, vector<1x1x16x32xf32>
    %354 = vector.shape_cast %353 : vector<1x1x16x32xf32> to vector<16x32xf32>
    %355 = vector.shape_cast %352 : vector<16x32xf32> to vector<1x1x16x32xf32>
    tpu.vector_store %arg12[%c1_147, %c0_148, %c0_149, %c0_150], %355 {strides = array<i32>} : memref<3x1x16x32xf32, #tpu.memory_space<vmem>>, vector<1x1x16x32xf32>,
    %c0_151 = arith.constant 0 : index
    %c0_152 = arith.constant 0 : index
    %356 = vector.load %arg11[%c0_151, %c0_152] : memref<1x384xf32, #tpu.memory_space<vmem>>, vector<1x32xf32>
    %c0_153 = arith.constant 0 : index
    %c128_154 = arith.constant 128 : index
    %357 = vector.load %arg11[%c0_153, %c128_154] : memref<1x384xf32, #tpu.memory_space<vmem>>, vector<1x32xf32>
    %c0_155 = arith.constant 0 : index
    %c256_156 = arith.constant 256 : index
    %358 = vector.load %arg11[%c0_155, %c256_156] : memref<1x384xf32, #tpu.memory_space<vmem>>, vector<1x32xf32>
    %cst_157 = arith.constant dense<0.000000e+00> : vector<16xf32>
    %359 = vector.multi_reduction <add>, %352, %cst_157 [1] : vector<16x32xf32> to vector<16xf32>
    %360 = vector.shape_cast %359 : vector<16xf32> to vector<16x1xf32>
    %cst_158 = arith.constant 3.200000e+01 : f32
    %361 = vector.broadcast %cst_158 : f32 to vector<16x1xf32>
    %362 = arith.divf %360, %361 : vector<16x1xf32>
    %363 = vector.broadcast %362 : vector<16x1xf32> to vector<16x32xf32>
    %364 = arith.subf %352, %363 : vector<16x32xf32>
    %365 = arith.mulf %364, %364 : vector<16x32xf32>
    %cst_159 = arith.constant dense<0.000000e+00> : vector<16xf32>
    %366 = vector.multi_reduction <add>, %365, %cst_159 [1] : vector<16x32xf32> to vector<16xf32>
    %367 = vector.shape_cast %366 : vector<16xf32> to vector<16x1xf32>
    %cst_160 = arith.constant 3.200000e+01 : f32
    %368 = vector.broadcast %cst_160 : f32 to vector<16x1xf32>
    %369 = arith.divf %367, %368 : vector<16x1xf32>
    %cst_161 = arith.constant 9.99999974E-6 : f32
    %370 = vector.broadcast %cst_161 : f32 to vector<16x1xf32>
    %371 = arith.addf %369, %370 : vector<16x1xf32>
    %372 = math.rsqrt %371 : vector<16x1xf32>
    %373 = vector.broadcast %372 : vector<16x1xf32> to vector<16x32xf32>
    %374 = arith.mulf %364, %373 : vector<16x32xf32>
    %375 = vector.broadcast %356 : vector<1x32xf32> to vector<16x32xf32>
    %376 = arith.mulf %374, %375 : vector<16x32xf32>
    %377 = vector.broadcast %357 : vector<1x32xf32> to vector<16x32xf32>
    %378 = arith.addf %376, %377 : vector<16x32xf32>
    %379 = arith.truncf %378 : vector<16x32xf32> to vector<16x32xbf16>
    %c0_162 = arith.constant 0 : index
    %c0_163 = arith.constant 0 : index
    %380 = vector.load %arg10[%c0_162, %c0_163] : memref<32x32xbf16, #tpu.memory_space<vmem>>, vector<32x32xbf16>
    %cst_164 = arith.constant dense<0.000000e+00> : vector<16x32xf32>
    %381 = tpu.matmul %379, %380, %cst_164 {dimension_numbers = #tpu.dot_dimension_numbers<[1], [0], [0], [1], [0, 0, 1, 1], [], []>} : vector<16x32xbf16>, vector<32x32xbf16>, vector<16x32xf32> -> vector<16x32xf32>
    %382 = vector.broadcast %358 : vector<1x32xf32> to vector<16x32xf32>
    %383 = arith.addf %381, %382 : vector<16x32xf32>
    %384 = arith.addf %383, %378 : vector<16x32xf32>
    %385 = arith.negf %384 : vector<16x32xf32>
    %386 = math.exp %385 : vector<16x32xf32>
    %cst_165 = arith.constant 1.000000e+00 : f32
    %387 = vector.broadcast %cst_165 : f32 to vector<16x32xf32>
    %388 = arith.addf %387, %386 : vector<16x32xf32>
    %389 = arith.divf %387, %388 : vector<16x32xf32>
    %390 = arith.mulf %384, %389 : vector<16x32xf32>
    %c2 = arith.constant 2 : index
    %c0_166 = arith.constant 0 : index
    %c0_167 = arith.constant 0 : index
    %c0_168 = arith.constant 0 : index
    %391 = vector.load %arg12[%c2, %c0_166, %c0_167, %c0_168] : memref<3x1x16x32xf32, #tpu.memory_space<vmem>>, vector<1x1x16x32xf32>
    %392 = vector.shape_cast %391 : vector<1x1x16x32xf32> to vector<16x32xf32>
    %393 = vector.shape_cast %390 : vector<16x32xf32> to vector<1x1x16x32xf32>
    tpu.vector_store %arg12[%c2, %c0_166, %c0_167, %c0_168], %393 {strides = array<i32>} : memref<3x1x16x32xf32, #tpu.memory_space<vmem>>, vector<1x1x16x32xf32>,
    return
  }
  func.func @transform_0(%arg0: i32) -> (i32, i32, i32) {
    %c0_i32 = arith.constant 0 : i32
    %c0_i32_0 = arith.constant 0 : i32
    %c0_i32_1 = arith.constant 0 : i32
    return %arg0, %c0_i32, %c0_i32_0 : i32, i32, i32
  }
  func.func @transform_1(%arg0: i32) -> (i32, i32, i32) {
    %c0_i32 = arith.constant 0 : i32
    %c0_i32_0 = arith.constant 0 : i32
    %c0_i32_1 = arith.constant 0 : i32
    %c0_i32_2 = arith.constant 0 : i32
    return %c0_i32, %c0_i32_0, %c0_i32_1 : i32, i32, i32
  }
  func.func @transform_2(%arg0: i32) -> (i32, i32, i32) {
    %c0_i32 = arith.constant 0 : i32
    %c0_i32_0 = arith.constant 0 : i32
    %c0_i32_1 = arith.constant 0 : i32
    %c0_i32_2 = arith.constant 0 : i32
    return %c0_i32, %c0_i32_0, %c0_i32_1 : i32, i32, i32
  }
  func.func @transform_3(%arg0: i32) -> (i32, i32, i32) {
    %c0_i32 = arith.constant 0 : i32
    %c0_i32_0 = arith.constant 0 : i32
    %c0_i32_1 = arith.constant 0 : i32
    %c0_i32_2 = arith.constant 0 : i32
    return %c0_i32, %c0_i32_0, %c0_i32_1 : i32, i32, i32
  }
  func.func @transform_4(%arg0: i32) -> (i32, i32, i32) {
    %c0_i32 = arith.constant 0 : i32
    %c0_i32_0 = arith.constant 0 : i32
    %c0_i32_1 = arith.constant 0 : i32
    %c0_i32_2 = arith.constant 0 : i32
    return %c0_i32, %c0_i32_0, %c0_i32_1 : i32, i32, i32
  }
  func.func @transform_5(%arg0: i32) -> (i32, i32, i32) {
    %c0_i32 = arith.constant 0 : i32
    %c0_i32_0 = arith.constant 0 : i32
    %c0_i32_1 = arith.constant 0 : i32
    %c0_i32_2 = arith.constant 0 : i32
    return %c0_i32, %c0_i32_0, %c0_i32_1 : i32, i32, i32
  }
  func.func @transform_6(%arg0: i32) -> (i32, i32, i32, i32) {
    %c0_i32 = arith.constant 0 : i32
    %c0_i32_0 = arith.constant 0 : i32
    %c0_i32_1 = arith.constant 0 : i32
    %c0_i32_2 = arith.constant 0 : i32
    %c0_i32_3 = arith.constant 0 : i32
    return %c0_i32, %c0_i32_0, %c0_i32_1, %c0_i32_2 : i32, i32, i32, i32
  }
  func.func @transform_7(%arg0: i32) -> (i32, i32, i32) {
    %c0_i32 = arith.constant 0 : i32
    %c0_i32_0 = arith.constant 0 : i32
    %c0_i32_1 = arith.constant 0 : i32
    %c0_i32_2 = arith.constant 0 : i32
    return %c0_i32, %c0_i32_0, %c0_i32_1 : i32, i32, i32
  }
  func.func @transform_8(%arg0: i32) -> (i32, i32) {
    %c0_i32 = arith.constant 0 : i32
    %c0_i32_0 = arith.constant 0 : i32
    %c0_i32_1 = arith.constant 0 : i32
    return %c0_i32, %c0_i32_0 : i32, i32
  }
  func.func @transform_9(%arg0: i32) -> (i32, i32) {
    %c0_i32 = arith.constant 0 : i32
    %c0_i32_0 = arith.constant 0 : i32
    %c0_i32_1 = arith.constant 0 : i32
    return %c0_i32, %c0_i32_0 : i32, i32
  }
  func.func @transform_10(%arg0: i32) -> (i32, i32) {
    %c0_i32 = arith.constant 0 : i32
    %c0_i32_0 = arith.constant 0 : i32
    %c0_i32_1 = arith.constant 0 : i32
    return %c0_i32, %c0_i32_0 : i32, i32
  }
  func.func @transform_11(%arg0: i32) -> (i32, i32, i32, i32) {
    %c0_i32 = arith.constant 0 : i32
    %c0_i32_0 = arith.constant 0 : i32
    %c0_i32_1 = arith.constant 0 : i32
    %c0_i32_2 = arith.constant 0 : i32
    return %c0_i32, %arg0, %c0_i32_0, %c0_i32_1 : i32, i32, i32, i32
  }
}

</mosaic_0001>

<bundles_post_ra>
// kernel: tpu_custom_call.1
= control target key start
LH: loop header
LB: loop body
LE: loop exit
PB: predicated region body
PF: predicated region fallthrough
CT: control target
= control target key end

     0   :  { %s6588_s0 = inlined_call_operand.hbm [shape: f32[2,16,32], index: 0, kind: input, shape index: {}]   ;;  %s6589_s1 = inlined_call_operand.hbm [shape: bf16[2,32,64], index: 1, kind: input, shape index: {}]   ;;  %s6590_s2 = inlined_call_operand.vmem [shape: bf16[2,32,512], index: 2, kind: input, shape index: {}]   ;;  %s6591_s3 = inlined_call_operand.vmem [shape: bf16[2,64,32], index: 3, kind: input, shape index: {}]   ;;  %s6592_s4 = inlined_call_operand.vmem [shape: bf16[2,32,64], index: 4, kind: input, shape index: {}]   ;;  %s6593_s5 = inlined_call_operand.vmem [shape: bf16[2,64,32], index: 5, kind: input, shape index: {}]   ;;  %s6594_s6 = inlined_call_operand.hbm [shape: f32[2,16,16,32], index: 6, kind: input, shape index: {}]   ;;  %s6595_s7 = inlined_call_operand.hbm [shape: bf16[2,16,16], index: 7, kind: input, shape index: {}]   ;;  %s6596_s8 = inlined_call_operand.vmem [shape: f32[2,2176], index: 8, kind: input, shape index: {}]   ;;  %s6597_s9 = inlined_call_operand.hbm [shape: bf16[32,32], index: 9, kind: input, shape index: {}]   ;;  %s6598_s10 = inlined_call_operand.vmem [shape: f32[1,384], index: 10, kind: input, shape index: {}]   ;;  %s6599_s11 = inlined_call_operand.hbm [shape: f32[3,2,16,32], index: 11, kind: output, shape index: {}]  }
   0x1   :  { %6623 = sst [smem:[#allocation24_spill]] %s6589_s1 }
   0x2   :  { %6624 = sst [smem:[#allocation25_spill]] %s6594_s6 }
   0x3   :  { %6625 = sst [smem:[#allocation26_spill]] %s6595_s7 }
   0x4   :  { %6626 = sst [smem:[#allocation27_spill]] %s6597_s9 }
   0x5   :  { %16 = vsyncpa [#allocation3], 0 }
   0x6   :  { %18 = vsyncpa [#allocation3 + $0x1], 0 }
   0x7   :  { %19 = vsyncpa [#allocation6], 0 }
   0x8   :  { %20 = vsyncpa [#allocation9], 0 }
   0x9   :  { %21 = vsyncpa [#allocation4], 0 }
   0xa   :  { %23 = vsyncpa [#allocation4 + $0x1], 0  ;;  %s4612_s17 = smov 0   ;;  %s4614_s18 = smov 0  }
   0xb   :  { %s4616_s19 = smov 0   ;;  %s4618_s20 = smov 0  }
   0xc LB: > { %s4633_s21 = sadd.s32 4294967295, %s4534_s20   ;;  %s3578_s22 = sadd.s32 4294967294, %s4534_s20   ;;  %s4534_s20 = sphi %s4618_s20, %s6860_s20   ;;  %s4530_s19 = sphi %s4616_s19, %s6859_s19   ;;  %s4526_s18 = sphi %s4614_s18, %s6858_s18   ;;  %s4522_s17 = sphi %s4612_s17, %s6857_s17  }
   0xd   : > { %p49_p0 = scmp.ne.s32.totalorder %s4526_s18, %s4522_s17  ;;  %p50_p1 = scmp.eq.s32.totalorder %s4633_s21, 0 }
   0xe   : > { %p283_p2 = scmp.eq.s32.totalorder %s4633_s21, 1  ;;  %p289_p3 = scmp.eq.s32.totalorder %s3578_s22, 1 }
   0xf   : > { %p4642_p4 = por %p50_p1, %p49_p0  ;;  %p3579_p5 = scmp.ge.s32.totalorder %s4534_s20, 1 }
  0x10   : > { %p4647_p6 = por %p289_p3, %p49_p0  ;;  %p296_p7 = scmp.lt.s32.totalorder %s4534_s20, 3 }
  0x11   : > { %s6630_s1 = sld [smem:[#allocation24_spill]]  ;;  %s4536_s29 = smov [#allocation5]  }
  0x12   : > { %s6628_s24 = scalar_select %p4647_p6, 1, 0 }
  0x13   : > { %p4655_p8 = pnand %p3579_p5, %p296_p7  ;;  %s309_s30 = sshll.u32 %s4536_s29, 4  ;;  %s310_s30 = int_to_ptr.vmem [resolvable:$true] %s309_s30 }
  0x14   : > { %6629 = sst [smem:[#allocation18_spill]] %s6628_s24  ;;  %s4537_s16 = smov 64  }
  0x15   : > { %p3958_p9 = pneg %p4655_p8  ;;  %s6633_s7 = sld [smem:[#allocation26_spill]] }
  0x16   : > { %s4538_s22 = smov 4   ;;  %s4539_s25 = smov [#allocation8]  }
  0x17   : > { %s307_s27 = sshll.u32 %s6630_s1, 4  ;;  %p4663_p10 = pnand %p3958_p9, %p50_p1  ;;  %s308_s27 = int_to_ptr.hbm [resolvable:$true] %s307_s27 }
  0x18   : > { %s349_s26 = sshll.u32 %s4539_s25, 4  ;;  %s6634_s6 = sld [smem:[#allocation25_spill]]  ;;  %s350_s26 = int_to_ptr.vmem [resolvable:$true] %s349_s26 }
  0x19   : > { %3961 = dma.hbm_to_vmem [thread:$0]  (!%p4663_p10), %s308_s27, 512, %s310_s30, [#allocation6], %s4537_s16, %s4537_s16, %s4538_s22  }
  0x1a   : > { %s4540_s13 = smov [#allocation7]   ;;  %s6635_s9 = sld [smem:[#allocation27_spill]] }
  0x1b   : > { %s347_s15 = sshll.u32 %s6633_s7, 4  ;;  %s335_s14 = sshll.u32 %s4540_s13, 4  ;;  %s348_s15 = int_to_ptr.hbm [resolvable:$true] %s347_s15  ;;  %s336_s14 = int_to_ptr.vmem [resolvable:$true] %s335_s14 }
  0x1c   : > { %3967 = dma.hbm_to_vmem [thread:$0]  (!%p4663_p10), %s348_s15, 256, %s350_s26, [#allocation9], %s4537_s16, %s4537_s16, %s4538_s22  }
  0x1d   : > { %s6601_s25 = smov 128   ;;  %s6602_s29 = smov 8  }
  0x1e   : > { %s333_s24 = sshll.u32 %s6634_s6, 4  ;;  %s4543_s15 = smov [#allocation10]   ;;  %s334_s24 = int_to_ptr.hbm [resolvable:$true] %s333_s24 }
  0x1f   : > { %3964 = dma.hbm_to_vmem [thread:$0]  (!%p4663_p10), %s334_s24, 8192, %s336_s14, [#allocation6], %s6601_s25, %s6601_s25, %s6602_s29  }
  0x20   : > { %s364_s1 = sshll.u32 %s6635_s9, 4  ;;  %s366_s26 = sshll.u32 %s4543_s15, 4  ;;  %s365_s1 = int_to_ptr.hbm [resolvable:$true] %s364_s1  ;;  %s367_s26 = int_to_ptr.vmem [resolvable:$true] %s366_s26 }
  0x21   : > { %3970 = dma.hbm_to_vmem [thread:$0]  (!%p4663_p10), %s365_s1, 256, %s367_s26, [#allocation9], %s4537_s16, %s4537_s16, %s4538_s22  }
  0x22   : > { %s4689_s13 = sadd.s32 1, %s4534_s20   ;;  %s36_s27 = sadd.s32 1, %s4530_s19 }
  0x23   : > { %s33_s30 = ssub.s32 %s4534_s20, %s4689_s13  ;;  %p43_p12 = scmp.ne.s32.totalorder %s4530_s19, %s4526_s18 }
  0x24   : > { %p34_p13 = scmp.eq.s32.totalorder %s33_s30, 0  ;;  %p44_p0 = scmp.eq.s32.totalorder %s4534_s20, 0 }
  0x25   : > { %p4699_p3 = por %p283_p2, %p43_p12  ;;  %p3983_p5 = scmp.lt.s32.totalorder %s4534_s20, 2 }
  0x26   : > { %s4705_s24 = scalar_select %p34_p13, %s4530_s19, %s36_s27  }
  0x27   : > { %p45_p7 = por %p44_p0, %p43_p12  ;;  %s383_s14 = sand.u32 1, %s4530_s19  }
  0x28   : > { %s3585_s12 = sshll.u32 %s383_s14, 4  ;;  %s3879_s16 = sshll.u32 %s4534_s20, 4 }
  0x29   : > { %s392_s15 = scalar_lea.hbm %s6588_s0, %s3879_s16  ;;  %s387_s26 = scalar_lea.vmem [#allocation2], %s3585_s12 }
  0x2a   : > { %s395_s25 = sshll.u32 %s387_s26, 4  ;;  %s393_s30 = sshll.u32 %s392_s15, 4  ;;  %s396_s25 = int_to_ptr.vmem [resolvable:$true] %s395_s25  ;;  %s394_s30 = int_to_ptr.hbm [resolvable:$true] %s393_s30 }
  0x2b   : > { %p4712_p2 = pnand %p3983_p5, %p45_p7  ;;  %s384_s27 = scalar_lea.sflag [#allocation3], %s383_s14 }
  0x2c   : > { %s4458_s7 = sshra.s32 %s394_s30, 4  ;;  %s4465_s22 = scalar_lea.hbm %s6588_s0, 32  ;;  %s4459_s7 = int_to_ptr.hbm [resolvable:$true] %s4458_s7 }
  0x2d   : > { %s4460_s9 = scalar_lea.hbm %s4459_s7, 16  ;;  %p4462_p10 = pneg %p4712_p2 }
  0x2e   : > { %p4461_p9 = scmp.ne.s32.totalorder %s4459_s7, %s4460_s9  ;;  %p4466_p0 = scmp.lt.s32.totalorder %s4459_s7, %s6588_s0 }
  0x2f   : > { %p4467_p5 = scmp.lt.s32.totalorder %s4465_s22, %s4460_s9 }
  0x30   : > { %p4463_p12 = pnand %p4462_p10, %p4461_p9 }
  0x31   : > { %p4468_p7 = por %p4467_p5, %p4466_p0 }
  0x32   : > { %p4464_p13 = pneg %p4463_p12 }
  0x34   : > { %p4469_p11 = pnand %p4468_p7, %p4464_p13 }
  0x36   : > { %4472 = shalt.err (!%p4469_p11)
}
  0x37   : > { %s6638_s14 = smov 8   ;;  %s6639_s26 = smov 128  }
  0x38   : > { %3974 = dma.hbm_to_vmem [thread:$0]  (!%p4712_p2), %s394_s30, 256, %s396_s25, %s384_s27, %s6639_s26, %s6639_s26, %s6638_s14  }
  0x39   : > { %407 = sbr.rel (%p4655_p8) target bundleno = 4307 (0x10d3), region = 64 }
  0x3e   : > { %s4732_s16 = sand.u32 1, %s4526_s18  }
  0x3f   : > { %s3589_s7 = sshll.u32 %s4732_s16, 4  ;;  %s410_s9 = scalar_lea.sflag [#allocation3], %s4732_s16 }
  0x40   : > { %s4736_s12 = scalar_lea.vmem [#allocation2], %s3589_s7 }
  0x41   : > { %4505 = dma.done.wait (%p4642_p4), %s410_s9, 256  }
  0x42   : > { %4507 = vsyncadd (%p4642_p4), %s410_s9, 4294967040 }
  0x43   : > { %4509 = dma.done.wait (%p50_p1), [#allocation6], 8704  }
  0x44   : > { %4511 = vsyncadd (%p50_p1), [#allocation6], 4294958592 }
  0x45   : > { %4513 = dma.done.wait (%p50_p1), [#allocation9], 512  }
  0x46   : > { %4515 = vsyncadd (%p50_p1), [#allocation9], 4294966784  ;;  %vm6606_vm0 = vcmask 261120   ;;  %v474_v0 = vld [vmem:[%s4736_s12] sm:$0xff]  ;;  %v475_v1 = vld [vmem:[%s4736_s12 + $0x8] sm:$0xff]  ;;  %v4544_v4 = vmov 32.0  }
  0x47   : > { %v479_v2 = vsel %vm6606_vm0, %v474_v0, 0.0  ;;  %v482_v3 = vsel %vm6606_vm0, %v475_v1, 0.0  ;;  %4066 = vrcp.f32 %v4544_v4  ;;  %v3881_v21 = vld [vmem:[#allocation5 + $0x8] sm:$0xff]  ;;  %v3880_v24 = vld [vmem:[#allocation5] sm:$0xff]  ;;  %v3888_v27 = vld [vmem:[%s6590_s2 + $0x2c] sm:$0xf0] }
  0x48   : > { %480 = vadd.xlane.f32.xlu0 %v479_v2  ;;  %564 = vmatpush.bf16.msra.mxu0 %v3881_v21  ;;  %v3640_v26 = vld [vmem:[%s6590_s2 + $0x20] sm:$0xf]  ;;  %v3886_v28 = vld [vmem:[%s6590_s2 + $0x24] sm:$0xf]  ;;  %v3642_v31 = vld [vmem:[%s6590_s2 + $0x30] sm:$0xf0] }
  0x49   : > { %v3641_v30 = vor.u32 %v3888_v27, %v3640_v26  ;;  %v3648_v32 = vld [vmem:[%s6590_s2 + $0x28] sm:$0xf]  ;;  %v3889_v33 = vld [vmem:[%s6590_s2 + $0x34] sm:$0xf0]  ;;  %v3645_v35 = vor.u32 %v3886_v28, %v3642_v31  ;;  %v3887_v37 = vld [vmem:[%s6590_s2 + $0x2c] sm:$0xf] }
  0x4a   : > { %v3649_v36 = vor.u32 %v3889_v33, %v3648_v32  ;;  %v3650_v38 = vld [vmem:[%s6590_s2 + $0x38] sm:$0xf0]  ;;  %v3624_v39 = vld [vmem:[%s6590_s2] sm:$0xf]  ;;  %v3884_v41 = vld [vmem:[%s6590_s2 + $0xc] sm:$0xf0] }
  0x4b   : > { %1344 = vmatpush.bf16.msra.mxu1 %v3641_v30  ;;  %v3653_v40 = vor.u32 %v3887_v37, %v3650_v38  ;;  %v3882_v42 = vld [vmem:[%s6590_s2 + $0x4] sm:$0xf]  ;;  %v3626_v43 = vld [vmem:[%s6590_s2 + $0x10] sm:$0xf0]  ;;  %1358 = vmatpush.bf16.msra.mxu2 %v3645_v35  ;;  %v3625_v46 = vor.u32 %v3884_v41, %v3624_v39  ;;  %v3632_v48 = vld [vmem:[%s6590_s2 + $0x8] sm:$0xf] }
  0x4c   : > { %565 = vmatpush.bf16.msra.mxu0 %v3880_v24  ;;  %1372 = vmatpush.bf16.msra.mxu3 %v3649_v36  ;;  %v3629_v47 = vor.u32 %v3882_v42, %v3626_v43  ;;  %v3885_v49 = vld [vmem:[%s6590_s2 + $0x14] sm:$0xf0]  ;;  %v3883_v52 = vld [vmem:[%s6590_s2 + $0xc] sm:$0xf]  ;;  %v3634_v53 = vld [vmem:[%s6590_s2 + $0x18] sm:$0xf0] }
  0x4d   : > { %v4067_v5 = vpop.eup %4066  ;;  %v3633_v51 = vor.u32 %v3885_v49, %v3632_v48  ;;  %v3637_v54 = vor.u32 %v3883_v52, %v3634_v53  ;;  %v4037_v61 = vld [vmem:[%s6596_s8] ss:$0 sm:$0xff]  ;;  %v638_v26 = vld [vmem:[#allocation7 + $0xd0] sm:$0xff]  ;;  %v613_v36 = vld [vmem:[#allocation7 + $0x8] sm:$0xff]  ;;  %s3931_s23 = smul.u32 48, %s4732_s16  ;;  %s3429_s14 = scalar_lea.sflag [#allocation4], %s4732_s16 }
  0x4e   : > { %v486_v6 = vmul.f32 32.0, %v4067_v5  ;;  %vm490_vm1 = vweird.f32 %v4067_v5  ;;  %v612_v4 = vld [vmem:[#allocation7] sm:$0xff]  ;;  %v642_v28 = vld [vmem:[#allocation7 + $0xf0] sm:$0xff]  ;;  %v615_v42 = vld [vmem:[#allocation7 + $0x18] sm:$0xff] }
  0x4f   : > { %1345 = vmatpush.bf16.msra.mxu1 %v3625_v46  ;;  %1359 = vmatpush.bf16.msra.mxu2 %v3629_v47  ;;  %v636_v21 = vld [vmem:[#allocation7 + $0xc0] sm:$0xff]  ;;  %v617_v43 = vld [vmem:[#allocation7 + $0x28] sm:$0xff]  ;;  %v623_v48 = vld [vmem:[#allocation7 + $0x58] sm:$0xff]  ;;  %s5630_s28 = scalar_lea.vmem [#allocation11], %s3931_s23 }
  0x50   : > { %483 = vadd.xlane.f32.xlu0 %v482_v3  ;;  %v487_v7 = vsub.f32 1.0, %v486_v6  ;;  %1386 = vmatpush.bf16.msrb.mxu0 %v3653_v40  ;;  %v640_v27 = vld [vmem:[#allocation7 + $0xe0] sm:$0xff]  ;;  %v621_v47 = vld [vmem:[#allocation7 + $0x48] sm:$0xff] }
  0x51   : > { %1373 = vmatpush.bf16.msra.mxu3 %v3633_v51 }
  0x52   : > { %v488_v8 = vmul.f32 %v4067_v5, %v487_v7  ;;  %v616_v7 = vld [vmem:[#allocation7 + $0x20] sm:$0xff] }
  0x54   : > { %v489_v9 = vadd.f32 %v4067_v5, %v488_v8  ;;  %1387 = vmatpush.bf16.msrb.mxu0 %v3637_v54  ;;  %v618_v8 = vld [vmem:[#allocation7 + $0x30] sm:$0xff]  ;;  %v625_v54 = vld [vmem:[#allocation7 + $0x68] sm:$0xff] }
  0x56   : > { %v4754_v10 = vsel %vm490_vm1, %v4067_v5, %v489_v9  ;;  %v614_v5 = vld [vmem:[#allocation7 + $0x10] sm:$0xff]  ;;  %v620_v9 = vld [vmem:[#allocation7 + $0x40] sm:$0xff] }
  0x57   : > { %6640 = vst [vmem:[#allocation19_spill] sm:$0xff] %v4754_v10 }
  0xbb   : > { %v481_v11 = vpop.xlane.xlu0 %480 }
  0xbc   : > { %v492_v12 = vmul.f32 %v4754_v10, %v481_v11 }
  0xbe   : > { %v4757_v13 = vsub.f32 %v474_v0, %v492_v12  ;;  %v4038_v0 = vld [vmem:[%s6596_s8 + $0x2] ss:$0 sm:$0xff]  ;;  %v622_v12 = vld [vmem:[#allocation7 + $0x50] sm:$0xff] }
  0xc0   : > { %v496_v14 = vmul.f32 %v4757_v13, %v4757_v13 }
  0xc2   : > { %v498_v15 = vsel %vm6606_vm0, %v496_v14, 0.0  ;;  %v624_v14 = vld [vmem:[#allocation7 + $0x60] sm:$0xff] }
  0xc3   : > { %499 = vadd.xlane.f32.xlu1 %v498_v15  ;;  %v484_v16 = vpop.xlane.xlu0 %483  ;;  %v626_v15 = vld [vmem:[#allocation7 + $0x70] sm:$0xff] }
  0xc4   : > { %v493_v17 = vmul.f32 %v4754_v10, %v484_v16 }
  0xc6   : > { %v4763_v18 = vsub.f32 %v475_v1, %v493_v17  ;;  %v628_v17 = vld [vmem:[#allocation7 + $0x80] sm:$0xff] }
  0xc8   : > { %v497_v19 = vmul.f32 %v4763_v18, %v4763_v18 }
  0xca   : > { %v501_v20 = vsel %vm6606_vm0, %v497_v19, 0.0  ;;  %v630_v19 = vld [vmem:[#allocation7 + $0x90] sm:$0xff] }
  0xcb   : > { %502 = vadd.xlane.f32.xlu1 %v501_v20  ;;  %v632_v20 = vld [vmem:[#allocation7 + $0xa0] sm:$0xff] }
 0x136   : > { %v500_v22 = vpop.xlane.xlu1 %499 }
 0x137   : > { %v504_v23 = vmul.f32 %v500_v22, %v4754_v10 }
 0x139   : > { %v506_v25 = vadd.f32 1e-05, %v504_v23 }
 0x13b   : > { %4068 = vrsqrt.f32 %v506_v25  ;;  %vm514_vm3 = vweird.f32 %v506_v25 }
 0x13e   : > { %v503_v29 = vpop.xlane.xlu1 %502 }
 0x13f   : > { %v505_v34 = vmul.f32 %v503_v29, %v4754_v10 }
 0x141   : > { %v4069_v44 = vpop.eup %4068  ;;  %v507_v45 = vadd.f32 1e-05, %v505_v34 }
 0x142   : > { %v509_v50 = vmul.f32 %v4069_v44, %v506_v25  ;;  %vm515_vm2 = vweird.f32 %v4069_v44 }
 0x143   : > { %4070 = vrsqrt.f32 %v507_v45  ;;  %vm516_vm4 = vmor %vm514_vm3, %vm515_vm2  ;;  %vm524_vm6 = vweird.f32 %v507_v45 }
 0x144   : > { %v510_v55 = vmul.f32 %v4069_v44, %v509_v50 }
 0x146   : > { %v511_v56 = vmul.f32 0.5, %v510_v55  ;;  %v627_v55 = vld [vmem:[#allocation7 + $0x78] sm:$0xff] }
 0x148   : > { %v512_v57 = vsub.f32 1.5, %v511_v56  ;;  %v629_v56 = vld [vmem:[#allocation7 + $0x88] sm:$0xff] }
 0x149   : > { %v4071_v58 = vpop.eup %4070 }
 0x14a   : > { %v513_v59 = vmul.f32 %v4069_v44, %v512_v57  ;;  %v519_v60 = vmul.f32 %v4071_v58, %v507_v45  ;;  %vm525_vm5 = vweird.f32 %v4071_v58 }
 0x14b   : > { %vm526_vm7 = vmor %vm524_vm6, %vm525_vm5 }
 0x14c   : > { %v517_v62 = vsel %vm516_vm4, %v4069_v44, %v513_v59  ;;  %v520_v63 = vmul.f32 %v4071_v58, %v519_v60  ;;  %v631_v60 = vld [vmem:[#allocation7 + $0x98] sm:$0xff] }
 0x14d   : > { %v528_v1 = vmul.f32 %v517_v62, %v4757_v13  ;;  %v634_v13 = vld [vmem:[#allocation7 + $0xb0] sm:$0xff] }
 0x14e   : > { %v521_v2 = vmul.f32 0.5, %v520_v63 }
 0x14f   : > { %v531_v3 = vmul.f32 %v4037_v61, %v528_v1 }
 0x150   : > { %v522_v6 = vsub.f32 1.5, %v521_v2 }
 0x151   : > { %v4825_v11 = vadd.f32 %v4038_v0, %v531_v3  ;;  %v635_v3 = vld [vmem:[#allocation7 + $0xb8] sm:$0xff] }
 0x152   : > { %v523_v16 = vmul.f32 %v4071_v58, %v522_v6 }
 0x153   : > { %v644_v22 = vmul.f32 %v612_v4, %v4825_v11  ;;  %v646_v23 = vmul.f32 %v614_v5, %v4825_v11  ;;  %v648_v24 = vmul.f32 %v616_v7, %v4825_v11  ;;  %v650_v29 = vmul.f32 %v618_v8, %v4825_v11  ;;  %v637_v4 = vld [vmem:[#allocation7 + $0xc8] sm:$0xff]  ;;  %v639_v5 = vld [vmem:[#allocation7 + $0xd8] sm:$0xff] }
 0x154   : > { %v527_v25 = vsel %vm526_vm7, %v4071_v58, %v523_v16  ;;  %v652_v30 = vmul.f32 %v620_v9, %v4825_v11  ;;  %v654_v31 = vmul.f32 %v622_v12, %v4825_v11  ;;  %v656_v33 = vmul.f32 %v624_v14, %v4825_v11  ;;  %v641_v9 = vld [vmem:[#allocation7 + $0xe8] sm:$0xff] }
 0x155   : > { %v529_v32 = vmul.f32 %v527_v25, %v4763_v18  ;;  %v658_v34 = vmul.f32 %v626_v15, %v4825_v11  ;;  %v660_v35 = vmul.f32 %v628_v17, %v4825_v11  ;;  %v662_v37 = vmul.f32 %v630_v19, %v4825_v11  ;;  %v619_v18 = vld [vmem:[#allocation7 + $0x38] sm:$0xff] }
 0x156   : > { %v664_v38 = vmul.f32 %v632_v20, %v4825_v11  ;;  %v666_v39 = vmul.f32 %v634_v13, %v4825_v11  ;;  %v4841_v40 = vmul.f32 %v636_v21, %v4825_v11  ;;  %v4844_v44 = vmul.f32 %v638_v26, %v4825_v11 }
 0x157   : > { %v532_v41 = vmul.f32 %v4037_v61, %v529_v32  ;;  %v4847_v45 = vmul.f32 %v640_v27, %v4825_v11  ;;  %v4850_v46 = vmul.f32 %v642_v28, %v4825_v11  ;;  %v676_v49 = vsel %vm6606_vm0, %v644_v22, 0.0  ;;  %v633_v61 = vld [vmem:[#allocation7 + $0xa8] sm:$0xff] }
 0x158   : > { %v685_v50 = vsel %vm6606_vm0, %v646_v23, 0.0  ;;  %v694_v51 = vsel %vm6606_vm0, %v648_v24, 0.0  ;;  %v703_v52 = vsel %vm6606_vm0, %v650_v29, 0.0  ;;  %v712_v57 = vsel %vm6606_vm0, %v652_v30, 0.0 }
 0x159   : > { %v4856_v53 = vadd.f32 %v4038_v0, %v532_v41  ;;  %v721_v58 = vsel %vm6606_vm0, %v654_v31, 0.0  ;;  %v730_v59 = vsel %vm6606_vm0, %v656_v33, 0.0  ;;  %v739_v62 = vsel %vm6606_vm0, %v658_v34, 0.0 }
 0x15a   : > { %v4863_v63 = vsel %vm6606_vm0, %v660_v35, 0.0  ;;  %v4866_v1 = vsel %vm6606_vm0, %v662_v37, 0.0  ;;  %v4869_v0 = vsel %vm6606_vm0, %v664_v38, 0.0  ;;  %v4880_v16 = vsel %vm6606_vm0, %v666_v39, 0.0 }
 0x15b   : > { %v536_v2 = vpack.c.bf16 %v4856_v53, %v4825_v11  ;;  %v645_v6 = vmul.f32 %v613_v36, %v4856_v53  ;;  %v647_v7 = vmul.f32 %v615_v42, %v4856_v53  ;;  %v649_v8 = vmul.f32 %v617_v43, %v4856_v53 }
 0x15c   : > { %v651_v12 = vmul.f32 %v619_v18, %v4856_v53  ;;  %v653_v14 = vmul.f32 %v621_v47, %v4856_v53  ;;  %v655_v15 = vmul.f32 %v623_v48, %v4856_v53  ;;  %v657_v17 = vmul.f32 %v625_v54, %v4856_v53 }
 0x15d   : > { %3602 = vmatmul.msk.bf16.vlgmr.msra.gmra.mxu0 %vm6606_vm0, %v536_v2  ;;  %v659_v19 = vmul.f32 %v627_v55, %v4856_v53  ;;  %v4886_v20 = vmul.f32 %v629_v56, %v4856_v53  ;;  %v4889_v13 = vmul.f32 %v631_v60, %v4856_v53  ;;  %v4892_v21 = vmul.f32 %v633_v61, %v4856_v53 }
 0x15e   : > { %v4895_v22 = vmul.f32 %v635_v3, %v4856_v53  ;;  %v4898_v23 = vmul.f32 %v637_v4, %v4856_v53  ;;  %v4901_v24 = vmul.f32 %v639_v5, %v4856_v53  ;;  %v4904_v25 = vmul.f32 %v641_v9, %v4856_v53  ;;  %v643_v9 = vld [vmem:[#allocation7 + $0xf8] sm:$0xff] }
 0x15f   : > { %v677_v26 = vsel %vm6606_vm0, %v645_v6, 0.0  ;;  %v686_v27 = vsel %vm6606_vm0, %v647_v7, 0.0  ;;  %v695_v28 = vsel %vm6606_vm0, %v649_v8, 0.0  ;;  %v704_v32 = vsel %vm6606_vm0, %v651_v12, 0.0 }
 0x160   : > { %v678_v29 = vadd.f32 %v677_v26, %v676_v49  ;;  %v687_v30 = vadd.f32 %v686_v27, %v685_v50  ;;  %v696_v31 = vadd.f32 %v695_v28, %v694_v51  ;;  %v705_v33 = vadd.f32 %v704_v32, %v703_v52 }
 0x161   : > { %v713_v34 = vsel %vm6606_vm0, %v653_v14, 0.0  ;;  %v722_v35 = vsel %vm6606_vm0, %v655_v15, 0.0  ;;  %v731_v36 = vsel %vm6606_vm0, %v657_v17, 0.0  ;;  %v740_v47 = vsel %vm6606_vm0, %v659_v19, 0.0 }
 0x162   : > { %v679_v37 = vrot.slane %v678_v29, 4  ;;  %v688_v38 = vrot.slane %v687_v30, 4  ;;  %v697_v39 = vrot.slane %v696_v31, 4  ;;  %v714_v41 = vadd.f32 %v713_v34, %v712_v57 }
 0x163   : > { %v706_v42 = vrot.slane %v705_v33, 4  ;;  %v723_v43 = vadd.f32 %v722_v35, %v721_v58  ;;  %v732_v18 = vadd.f32 %v731_v36, %v730_v59  ;;  %v741_v56 = vadd.f32 %v740_v47, %v739_v62 }
 0x164   : > { %v680_v48 = vadd.f32 %v679_v37, %v678_v29  ;;  %v689_v49 = vadd.f32 %v688_v38, %v687_v30  ;;  %v698_v50 = vadd.f32 %v697_v39, %v696_v31  ;;  %v715_v51 = vrot.slane %v714_v41, 4 }
 0x165   : > { %v707_v52 = vadd.f32 %v706_v42, %v705_v33  ;;  %v724_v54 = vrot.slane %v723_v43, 4  ;;  %v733_v55 = vrot.slane %v732_v18, 4  ;;  %v742_v6 = vrot.slane %v741_v56, 4 }
 0x166   : > { %v681_v60 = vrot.slane %v680_v48, 2  ;;  %v690_v61 = vrot.slane %v689_v49, 2  ;;  %v699_v2 = vrot.slane %v698_v50, 2  ;;  %v716_v3 = vadd.f32 %v715_v51, %v714_v41 }
 0x167   : > { %v708_v4 = vrot.slane %v707_v52, 2  ;;  %v725_v5 = vadd.f32 %v724_v54, %v723_v43  ;;  %v734_v57 = vadd.f32 %v733_v55, %v732_v18  ;;  %v743_v17 = vadd.f32 %v742_v6, %v741_v56 }
 0x168   : > { %v682_v58 = vadd.f32 %v681_v60, %v680_v48  ;;  %v691_v59 = vadd.f32 %v690_v61, %v689_v49  ;;  %v700_v7 = vadd.f32 %v699_v2, %v698_v50  ;;  %v717_v8 = vrot.slane %v716_v3, 2 }
 0x169   : > { %v709_v12 = vadd.f32 %v708_v4, %v707_v52  ;;  %v726_v14 = vrot.slane %v725_v5, 2  ;;  %v735_v15 = vrot.slane %v734_v57, 2  ;;  %v744_v31 = vrot.slane %v743_v17, 2 }
 0x16a   : > { %v683_v19 = vrot.slane %v682_v58, 1  ;;  %v692_v26 = vrot.slane %v691_v59, 1  ;;  %v701_v62 = vrot.slane %v700_v7, 1  ;;  %v718_v27 = vadd.f32 %v717_v8, %v716_v3 }
 0x16b   : > { %v710_v28 = vrot.slane %v709_v12, 1  ;;  %v727_v29 = vadd.f32 %v726_v14, %v725_v5  ;;  %v736_v30 = vadd.f32 %v735_v15, %v734_v57  ;;  %v675_v32 = vmul.f32 %v643_v9, %v4856_v53 }
 0x16c   : > { %v4915_v33 = vadd.f32 %v683_v19, %v682_v58  ;;  %v4917_v34 = vadd.f32 %v692_v26, %v691_v59  ;;  %v719_v35 = vrot.slane %v718_v27, 1  ;;  %v4919_v36 = vadd.f32 %v701_v62, %v700_v7 }
 0x16d   : > { %v728_v37 = vrot.slane %v727_v29, 1  ;;  %v737_v38 = vrot.slane %v736_v30, 1  ;;  %v745_v39 = vadd.f32 %v744_v31, %v743_v17  ;;  %v4921_v41 = vadd.f32 %v710_v28, %v709_v12 }
 0x16e   : > { %v749_v42 = vsel %vm6606_vm0, %v4886_v20, 0.0  ;;  %v758_v43 = vsel %vm6606_vm0, %v4889_v13, 0.0  ;;  %v767_v18 = vsel %vm6606_vm0, %v4892_v21, 0.0  ;;  %v4929_v47 = vadd.f32 %v719_v35, %v718_v27 }
 0x16f   : > { %v4931_v48 = vadd.f32 %v728_v37, %v727_v29  ;;  %v4933_v49 = vadd.f32 %v737_v38, %v736_v30  ;;  %v750_v50 = vadd.f32 %v749_v42, %v4863_v63  ;;  %v746_v51 = vrot.slane %v745_v39, 1 }
 0x170   : > { %v759_v52 = vadd.f32 %v758_v43, %v4866_v1  ;;  %v768_v54 = vadd.f32 %v767_v18, %v4869_v0  ;;  %v776_v20 = vsel %vm6606_vm0, %v4895_v22, 0.0  ;;  %v784_v21 = vsel %vm6606_vm0, %v4841_v40, 0.0 }
 0x171   : > { %v751_v13 = vrot.slane %v750_v50, 4  ;;  %v777_v55 = vadd.f32 %v776_v20, %v4880_v16  ;;  %v785_v56 = vsel %vm6606_vm0, %v4898_v23, 0.0  ;;  %v793_v1 = vsel %vm6606_vm0, %v4844_v44, 0.0 }
 0x172   : > { %v760_v60 = vrot.slane %v759_v52, 4  ;;  %v769_v61 = vrot.slane %v768_v54, 4  ;;  %v786_v63 = vadd.f32 %v785_v56, %v784_v21  ;;  %v794_v22 = vsel %vm6606_vm0, %v4901_v24, 0.0 }
 0x173   : > { %v752_v2 = vadd.f32 %v751_v13, %v750_v50  ;;  %v778_v0 = vrot.slane %v777_v55, 4  ;;  %v802_v16 = vsel %vm6606_vm0, %v4847_v45, 0.0  ;;  %v795_v5 = vadd.f32 %v794_v22, %v793_v1 }
 0x174   : > { %v761_v3 = vadd.f32 %v760_v60, %v759_v52  ;;  %v770_v4 = vadd.f32 %v769_v61, %v768_v54  ;;  %v787_v40 = vrot.slane %v786_v63, 4  ;;  %v803_v6 = vsel %vm6606_vm0, %v4904_v25, 0.0 }
 0x175   : > { %v753_v57 = vrot.slane %v752_v2, 2  ;;  %v779_v23 = vadd.f32 %v778_v0, %v777_v55  ;;  %v811_v44 = vsel %vm6606_vm0, %v4850_v46, 0.0  ;;  %v796_v8 = vrot.slane %v795_v5, 4  ;;  %v4039_v46 = vld [vmem:[%s6596_s8 + $0x6] ss:$0 sm:$0xff] }
 0x176   : > { %v762_v58 = vrot.slane %v761_v3, 2  ;;  %v771_v59 = vrot.slane %v770_v4, 2  ;;  %v788_v7 = vadd.f32 %v787_v40, %v786_v63  ;;  %v804_v12 = vadd.f32 %v803_v6, %v802_v16 }
 0x177   : > { %v754_v24 = vadd.f32 %v753_v57, %v752_v2  ;;  %v780_v9 = vrot.slane %v779_v23, 2  ;;  %v812_v45 = vsel %vm6606_vm0, %v675_v32, 0.0  ;;  %v797_v19 = vadd.f32 %v796_v8, %v795_v5 }
 0x178   : > { %v763_v14 = vadd.f32 %v762_v58, %v761_v3  ;;  %v772_v15 = vadd.f32 %v771_v59, %v770_v4  ;;  %v789_v17 = vrot.slane %v788_v7, 2  ;;  %v805_v27 = vrot.slane %v804_v12, 4 }
 0x179   : > { %v755_v26 = vrot.slane %v754_v24, 1  ;;  %v781_v62 = vadd.f32 %v780_v9, %v779_v23  ;;  %v813_v25 = vadd.f32 %v812_v45, %v811_v44  ;;  %v798_v31 = vrot.slane %v797_v19, 2 }
 0x17a   : > { %v764_v28 = vrot.slane %v763_v14, 1  ;;  %v773_v29 = vrot.slane %v772_v15, 1  ;;  %v790_v30 = vadd.f32 %v789_v17, %v788_v7  ;;  %v747_v35 = vadd.f32 %v746_v51, %v745_v39 }
 0x17b   : > { %v782_v37 = vrot.slane %v781_v62, 1  ;;  %v806_v38 = vadd.f32 %v805_v27, %v804_v12  ;;  %v814_v32 = vrot.slane %v813_v25, 4  ;;  %v756_v42 = vadd.f32 %v755_v26, %v754_v24 }
 0x17c   : > { %v765_v43 = vadd.f32 %v764_v28, %v763_v14  ;;  %v791_v18 = vrot.slane %v790_v30, 1  ;;  %v799_v50 = vadd.f32 %v798_v31, %v797_v19  ;;  %v774_v52 = vadd.f32 %v773_v29, %v772_v15 }
 0x17d   : > { %v807_v54 = vrot.slane %v806_v38, 2  ;;  %v815_v20 = vadd.f32 %v814_v32, %v813_v25  ;;  %v822_v13 = vmul.f32 %v4039_v46, %v4825_v11  ;;  %v783_v55 = vadd.f32 %v782_v37, %v781_v62 }
 0x17e   : > { %v792_v21 = vadd.f32 %v791_v18, %v790_v30  ;;  %v800_v56 = vrot.slane %v799_v50, 1  ;;  %v823_v60 = vmul.f32 %v4039_v46, %v4856_v53 }
 0x17f   : > { %v808_v61 = vadd.f32 %v807_v54, %v806_v38  ;;  %v816_v63 = vrot.slane %v815_v20, 2  ;;  %v826_v39 = vrot.slane %v822_v13, 1  ;;  %v827_v51 = vrot.slane %v822_v13, 2 }
 0x180   : > { %v801_v1 = vadd.f32 %v800_v56, %v799_v50  ;;  %v828_v2 = vrot.slane %v822_v13, 3  ;;  %v829_v0 = vrot.slane %v822_v13, 4  ;;  %v830_v22 = vrot.slane %v822_v13, 5 }
 0x181   : > { %v809_v16 = vrot.slane %v808_v61, 1  ;;  %v817_v3 = vadd.f32 %v816_v63, %v815_v20  ;;  %v831_v4 = vrot.slane %v822_v13, 6  ;;  %v832_v40 = vrot.slane %v822_v13, 7 }
 0x182   : > { %v833_v5 = vrot.slane %v823_v60, 1  ;;  %v834_v57 = vrot.slane %v823_v60, 2  ;;  %v835_v11 = vrot.slane %v823_v60, 3  ;;  %v836_v23 = vrot.slane %v823_v60, 4 }
 0x183   : > { %v810_v6 = vadd.f32 %v809_v16, %v808_v61  ;;  %v818_v44 = vrot.slane %v817_v3, 1  ;;  %v837_v58 = vrot.slane %v823_v60, 5  ;;  %v838_v53 = vrot.slane %v823_v60, 6 }
 0x184   : > { %v839_v59 = vrot.slane %v823_v60, 7  ;;  %v4962_v7 = vadd.f32 %v822_v13, %v4915_v33  ;;  %v4965_v8 = vadd.f32 %v826_v39, %v4917_v34  ;;  %v4968_v24 = vadd.f32 %v827_v51, %v4919_v36 }
 0x185   : > { %v819_v9 = vadd.f32 %v818_v44, %v817_v3  ;;  %v4971_v12 = vadd.f32 %v828_v2, %v4921_v41  ;;  %v4974_v45 = vadd.f32 %v829_v0, %v4929_v47  ;;  %v4977_v14 = vadd.f32 %v830_v22, %v4931_v48 }
 0x186   : > { %v4980_v15 = vadd.f32 %v831_v4, %v4933_v49  ;;  %v4982_v33 = vadd.f32 %v832_v40, %v747_v35  ;;  %v4984_v34 = vadd.f32 %v823_v60, %v756_v42  ;;  %v4986_v17 = vadd.f32 %v833_v5, %v765_v43 }
 0x187   : > { %v4988_v36 = vadd.f32 %v834_v57, %v774_v52  ;;  %v4990_v19 = vadd.f32 %v835_v11, %v783_v55  ;;  %v4992_v41 = vadd.f32 %v836_v23, %v792_v21  ;;  %v4994_v47 = vadd.f32 %v837_v58, %v801_v1 }
 0x188   : > { %v4996_v26 = vadd.f32 %v838_v53, %v810_v6  ;;  %v4998_v48 = vadd.f32 %v839_v59, %v819_v9  ;;  %v3605_v49 = vmul.f32 -1.442695, %v4962_v7  ;;  %v3606_v62 = vmul.f32 -1.442695, %v4965_v8 }
 0x189   : > { %v3607_v27 = vmul.f32 -1.442695, %v4968_v24  ;;  %v3608_v25 = vmul.f32 -1.442695, %v4971_v12  ;;  %v3609_v46 = vmul.f32 -1.442695, %v4974_v45 }
 0x18a   : > { %6641 = vst [vmem:[#allocation20_spill] sm:$0xff] %v4998_v48  ;;  %4072 = vpow2.f32 %v3605_v49  ;;  %v3610_v28 = vmul.f32 -1.442695, %v4977_v14  ;;  %v3611_v29 = vmul.f32 -1.442695, %v4980_v15 }
 0x18b   : > { %4074 = vpow2.f32 %v3606_v62  ;;  %v3612_v30 = vmul.f32 -1.442695, %v4982_v33  ;;  %v3613_v31 = vmul.f32 -1.442695, %v4984_v34  ;;  %v3614_v35 = vmul.f32 -1.442695, %v4986_v17 }
 0x18c   : > { %4076 = vpow2.f32 %v3607_v27  ;;  %v3615_v38 = vmul.f32 -1.442695, %v4988_v36  ;;  %v3616_v42 = vmul.f32 -1.442695, %v4990_v19  ;;  %v3617_v18 = vmul.f32 -1.442695, %v4992_v41 }
 0x18d   : > { %4078 = vpow2.f32 %v3608_v25  ;;  %v3618_v52 = vmul.f32 -1.442695, %v4994_v47  ;;  %v3619_v20 = vmul.f32 -1.442695, %v4996_v26  ;;  %v3620_v55 = vmul.f32 -1.442695, %v4998_v48 }
 0x18e   : > { %4080 = vpow2.f32 %v3609_v46 }
 0x18f   : > { %4082 = vpow2.f32 %v3610_v28 }
 0x190   : > { %v4073_v37 = vpop.eup %4072  ;;  %4084 = vpow2.f32 %v3611_v29 }
 0x191   : > { %v4075_v32 = vpop.eup %4074  ;;  %4086 = vpow2.f32 %v3612_v30  ;;  %v5016_v56 = vadd.f32 1.0, %v4073_v37 }
 0x192   : > { %v4077_v43 = vpop.eup %4076  ;;  %4088 = vpow2.f32 %v3613_v31  ;;  %v5018_v61 = vadd.f32 1.0, %v4075_v32 }
 0x193   : > { %v4079_v50 = vpop.eup %4078  ;;  %4090 = vpow2.f32 %v3614_v35  ;;  %v5020_v39 = vadd.f32 1.0, %v4077_v43  ;;  %v947_v3 = vand.u32 2147483648, %v5016_v56  ;;  %v945_v44 = vand.u32 2147483647, %v5016_v56 }
 0x194   : > { %v4081_v54 = vpop.eup %4080  ;;  %4092 = vpow2.f32 %v3615_v38  ;;  %v5022_v1 = vadd.f32 1.0, %v4079_v50  ;;  %v962_v5 = vand.u32 2147483648, %v5018_v61  ;;  %v960_v53 = vand.u32 2147483647, %v5018_v61 }
 0x195   : > { %v4083_v13 = vpop.eup %4082  ;;  %4094 = vpow2.f32 %v3616_v42  ;;  %v5024_v0 = vadd.f32 1.0, %v4081_v54  ;;  %v977_v23 = vand.u32 2147483648, %v5020_v39  ;;  %v5039_v58 = vor.u32 1.1754944e-38, %v947_v3 }
 0x196   : > { %v4085_v21 = vpop.eup %4084  ;;  %4096 = vpow2.f32 %v3617_v18  ;;  %v5027_v16 = vadd.f32 1.0, %v4083_v13  ;;  %v5047_v49 = vor.u32 1.1754944e-38, %v962_v5  ;;  %v992_v62 = vand.u32 2147483648, %v5022_v1 }
 0x197   : > { %v4087_v60 = vpop.eup %4086  ;;  %4098 = vpow2.f32 %v3618_v52  ;;  %v5031_v40 = vadd.f32 1.0, %v4085_v21  ;;  %v975_v29 = vand.u32 2147483647, %v5020_v39  ;;  %vm941_vm8 = vweird.f32 %v5016_v56 }
 0x198   : > { %v4089_v63 = vpop.eup %4088  ;;  %4100 = vpow2.f32 %v3619_v20  ;;  %v5045_v9 = vadd.f32 1.0, %v4087_v60  ;;  %v5067_v37 = vor.u32 1.1754944e-38, %v977_v23  ;;  %v990_v38 = vand.u32 2147483647, %v5022_v1 }
 0x199   : > { %v4091_v51 = vpop.eup %4090  ;;  %4102 = vpow2.f32 %v3620_v55  ;;  %v5053_v25 = vadd.f32 1.0, %v4089_v63  ;;  %vm956_vm9 = vweird.f32 %v5018_v61  ;;  %vm971_vm10 = vweird.f32 %v5020_v39 }
 0x19a   : > { %v4093_v2 = vpop.eup %4092  ;;  %4104 = vrcp.f32 %v5016_v56  ;;  %v5055_v46 = vadd.f32 1.0, %v4091_v51  ;;  %v5084_v13 = vor.u32 1.1754944e-38, %v992_v62  ;;  %v1005_v55 = vand.u32 2147483647, %v5024_v0 }
 0x19b   : > { %v4095_v22 = vpop.eup %4094  ;;  %4106 = vrcp.f32 %v5018_v61  ;;  %v5062_v31 = vadd.f32 1.0, %v4093_v2  ;;  %vm986_vm11 = vweird.f32 %v5022_v1  ;;  %v1007_v2 = vand.u32 2147483648, %v5024_v0 }
 0x19c   : > { %v4097_v4 = vpop.eup %4096  ;;  %4108 = vrcp.f32 %v5020_v39  ;;  %v5072_v42 = vadd.f32 1.0, %v4095_v22  ;;  %vm1001_vm12 = vweird.f32 %v5024_v0  ;;  %vm5109_vm15 = vcmp.eq.f32.partialorder %v945_v44, 8.507059e+37 }
 0x19d   : > { %v4099_v57 = vpop.eup %4098  ;;  %4110 = vrcp.f32 %v5022_v1  ;;  %v5074_v43 = vadd.f32 1.0, %v4097_v4  ;;  %vm5118_vm2 = vcmp.eq.f32.partialorder %v960_v53, 8.507059e+37  ;;  %vm5125_vm4 = vcmp.eq.f32.partialorder %v975_v29, 8.507059e+37 }
 0x19e   : > { %v4101_v11 = vpop.eup %4100  ;;  %4112 = vrcp.f32 %v5024_v0  ;;  %v5089_v60 = vadd.f32 1.0, %v4099_v57  ;;  %vm5129_vm5 = vcmp.eq.f32.partialorder %v990_v38, 8.507059e+37  ;;  %vm5144_vm0 = vcmp.eq.f32.partialorder %v1005_v55, 8.507059e+37 }
 0x19f   : > { %v4103_v6 = vpop.eup %4102  ;;  %4114 = vrcp.f32 %v5027_v16  ;;  %v5097_v3 = vadd.f32 1.0, %v4101_v11  ;;  %v1035_v55 = vand.u32 2147483647, %v5031_v40 }
 0x1a0   : > { %v5043_v59 = vpop.eup %4104  ;;  %4116 = vrcp.f32 %v5031_v40 }
 0x1a1   : > { %v5051_v27 = vpop.eup %4106  ;;  %v937_v28 = vmul.f32 %v5043_v59, %v5016_v56  ;;  %vm942_vm14 = vweird.f32 %v5043_v59  ;;  %4118 = vrcp.f32 %v5045_v9 }
 0x1a2   : > { %v5060_v30 = vpop.eup %4108  ;;  %v952_v35 = vmul.f32 %v5051_v27, %v5018_v61  ;;  %vm957_vm1 = vweird.f32 %v5051_v27  ;;  %vm5138_vm6 = vmor %vm941_vm8, %vm942_vm14  ;;  %4120 = vrcp.f32 %v5053_v25 }
 0x1a3   : > { %v5070_v32 = vpop.eup %4110  ;;  %v938_v18 = vsub.f32 1.0, %v937_v28  ;;  %v967_v50 = vmul.f32 %v5060_v30, %v5020_v39  ;;  %v1020_v28 = vand.u32 2147483647, %v5027_v16  ;;  %vm972_vm3 = vweird.f32 %v5060_v30  ;;  %vm5154_vm8 = vmor %vm956_vm9, %vm957_vm1 }
 0x1a4   : > { %v5079_v52 = vpop.eup %4112  ;;  %v953_v54 = vsub.f32 1.0, %v952_v35  ;;  %v982_v20 = vmul.f32 %v5070_v32, %v5022_v1  ;;  %vm987_vm7 = vweird.f32 %v5070_v32  ;;  %vm5166_vm13 = vmor %vm971_vm10, %vm972_vm3  ;;  %4122 = vrcp.f32 %v5055_v46 }
 0x1a5   : > { %v5087_v21 = vpop.eup %4114  ;;  %v968_v63 = vsub.f32 1.0, %v967_v50  ;;  %v997_v51 = vmul.f32 %v5079_v52, %v5024_v0  ;;  %v939_v4 = vmul.f32 %v5043_v59, %v938_v18  ;;  %vm1002_vm14 = vweird.f32 %v5079_v52  ;;  %vm5181_vm10 = vmor %vm986_vm11, %vm987_vm7 }
 0x1a6   : > { %v5095_v22 = vpop.eup %4116  ;;  %v983_v5 = vsub.f32 1.0, %v982_v20  ;;  %v1012_v57 = vmul.f32 %v5087_v21, %v5027_v16  ;;  %v954_v23 = vmul.f32 %v5051_v27, %v953_v54  ;;  %v5115_v54 = vadd.f32 1.0, %v4103_v6 }
 0x1a7   : > { %v998_v62 = vsub.f32 1.0, %v997_v51  ;;  %v1027_v35 = vmul.f32 %v5095_v22, %v5031_v40  ;;  %v969_v18 = vmul.f32 %v5060_v30, %v968_v63  ;;  %v940_v44 = vadd.f32 %v5043_v59, %v939_v4 }
 0x1a8   : > { %v984_v50 = vmul.f32 %v5070_v32, %v983_v5  ;;  %v1013_v20 = vsub.f32 1.0, %v1012_v57  ;;  %v1008_v5 = vor.u32 1.1754944e-38, %v1007_v2  ;;  %v955_v29 = vadd.f32 %v5051_v27, %v954_v23 }
 0x1a9   : > { %v999_v10 = vmul.f32 %v5079_v52, %v998_v62  ;;  %v1028_v48 = vsub.f32 1.0, %v1027_v35  ;;  %v1022_v2 = vand.u32 2147483648, %v5027_v16  ;;  %v970_v23 = vadd.f32 %v5060_v30, %v969_v18 }
 0x1aa   : > { %v1014_v53 = vmul.f32 %v5087_v21, %v1013_v20  ;;  %v985_v62 = vadd.f32 %v5070_v32, %v984_v50  ;;  %vm1017_vm9 = vweird.f32 %v5087_v21  ;;  %v944_v18 = vsel %vm5138_vm6, %v5043_v59, %v940_v44  ;;  %vm5196_vm6 = vmor %vm1001_vm12, %vm1002_vm14 }
 0x1ab   : > { %v1029_v4 = vmul.f32 %v5095_v22, %v1028_v48  ;;  %v1000_v61 = vadd.f32 %v5079_v52, %v999_v10  ;;  %vm5185_vm1 = vcmp.eq.f32.partialorder %v1020_v28, 8.507059e+37  ;;  %vm1032_vm3 = vweird.f32 %v5095_v22 }
 0x1ac   : > { %v1015_v35 = vadd.f32 %v5087_v21, %v1014_v53  ;;  %v959_v59 = vsel %vm5154_vm8, %v5051_v27, %v955_v29  ;;  %vm1031_vm11 = vweird.f32 %v5031_v40  ;;  %v1037_v28 = vand.u32 2147483648, %v5031_v40 }
 0x1ad   : > { %v1030_v50 = vadd.f32 %v5095_v22, %v1029_v4  ;;  %v974_v20 = vsel %vm5166_vm13, %v5060_v30, %v970_v23  ;;  %v989_v27 = vsel %vm5181_vm10, %v5070_v32, %v985_v62  ;;  %vm6664_vm7 = vweird.f32 %v5027_v16  ;;  %vm5230_vm13 = vmor %vm1031_vm11, %vm1032_vm3 }
 0x1ae   : > { %vm5211_vm12 = vmor %vm6664_vm7, %vm1017_vm9  ;;  %v1023_v44 = vor.u32 1.1754944e-38, %v1022_v2  ;;  %vm5215_vm8 = vcmp.eq.f32.partialorder %v1035_v55, 8.507059e+37  ;;  %v5222_v40 = vsel %vm5109_vm15, %v5039_v58, %v944_v18  ;;  %v1004_v30 = vsel %vm5196_vm6, %v5079_v52, %v1000_v61 }
 0x1af   : > { %v1019_v16 = vsel %vm5211_vm12, %v5087_v21, %v1015_v35  ;;  %v5238_v11 = vsel %vm5118_vm2, %v5047_v49, %v959_v59  ;;  %v1034_v58 = vsel %vm5230_vm13, %v5095_v22, %v1030_v50  ;;  %v1052_v52 = vand.u32 2147483648, %v5045_v9  ;;  %v5245_v21 = vpop.eup %4118 }
 0x1b0   : > { %4124 = vrcp.f32 %v5062_v31  ;;  %v5250_v57 = vsel %vm5125_vm4, %v5067_v37, %v974_v20  ;;  %v5255_v49 = vsel %vm5129_vm5, %v5084_v13, %v989_v27  ;;  %v1038_v51 = vor.u32 1.1754944e-38, %v1037_v28  ;;  %v5269_v4 = vpop.eup %4120 }
 0x1b1   : > { %v1067_v29 = vand.u32 2147483648, %v5053_v25  ;;  %v5260_v22 = vsel %vm5144_vm0, %v1008_v5, %v1004_v30  ;;  %v5264_v2 = vsel %vm5185_vm1, %v1023_v44, %v1019_v16  ;;  %v1042_v37 = vmul.f32 %v5245_v21, %v5045_v9  ;;  %v5285_v55 = vpop.eup %4122 }
 0x1b2   : > { %v1050_v63 = vand.u32 2147483647, %v5045_v9  ;;  %v5273_v13 = vsel %vm5215_vm8, %v1038_v51, %v1034_v58  ;;  %vm1046_vm15 = vweird.f32 %v5045_v9  ;;  %v1082_v6 = vand.u32 2147483648, %v5055_v46 }
 0x1b3   : > { %v1097_v5 = vand.u32 2147483648, %v5062_v31  ;;  %4126 = vrcp.f32 %v5072_v42  ;;  %v1043_v38 = vsub.f32 1.0, %v1042_v37  ;;  %v5279_v56 = vor.u32 1.1754944e-38, %v1052_v52 }
 0x1b4   : > { %v1057_v23 = vmul.f32 %v5269_v4, %v5053_v25  ;;  %vm1061_vm0 = vweird.f32 %v5053_v25  ;;  %v1065_v62 = vand.u32 2147483647, %v5053_v25  ;;  %v5287_v48 = vor.u32 1.1754944e-38, %v1067_v29 }
 0x1b5   : > { %vm1076_vm2 = vweird.f32 %v5055_v46  ;;  %v1080_v61 = vand.u32 2147483647, %v5055_v46  ;;  %4128 = vrcp.f32 %v5074_v43  ;;  %v1044_v18 = vmul.f32 %v5245_v21, %v1043_v38 }
 0x1b6   : > { %v5292_v35 = vpop.eup %4124  ;;  %v1058_v39 = vsub.f32 1.0, %v1057_v23  ;;  %v1072_v10 = vmul.f32 %v5285_v55, %v5055_v46  ;;  %vm1091_vm4 = vweird.f32 %v5062_v31  ;;  %v1095_v50 = vand.u32 2147483647, %v5062_v31 }
 0x1b7   : > { %vm1047_vm5 = vweird.f32 %v5245_v21  ;;  %v5300_v59 = vor.u32 1.1754944e-38, %v1082_v6  ;;  %v1087_v1 = vmul.f32 %v5292_v35, %v5062_v31  ;;  %v5304_v28 = vor.u32 1.1754944e-38, %v1097_v5 }
 0x1b8   : > { %vm5306_vm14 = vcmp.eq.f32.partialorder %v1050_v63, 8.507059e+37  ;;  %v1059_v27 = vmul.f32 %v5269_v4, %v1058_v39  ;;  %vm5311_vm9 = vcmp.eq.f32.partialorder %v1065_v62, 8.507059e+37  ;;  %v1073_v44 = vsub.f32 1.0, %v1072_v10  ;;  %vm5344_vm8 = vmor %vm1046_vm15, %vm1047_vm5 }
 0x1b9   : > { %vm1106_vm10 = vweird.f32 %v5072_v42  ;;  %v1110_v53 = vand.u32 2147483647, %v5072_v42  ;;  %v1112_v30 = vand.u32 2147483648, %v5072_v42  ;;  %v5318_v16 = vpop.eup %4126  ;;  %v1045_v32 = vadd.f32 %v5245_v21, %v1044_v18 }
 0x1ba   : > { %v1088_v58 = vsub.f32 1.0, %v1087_v1  ;;  %v1125_v52 = vand.u32 2147483647, %v5074_v43  ;;  %4130 = vrcp.f32 %v5089_v60  ;;  %v1060_v51 = vadd.f32 %v5269_v4, %v1059_v27 }
 0x1bb   : > { %vm1062_vm1 = vweird.f32 %v5269_v4  ;;  %v1074_v29 = vmul.f32 %v5285_v55, %v1073_v44  ;;  %vm5326_vm3 = vcmp.eq.f32.partialorder %v1080_v61, 8.507059e+37  ;;  %vm5330_vm6 = vcmp.eq.f32.partialorder %v1095_v50, 8.507059e+37  ;;  %v4129_v5 = vpop.eup %4128 }
 0x1bc   : > { %v1102_v6 = vmul.f32 %v5318_v16, %v5072_v42  ;;  %vm1077_vm11 = vweird.f32 %v5285_v55  ;;  %v1089_v38 = vmul.f32 %v5292_v35, %v1088_v58  ;;  %vm1092_vm7 = vweird.f32 %v5292_v35  ;;  %vm5361_vm15 = vmor %vm1061_vm0, %vm1062_vm1 }
 0x1bd   : > { %v1075_v62 = vadd.f32 %v5285_v55, %v1074_v29  ;;  %vm5349_vm13 = vcmp.eq.f32.partialorder %v1110_v53, 8.507059e+37  ;;  %v1113_v39 = vor.u32 1.1754944e-38, %v1112_v30  ;;  %v1117_v10 = vmul.f32 %v4129_v5, %v5074_v43  ;;  %vm5379_vm0 = vmor %vm1076_vm2, %vm1077_vm11 }
 0x1be   : > { %v1103_v61 = vsub.f32 1.0, %v1102_v6  ;;  %v1049_v50 = vsel %vm5344_vm8, %v5245_v21, %v1045_v32  ;;  %v1090_v1 = vadd.f32 %v5292_v35, %v1089_v38  ;;  %vm1107_vm5 = vweird.f32 %v5318_v16 }
 0x1bf   : > { %vm5367_vm12 = vcmp.eq.f32.partialorder %v1125_v52, 8.507059e+37  ;;  %v1127_v44 = vand.u32 2147483648, %v5074_v43  ;;  %v1064_v21 = vsel %vm5361_vm15, %v5269_v4, %v1060_v51  ;;  %v1118_v30 = vsub.f32 1.0, %v1117_v10  ;;  %vm5392_vm15 = vmor %vm1091_vm4, %vm1092_vm7 }
 0x1c0   : > { %v1104_v53 = vmul.f32 %v5318_v16, %v1103_v61  ;;  %vm1122_vm1 = vweird.f32 %v4129_v5  ;;  %vm1136_vm8 = vweird.f32 %v5089_v60  ;;  %v4131_v32 = vpop.eup %4130  ;;  %v1079_v58 = vsel %vm5379_vm0, %v5285_v55, %v1075_v62  ;;  %vm5414_vm2 = vmor %vm1106_vm10, %vm1107_vm5 }
 0x1c1   : > { %v1140_v4 = vand.u32 2147483647, %v5089_v60  ;;  %v1142_v52 = vand.u32 2147483648, %v5089_v60  ;;  %4132 = vrcp.f32 %v5097_v3  ;;  %v1094_v51 = vsel %vm5392_vm15, %v5292_v35, %v1090_v1 }
 0x1c2   : > { %v1105_v55 = vadd.f32 %v5318_v16, %v1104_v53  ;;  %v1119_v29 = vmul.f32 %v4129_v5, %v1118_v30  ;;  %v1132_v6 = vmul.f32 %v4131_v32, %v5089_v60  ;;  %v1054_v31 = vsel %vm5306_vm14, %v5279_v56, %v1049_v50 }
 0x1c3   : > { %v1069_v38 = vsel %vm5311_vm9, %v5287_v48, %v1064_v21  ;;  %v1128_v35 = vor.u32 1.1754944e-38, %v1127_v44  ;;  %v1155_v62 = vand.u32 2147483647, %v5097_v3  ;;  %v1157_v0 = vand.u32 2147483648, %v5097_v3 }
 0x1c4   : > { %v1109_v20 = vsel %vm5414_vm2, %v5318_v16, %v1105_v55  ;;  %v1120_v56 = vadd.f32 %v4129_v5, %v1119_v29  ;;  %v1133_v61 = vsub.f32 1.0, %v1132_v6  ;;  %v1084_v48 = vsel %vm5326_vm3, %v5300_v59, %v1079_v58 }
 0x1c5   : > { %v1099_v42 = vsel %vm5330_vm6, %v5304_v28, %v1094_v51  ;;  %vm6693_vm4 = vweird.f32 %v5074_v43  ;;  %vm5432_vm9 = vcmp.eq.f32.partialorder %v1140_v4, 8.507059e+37  ;;  %4134 = vrcp.f32 %v5115_v54 }
 0x1c6   : > { %vm1123_vm14 = vmor %vm6693_vm4, %vm1122_vm1  ;;  %v1134_v50 = vmul.f32 %v4131_v32, %v1133_v61  ;;  %vm1137_vm10 = vweird.f32 %v4131_v32  ;;  %v1143_v9 = vor.u32 1.1754944e-38, %v1142_v52  ;;  %v1114_v59 = vsel %vm5349_vm13, %v1113_v39, %v1109_v20 }
 0x1c7   : > { %v1124_v16 = vsel %vm1123_vm14, %v4129_v5, %v1120_v56  ;;  %v4133_v37 = vpop.eup %4132  ;;  %vm1151_vm3 = vweird.f32 %v5097_v3  ;;  %v1158_v28 = vor.u32 1.1754944e-38, %v1157_v0  ;;  %v1172_v43 = vand.u32 2147483648, %v5115_v54  ;;  %vm1138_vm11 = vmor %vm1136_vm8, %vm1137_vm10 }
 0x1c8   : > { %v1129_v63 = vsel %vm5367_vm12, %v1128_v35, %v1124_v16  ;;  %v1135_v1 = vadd.f32 %v4131_v32, %v1134_v50  ;;  %v1147_v44 = vmul.f32 %v4133_v37, %v5097_v3  ;;  %vm5444_vm6 = vcmp.eq.f32.partialorder %v1155_v62, 8.507059e+37  ;;  %v6700_v50 = vld [vmem:[#allocation20_spill] sm:$0xff] }
 0x1c9   : > { %v1170_v21 = vand.u32 2147483647, %v5115_v54  ;;  %vm1152_vm7 = vweird.f32 %v4133_v37  ;;  %v1173_v18 = vor.u32 1.1754944e-38, %v1172_v43  ;;  %v1176_v39 = vmul.f32 %v5222_v40, %v4962_v7 }
 0x1ca   : > { %v1177_v27 = vmul.f32 %v5238_v11, %v4965_v8  ;;  %v1139_v25 = vsel %vm1138_vm11, %v4131_v32, %v1135_v1  ;;  %v1148_v53 = vsub.f32 1.0, %v1147_v44  ;;  %vm1166_vm12 = vweird.f32 %v5115_v54  ;;  %vm1153_vm0 = vmor %vm1151_vm3, %vm1152_vm7 }
 0x1cb   : > { %v1178_v30 = vmul.f32 %v5250_v57, %v4968_v24  ;;  %v1179_v58 = vmul.f32 %v5255_v49, %v4971_v12  ;;  %v4135_v60 = vpop.eup %4134  ;;  %v1144_v46 = vsel %vm5432_vm9, %v1143_v9, %v1139_v25  ;;  %v1180_v7 = vmul.f32 %v5260_v22, %v4974_v45 }
 0x1cc   : > { %v1181_v8 = vmul.f32 %v5264_v2, %v4977_v14  ;;  %v1182_v40 = vmul.f32 %v5273_v13, %v4980_v15  ;;  %v1149_v11 = vmul.f32 %v4133_v37, %v1148_v53  ;;  %v1162_v32 = vmul.f32 %v4135_v60, %v5115_v54 }
 0x1cd   : > { %vm5469_vm13 = vcmp.eq.f32.partialorder %v1170_v21, 8.507059e+37  ;;  %v1183_v12 = vmul.f32 %v1054_v31, %v4982_v33  ;;  %v1184_v57 = vmul.f32 %v1069_v38, %v4984_v34  ;;  %vm1167_vm5 = vweird.f32 %v4135_v60 }
 0x1ce   : > { %v1185_v45 = vmul.f32 %v1084_v48, %v4986_v17  ;;  %v1186_v49 = vmul.f32 %v1099_v42, %v4988_v36  ;;  %v1187_v14 = vmul.f32 %v1114_v59, %v4990_v19  ;;  %v1150_v22 = vadd.f32 %v4133_v37, %v1149_v11  ;;  %vm1168_vm1 = vmor %vm1166_vm12, %vm1167_vm5 }
 0x1cf   : > { %v1163_v15 = vsub.f32 1.0, %v1162_v32  ;;  %v1188_v2 = vmul.f32 %v1129_v63, %v4992_v41  ;;  %v1189_v13 = vmul.f32 %v1144_v46, %v4994_v47  ;;  %v1192_v33 = vpack.c.bf16 %v1176_v39, %v1176_v39  ;;  %v4040_v46 = vld [vmem:[%s6596_s8 + $0x4] ss:$0 sm:$0xff] }
 0x1d0   : > { %v1193_v4 = vpack.c.bf16 %v1177_v27, %v1177_v27  ;;  %v1194_v34 = vpack.c.bf16 %v1178_v30, %v1178_v30  ;;  %v1195_v52 = vpack.c.bf16 %v1179_v58, %v1179_v58  ;;  %v1154_v51 = vsel %vm1153_vm0, %v4133_v37, %v1150_v22 }
 0x1d1   : > { %v1164_v17 = vmul.f32 %v4135_v60, %v1163_v15  ;;  %v1196_v55 = vpack.c.bf16 %v1180_v7, %v1180_v7  ;;  %v1197_v36 = vpack.c.bf16 %v1181_v8, %v1181_v8  ;;  %v1159_v19 = vsel %vm5444_vm6, %v1158_v28, %v1154_v51 }
 0x1d2   : > { %v1198_v29 = vpack.c.bf16 %v1182_v40, %v1182_v40  ;;  %v1199_v6 = vpack.c.bf16 %v1183_v12, %v1183_v12  ;;  %v1200_v41 = vpack.c.bf16 %v1184_v57, %v1184_v57  ;;  %v1190_v47 = vmul.f32 %v1159_v19, %v4996_v26 }
 0x1d3   : > { %v1165_v31 = vadd.f32 %v4135_v60, %v1164_v17  ;;  %v1201_v38 = vpack.c.bf16 %v1185_v45, %v1185_v45  ;;  %v1202_v3 = vpack.c.bf16 %v1186_v49, %v1186_v49  ;;  %v1203_v23 = vpack.c.bf16 %v1187_v14, %v1187_v14 }
 0x1d4   : > { %v1204_v35 = vpack.c.bf16 %v1188_v2, %v1188_v2  ;;  %v1205_v62 = vpack.c.bf16 %v1189_v13, %v1189_v13  ;;  %v1244_v20 = vunpack.c.l.b16 %v1193_v4  ;;  %v1243_v61 = vunpack.c.l.b16 %v1192_v33 }
 0x1d5   : > { %v1169_v56 = vsel %vm1168_vm1, %v4135_v60, %v1165_v31  ;;  %v1245_v0 = vunpack.c.l.b16 %v1194_v34  ;;  %v1246_v48 = vunpack.c.l.b16 %v1195_v52  ;;  %v1206_v10 = vpack.c.bf16 %v1190_v47, %v1190_v47 }
 0x1d6   : > { %v1174_v42 = vsel %vm5469_vm13, %v1173_v18, %v1169_v56  ;;  %v1247_v16 = vunpack.c.l.b16 %v1196_v55  ;;  %v1248_v26 = vunpack.c.l.b16 %v1197_v36  ;;  %v1249_v37 = vunpack.c.l.b16 %v1198_v29 }
 0x1d7   : > { %v1191_v9 = vmul.f32 %v1174_v42, %v6700_v50  ;;  %v1250_v59 = vunpack.c.l.b16 %v1199_v6  ;;  %v1251_v54 = vunpack.c.l.b16 %v1200_v41  ;;  %v1252_v28 = vunpack.c.l.b16 %v1201_v38 }
 0x1d8   : > { %v1253_v43 = vunpack.c.l.b16 %v1202_v3  ;;  %v1254_v63 = vunpack.c.l.b16 %v1203_v23  ;;  %v1259_v1 = vrot.slane %v1244_v20, 7  ;;  %v1255_v44 = vunpack.c.l.b16 %v1204_v35 }
 0x1d9   : > { %vm6622_vm8 = vcmask 1041409   ;;  %v1262_v5 = vrot.slane %v1245_v0, 6  ;;  %vm6621_vm15 = vcmask 1042434   ;;  %v1256_v21 = vunpack.c.l.b16 %v1205_v62 }
 0x1da   : > { %v1261_v39 = vsel %vm6622_vm8, %v1259_v1, %v1243_v61  ;;  %v1265_v18 = vrot.slane %v1246_v48, 5  ;;  %vm6620_vm2 = vcmask 1043459   ;;  %v1207_v27 = vpack.c.bf16 %v1191_v9, %v1191_v9  ;;  %v567_v30 = vpop.f32.mrf.mxu0 }
 0x1db   : > { %v1264_v25 = vsel %vm6621_vm15, %v1262_v5, %v1261_v39  ;;  %v1268_v53 = vrot.slane %v1247_v16, 4  ;;  %vm6618_vm4 = vcmask 1044484   ;;  %v1271_v60 = vrot.slane %v1248_v26, 3  ;;  %v5516_v39 = vld [vmem:[%s6596_s8 + $0x8] ss:$2 sm:$0xf] }
 0x1dc   : > { %v1267_v58 = vsel %vm6620_vm2, %v1265_v18, %v1264_v25  ;;  %vm6617_vm14 = vcmask 1045509   ;;  %vm6613_vm9 = vcmask 1046534   ;;  %v1274_v8 = vrot.slane %v1249_v37, 2 }
 0x1dd   : > { %v1270_v7 = vsel %vm6618_vm4, %v1268_v53, %v1267_v58  ;;  %vm6612_vm10 = vcmask 1047559   ;;  %v1280_v40 = vrot.slane %v1252_v28, 7  ;;  %v1257_v11 = vunpack.c.l.b16 %v1206_v10 }
 0x1de   : > { %v1273_v32 = vsel %vm6617_vm14, %v1271_v60, %v1270_v7  ;;  %v1277_v24 = vrot.slane %v1250_v59, 1  ;;  %v1282_v12 = vrot.slane %v1253_v43, 6  ;;  %v1258_v57 = vunpack.c.l.b16 %v1207_v27 }
 0x1df   : > { %v1276_v45 = vsel %vm6613_vm9, %v1274_v8, %v1273_v32  ;;  %v1281_v49 = vsel %vm6622_vm8, %v1280_v40, %v1251_v54  ;;  %v1284_v14 = vrot.slane %v1254_v63, 5  ;;  %v1286_v2 = vrot.slane %v1255_v44, 4 }
 0x1e0   : > { %v1279_v22 = vsel %vm6612_vm10, %v1277_v24, %v1276_v45  ;;  %v1283_v15 = vsel %vm6621_vm15, %v1282_v12, %v1281_v49  ;;  %v568_v13 = vadd.f32 %v4040_v46, %v567_v30  ;;  %v1288_v4 = vrot.slane %v1256_v21, 3 }
 0x1e1   : > { %v1285_v33 = vsel %vm6620_vm2, %v1284_v14, %v1283_v15  ;;  %v1290_v52 = vrot.slane %v1257_v11, 2  ;;  %v1292_v55 = vrot.slane %v1258_v57, 1  ;;  %vm6701_vm3 = vcmask 261120  }
 0x1e2   : > { %v1287_v34 = vsel %vm6618_vm4, %v1286_v2, %v1285_v33  ;;  %v3603_v51 = vmul.f32 -1.442695, %v568_v13  ;;  %v569_v36 = vpop.f32.mrf.mxu0  ;;  %vm6702_vm6 = vmmov %vm6701_vm3  ;;  %v1222_v18 = vperm.slane %v5516_v39, 3 }
 0x1e3   : > { %v1289_v17 = vsel %vm6617_vm14, %v1288_v4, %v1287_v34  ;;  %v570_v29 = vadd.f32 %v4040_v46, %v569_v36  ;;  %vm6703_vm11 = vmmov %vm6701_vm3 }
 0x1e4   : > { %v1291_v19 = vsel %vm6613_vm9, %v1290_v52, %v1289_v17  ;;  %4136 = vpow2.f32 %v3603_v51  ;;  %vm6704_vm7 = vmmov %vm6701_vm3  ;;  %v4043_v17 = vld [vmem:[%s6596_s8 + $0x14] ss:$0 sm:$0xff] }
 0x1e5   : > { %v1293_v6 = vsel %vm6612_vm10, %v1292_v55, %v1291_v19  ;;  %v3604_v31 = vmul.f32 -1.442695, %v570_v29 }
 0x1e6   : > { %v1294_v41 = vpack.c.b16 %v1293_v6, %v1279_v22  ;;  %v4041_v6 = vld [vmem:[%s6596_s8 + $0x10] ss:$0 sm:$0xff] }
 0x1e7   : > { %4138 = vpow2.f32 %v3604_v31 }
 0x1e8   : > { %3654 = vmatmul.msk.bf16.vlgmr.msra.gmra.mxu1 %vm6701_vm3, %v1294_v41  ;;  %3655 = vmatmul.msk.bf16.vlgmr.msra.gmra.mxu2 %vm6702_vm6, %v1294_v41 }
 0x1e9   : > { %3656 = vmatmul.msk.bf16.vlgmr.msra.gmra.mxu3 %vm6703_vm11, %v1294_v41  ;;  %3657 = vmatmul.msk.bf16.vlgmr.msrb.gmra.mxu0 %vm6704_vm7, %v1294_v41 }
 0x1ea   : > { %v4137_v47 = vpop.eup %4136 }
 0x1eb   : > { %v578_v38 = vadd.f32 1.0, %v4137_v47  ;;  %v4044_v47 = vld [vmem:[%s6596_s8 + $0x16] ss:$0 sm:$0xff] }
 0x1ed   : > { %4140 = vrcp.f32 %v578_v38  ;;  %v4139_v3 = vpop.eup %4138  ;;  %v591_v48 = vand.u32 2147483648, %v578_v38  ;;  %vm585_vm13 = vweird.f32 %v578_v38  ;;  %v589_v10 = vand.u32 2147483647, %v578_v38 }
 0x1ee   : > { %v579_v23 = vadd.f32 1.0, %v4139_v3 }
 0x1ef   : > { %v592_v59 = vor.u32 1.1754944e-38, %v591_v48  ;;  %vm590_vm1 = vcmp.eq.f32.partialorder %v589_v10, 8.507059e+37 }
 0x1f0   : > { %4142 = vrcp.f32 %v579_v23  ;;  %v606_v26 = vand.u32 2147483648, %v579_v23  ;;  %v604_v37 = vand.u32 2147483647, %v579_v23  ;;  %vm600_vm3 = vweird.f32 %v579_v23 }
 0x1f2   : > { %v607_v43 = vor.u32 1.1754944e-38, %v606_v26  ;;  %vm605_vm11 = vcmp.eq.f32.partialorder %v604_v37, 8.507059e+37 }
 0x1f3   : > { %v4141_v35 = vpop.eup %4140 }
 0x1f4   : > { %v581_v62 = vmul.f32 %v4141_v35, %v578_v38  ;;  %vm586_vm12 = vweird.f32 %v4141_v35 }
 0x1f5   : > { %vm587_vm5 = vmor %vm585_vm13, %vm586_vm12 }
 0x1f6   : > { %v582_v20 = vsub.f32 1.0, %v581_v62  ;;  %v4143_v56 = vpop.eup %4142 }
 0x1f7   : > { %v596_v0 = vmul.f32 %v4143_v56, %v579_v23  ;;  %vm601_vm0 = vweird.f32 %v4143_v56 }
 0x1f8   : > { %v583_v61 = vmul.f32 %v4141_v35, %v582_v20  ;;  %vm602_vm6 = vmor %vm600_vm3, %vm601_vm0 }
 0x1f9   : > { %v597_v16 = vsub.f32 1.0, %v596_v0 }
 0x1fa   : > { %v584_v42 = vadd.f32 %v4141_v35, %v583_v61 }
 0x1fb   : > { %v598_v9 = vmul.f32 %v4143_v56, %v597_v16 }
 0x1fc   : > { %v588_v50 = vsel %vm587_vm5, %v4141_v35, %v584_v42  ;;  %v4042_v35 = vld [vmem:[%s6596_s8 + $0x12] ss:$0 sm:$0xff] }
 0x1fd   : > { %v599_v54 = vadd.f32 %v4143_v56, %v598_v9  ;;  %v593_v28 = vsel %vm590_vm1, %v592_v59, %v588_v50  ;;  %v3924_v9 = vld [vmem:[#allocation8] sm:$0xff]  }
 0x1fe   : > { %v610_v44 = vmul.f32 %v593_v28, %v568_v13  ;;  %v3925_v37 = vunpack.c.l.bf16 %v3924_v9 }
 0x1ff   : > { %v603_v63 = vsel %vm602_vm6, %v4143_v56, %v599_v54 }
 0x200   : > { %v608_v1 = vsel %vm605_vm11, %v607_v43, %v603_v63  ;;  %vm6607_vm11 = vcmask 130048   ;;  %v3926_v43 = vunpack.c.h.bf16 %v3924_v9 }
 0x201   : > { %v611_v5 = vmul.f32 %v608_v1, %v570_v29 }
 0x203   : > { %v1580_v21 = vpack.c.bf16 %v611_v5, %v610_v44 }
 0x205   : > { %1591 = vmatpush.bf16.msrb.mxu2 %v1580_v21 }
 0x265   : > { %v1347_v26 = vpop.f32.mrf.mxu1 }
 0x266   : > { %v1389_v27 = vpop.f32.mrf.mxu0 }
 0x267   : > { %v1390_v25 = vadd.f32 %v1389_v27, %v1222_v18 }
 0x269   : > { %v3662_v53 = vmul.f32 -1.442695, %v1390_v25 }
 0x26b   : > { %4144 = vpow2.f32 %v3662_v53 }
 0x26d   : > { %v1349_v50 = vpop.f32.mrf.mxu1 }
 0x26e   : > { %v1391_v30 = vpop.f32.mrf.mxu0 }
 0x26f   : > { %v1392_v58 = vadd.f32 %v1391_v30, %v1222_v18 }
 0x271   : > { %v4145_v60 = vpop.eup %4144  ;;  %v3663_v46 = vmul.f32 -1.442695, %v1392_v58 }
 0x272   : > { %v1478_v7 = vadd.f32 1.0, %v4145_v60 }
 0x274   : > { %4146 = vrcp.f32 %v1478_v7  ;;  %v1491_v45 = vand.u32 2147483648, %v1478_v7  ;;  %vm1485_vm12 = vweird.f32 %v1478_v7  ;;  %v1489_v49 = vand.u32 2147483647, %v1478_v7 }
 0x275   : > { %4148 = vpow2.f32 %v3663_v46 }
 0x276   : > { %v1492_v2 = vor.u32 1.1754944e-38, %v1491_v45  ;;  %vm1490_vm5 = vcmp.eq.f32.partialorder %v1489_v49, 8.507059e+37  ;;  %v1219_v45 = vperm.slane %v5516_v39, 0 }
 0x278   : > { %v1348_v49 = vadd.f32 %v1347_v26, %v1219_v45 }
 0x27a   : > { %v4147_v8 = vpop.eup %4146 }
 0x27b   : > { %v4149_v40 = vpop.eup %4148  ;;  %v1481_v11 = vmul.f32 %v4147_v8, %v1478_v7  ;;  %vm1486_vm7 = vweird.f32 %v4147_v8  ;;  %v3893_v7 = vld [vmem:[%s6591_s3 + $0x18] sm:$0xff] }
 0x27c   : > { %v1479_v32 = vadd.f32 1.0, %v4149_v40  ;;  %vm1487_vm13 = vmor %vm1485_vm12, %vm1486_vm7  ;;  %1641 = vmatpush.bf16.msrb.mxu3 %v3893_v7 }
 0x27d   : > { %v1482_v24 = vsub.f32 1.0, %v1481_v11 }
 0x27e   : > { %4150 = vrcp.f32 %v1479_v32  ;;  %v1506_v4 = vand.u32 2147483648, %v1479_v32  ;;  %v1504_v52 = vand.u32 2147483647, %v1479_v32  ;;  %vm1500_vm1 = vweird.f32 %v1479_v32 }
 0x27f   : > { %v1483_v12 = vmul.f32 %v4147_v8, %v1482_v24 }
 0x280   : > { %v1507_v36 = vor.u32 1.1754944e-38, %v1506_v4  ;;  %vm1505_vm6 = vcmp.eq.f32.partialorder %v1504_v52, 8.507059e+37  ;;  %v3891_v4 = vld [vmem:[%s6591_s3 + $0x8] sm:$0xff] }
 0x281   : > { %v1484_v57 = vadd.f32 %v4147_v8, %v1483_v12 }
 0x283   : > { %v1488_v22 = vsel %vm1487_vm13, %v4147_v8, %v1484_v57 }
 0x284   : > { %v4151_v14 = vpop.eup %4150  ;;  %v1493_v33 = vsel %vm1490_vm5, %v1492_v2, %v1488_v22  ;;  %v3658_v22 = vmul.f32 -1.442695, %v1348_v49 }
 0x285   : > { %v1496_v15 = vmul.f32 %v4151_v14, %v1479_v32  ;;  %vm1501_vm0 = vweird.f32 %v4151_v14  ;;  %v1510_v51 = vmul.f32 %v1493_v33, %v1390_v25 }
 0x286   : > { %vm1502_vm3 = vmor %vm1500_vm1, %vm1501_vm0 }
 0x287   : > { %v1497_v13 = vsub.f32 1.0, %v1496_v15  ;;  %v1522_v41 = vmul.f32 %v4043_v17, %v1510_v51  ;;  %v1514_v23 = vmul.f32 %v4041_v6, %v1510_v51  ;;  %v3890_v51 = vld [vmem:[%s6591_s3] sm:$0xff] }
 0x289   : > { %v1498_v34 = vmul.f32 %v4151_v14, %v1497_v13  ;;  %v1526_v62 = vadd.f32 %v4044_v47, %v1522_v41  ;;  %v1518_v0 = vadd.f32 %v4042_v35, %v1514_v23  ;;  %v3892_v13 = vld [vmem:[%s6591_s3 + $0x10] sm:$0xff] }
 0x28a   : > { %1642 = vmatpush.bf16.msrb.mxu3 %v3892_v13 }
 0x28b   : > { %v1499_v55 = vadd.f32 %v4151_v14, %v1498_v34  ;;  %v1528_v10 = vmul.f32 0.25, %v1518_v0 }
 0x28d   : > { %v1503_v19 = vsel %vm1502_vm3, %v4151_v14, %v1499_v55  ;;  %v1350_v14 = vadd.f32 %v1349_v50, %v1219_v45 }
 0x28e   : > { %v1508_v29 = vsel %vm1505_vm6, %v1507_v36, %v1503_v19  ;;  %1643 = vmatpush.bf16.msrb.mxu3 %v3891_v4  ;;  %v1361_v36 = vpop.f32.mrf.mxu2 }
 0x28f   : > { %v1511_v31 = vmul.f32 %v1508_v29, %v1392_v58  ;;  %v3659_v15 = vmul.f32 -1.442695, %v1350_v14 }
 0x291   : > { %v1515_v38 = vmul.f32 %v4041_v6, %v1511_v31  ;;  %v1523_v3 = vmul.f32 %v4043_v17, %v1511_v31 }
 0x292   : > { %1644 = vmatpush.bf16.msrb.mxu3 %v3890_v51 }
 0x293   : > { %v1527_v20 = vadd.f32 %v4044_v47, %v1523_v3  ;;  %v1519_v56 = vadd.f32 %v4042_v35, %v1515_v38 }
 0x295   : > { %v1531_v61 = vpack.c.bf16 %v1527_v20, %v1526_v62  ;;  %v1529_v42 = vmul.f32 0.25, %v1519_v56 }
 0x296   : > { %v1363_v31 = vpop.f32.mrf.mxu2 }
 0x297   : > { %v1541_v48 = vsel %vm6607_vm11, %v1531_v61, 0  ;;  %v1530_v16 = vpack.c.bf16 %v1529_v42, %v1528_v10 }
 0x298   : > { %1550 = vmatpush.bf16.xpose.msrb.mxu1 %v1541_v48 }
 0x29f   : > { %3664 = vmatmul.msk.bf16.vlgmr.msrb.gmra.mxu1 %vm6607_vm11, %v1530_v16 }
 0x31c   : > { %v1552_v59 = vpop.f32.mrf.mxu1 }
 0x31d   : > { %v1553_v54 = vadd.f32 %v3925_v37, %v1552_v59 }
 0x31f   : > { %v1557_v28 = vsel %vm6607_vm11, %v1553_v54, -inf }
 0x320   : > { %1558 = vmax.xlane.f32.xlu2 %v1557_v28 }
 0x324   : > { %v1554_v63 = vpop.f32.mrf.mxu1 }
 0x325   : > { %v1555_v1 = vadd.f32 %v3926_v43, %v1554_v63  ;;  %v1375_v43 = vpop.f32.mrf.mxu3  ;;  %v1220_v63 = vperm.slane %v5516_v39, 1 }
 0x327   : > { %v1560_v44 = vsel %vm6607_vm11, %v1555_v1, -inf }
 0x328   : > { %1561 = vmax.xlane.f32.xlu2 %v1560_v44 }
 0x393   : > { %v1559_v5 = vpop.xlane.xlu2 %1558 }
 0x394   : > { %v1563_v21 = vsub.f32 %v1553_v54, %v1559_v5  ;;  %v1377_v5 = vpop.f32.mrf.mxu3 }
 0x396   : > { %v1565_v18 = vmul.f32 1.442695, %v1563_v21  ;;  %v1364_v21 = vadd.f32 %v1363_v31, %v1220_v63 }
 0x398   : > { %4152 = vpow2.f32 %v1565_v18  ;;  %v1221_v18 = vperm.slane %v5516_v39, 2 }
 0x39b   : > { %v1562_v27 = vpop.xlane.xlu2 %1561 }
 0x39c   : > { %v1564_v25 = vsub.f32 %v1555_v1, %v1562_v27  ;;  %v1362_v1 = vadd.f32 %v1361_v36, %v1220_v63  ;;  %v3661_v27 = vmul.f32 -1.442695, %v1364_v21 }
 0x39e   : > { %v4153_v53 = vpop.eup %4152  ;;  %v1567_v30 = vmul.f32 1.442695, %v1564_v25  ;;  %v3660_v44 = vmul.f32 -1.442695, %v1362_v1  ;;  %v1376_v25 = vadd.f32 %v1375_v43, %v1221_v18 }
 0x39f   : > { %v1569_v58 = vsel %vm6607_vm11, %v4153_v53, 0.0 }
 0x3a0   : > { %4154 = vpow2.f32 %v1567_v30  ;;  %1570 = vadd.xlane.f32.xlu0 %v1569_v58 }
 0x3a6   : > { %v4155_v60 = vpop.eup %4154 }
 0x3a7   : > { %v1572_v46 = vsel %vm6607_vm11, %v4155_v60, 0.0 }
 0x3a8   : > { %1573 = vadd.xlane.f32.xlu1 %v1572_v46 }
 0x413   : > { %v1571_v8 = vpop.xlane.xlu0 %1570 }
 0x414   : > { %4156 = vrcp.f32 %v1571_v8 }
 0x41a   : > { %v4157_v11 = vpop.eup %4156 }
 0x41b   : > { %v1574_v40 = vpop.xlane.xlu1 %1573  ;;  %v1577_v24 = vmul.f32 %v4157_v11, %v4153_v53  ;;  %v4045_v53 = vld [vmem:[%s6596_s8 + $0x18] ss:$0 sm:$0xff]  ;;  %v1378_v11 = vadd.f32 %v1377_v5, %v1221_v18 }
 0x41c   : > { %4158 = vrcp.f32 %v1574_v40 }
 0x41d   : > { %4160 = vpow2.f32 %v3658_v22 }
 0x41e   : > { %4162 = vpow2.f32 %v3659_v15 }
 0x422   : > { %v4159_v32 = vpop.eup %4158 }
 0x423   : > { %v1578_v12 = vmul.f32 %v4159_v32, %v4155_v60  ;;  %v4161_v2 = vpop.eup %4160 }
 0x424   : > { %v4163_v33 = vpop.eup %4162  ;;  %v1400_v34 = vadd.f32 1.0, %v4161_v2 }
 0x425   : > { %v1579_v57 = vpack.c.bf16 %v1578_v12, %v1577_v24  ;;  %v1401_v52 = vadd.f32 1.0, %v4163_v33 }
 0x426   : > { %4164 = vrcp.f32 %v1400_v34  ;;  %vm1407_vm13 = vweird.f32 %v1400_v34  ;;  %v1413_v35 = vand.u32 2147483648, %v1400_v34  ;;  %v1411_v20 = vand.u32 2147483647, %v1400_v34 }
 0x427   : > { %3665 = vmatmul.msk.bf16.vlgmr.msrb.gmra.mxu2 %vm6607_vm11, %v1579_v57  ;;  %4166 = vrcp.f32 %v1401_v52  ;;  %v1428_v62 = vand.u32 2147483648, %v1401_v52  ;;  %vm1422_vm0 = vweird.f32 %v1401_v52  ;;  %v1426_v56 = vand.u32 2147483647, %v1401_v52 }
 0x428   : > { %v1414_v42 = vor.u32 1.1754944e-38, %v1413_v35  ;;  %vm1412_vm3 = vcmp.eq.f32.partialorder %v1411_v20, 8.507059e+37  ;;  %vm6611_vm11 = vcmask 523264   ;;  %4168 = vpow2.f32 %v3660_v44 }
 0x429   : > { %v1429_v10 = vor.u32 1.1754944e-38, %v1428_v62  ;;  %vm1427_vm6 = vcmp.eq.f32.partialorder %v1426_v56, 8.507059e+37  ;;  %4170 = vpow2.f32 %v3661_v27 }
 0x42c   : > { %v4165_v17 = vpop.eup %4164 }
 0x42d   : > { %v4167_v55 = vpop.eup %4166  ;;  %v1403_v19 = vmul.f32 %v4165_v17, %v1400_v34  ;;  %vm1408_vm7 = vweird.f32 %v4165_v17 }
 0x42e   : > { %v1418_v29 = vmul.f32 %v4167_v55, %v1401_v52  ;;  %vm1423_vm12 = vweird.f32 %v4167_v55  ;;  %vm1409_vm5 = vmor %vm1407_vm13, %vm1408_vm7  ;;  %v4169_v58 = vpop.eup %4168 }
 0x42f   : > { %v1404_v6 = vsub.f32 1.0, %v1403_v19  ;;  %vm1424_vm1 = vmor %vm1422_vm0, %vm1423_vm12  ;;  %v1440_v7 = vadd.f32 1.0, %v4169_v58  ;;  %v4171_v40 = vpop.eup %4170 }
 0x430   : > { %v1419_v41 = vsub.f32 1.0, %v1418_v29  ;;  %v5557_v39 = vadd.f32 1.0, %v4171_v40  ;;  %v6707_v40 = vld [vmem:[#allocation19_spill] sm:$0xff] }
 0x431   : > { %v1405_v47 = vmul.f32 %v4165_v17, %v1404_v6 }
 0x432   : > { %v1420_v38 = vmul.f32 %v4167_v55, %v1419_v41  ;;  %v1468_v43 = vand.u32 2147483648, %v5557_v39  ;;  %v1466_v44 = vand.u32 2147483647, %v5557_v39 }
 0x433   : > { %v1406_v3 = vadd.f32 %v4165_v17, %v1405_v47 }
 0x434   : > { %v1421_v23 = vadd.f32 %v4167_v55, %v1420_v38  ;;  %v1451_v38 = vand.u32 2147483647, %v1440_v7 }
 0x435   : > { %v1410_v0 = vsel %vm1409_vm5, %v4165_v17, %v1406_v3  ;;  %v1453_v3 = vand.u32 2147483648, %v1440_v7 }
 0x436   : > { %v1425_v48 = vsel %vm1424_vm1, %v4167_v55, %v1421_v23  ;;  %v1415_v16 = vsel %vm1412_vm3, %v1414_v42, %v1410_v0  ;;  %vm1447_vm1 = vweird.f32 %v1440_v7 }
 0x437   : > { %v1430_v26 = vsel %vm1427_vm6, %v1429_v10, %v1425_v48  ;;  %v1432_v50 = vmul.f32 %v1415_v16, %v1348_v49  ;;  %vm1452_vm6 = vcmp.eq.f32.partialorder %v1451_v38, 8.507059e+37  ;;  %v1454_v42 = vor.u32 1.1754944e-38, %v1453_v3  ;;  %v4336_v10 = vld [vmem:[%s4736_s12] sm:$0xff] }
 0x438   : > { %v1433_v9 = vmul.f32 %v1430_v26, %v1350_v14 }
 0x4aa   : > { %v1593_v61 = vpop.f32.mrf.mxu2 }
 0x4ab   : > { %v1598_v59 = vmul.f32 %v1593_v61, %v1432_v50 }
 0x4b2   : > { %v1595_v37 = vpop.f32.mrf.mxu2 }
 0x4b3   : > { %v1599_v54 = vmul.f32 %v1595_v37, %v1433_v9 }
 0x4b5   : > { %v1600_v28 = vpack.c.bf16 %v1599_v54, %v1598_v59 }
 0x4b7   : > { %3682 = vmatmul.msk.bf16.vlgmr.msrb.gmra.mxu3 %vm6611_vm11, %v1600_v28 }
 0x53a   : > { %v1646_v30 = vpop.f32.mrf.mxu3 }
 0x53b   : > { %v1651_v60 = vadd.f32 %v1646_v30, %v1376_v25  ;;  %v1469_v25 = vor.u32 1.1754944e-38, %v1468_v43 }
 0x53d   : > { %v1655_v46 = vadd.f32 %v4045_v53, %v1651_v60 }
 0x53f   : > { %v3683_v8 = vmul.f32 -1.442695, %v1655_v46 }
 0x541   : > { %4172 = vpow2.f32 %v3683_v8 }
 0x542   : > { %4174 = vrcp.f32 %v1440_v7  ;;  %v1648_v32 = vpop.f32.mrf.mxu3 }
 0x543   : > { %v1652_v24 = vadd.f32 %v1648_v32, %v1378_v11  ;;  %4176 = vrcp.f32 %v5557_v39 }
 0x545   : > { %v5559_v12 = vadd.f32 %v4045_v53, %v1652_v24  ;;  %v4337_v53 = vld [vmem:[%s4736_s12 + $0x8] sm:$0xff] }
 0x547   : > { %v4173_v57 = vpop.eup %4172  ;;  %v3684_v45 = vmul.f32 -1.442695, %v5559_v12 }
 0x548   : > { %v4175_v49 = vpop.eup %4174  ;;  %v1663_v14 = vadd.f32 1.0, %v4173_v57 }
 0x549   : > { %4178 = vpow2.f32 %v3684_v45  ;;  %v1443_v22 = vmul.f32 %v4175_v49, %v1440_v7  ;;  %v5563_v15 = vpop.eup %4176  ;;  %vm1448_vm12 = vweird.f32 %v4175_v49 }
 0x54a   : > { %4180 = vrcp.f32 %v1663_v14  ;;  %v1458_v52 = vmul.f32 %v5563_v15, %v5557_v39  ;;  %v1676_v55 = vand.u32 2147483648, %v1663_v14  ;;  %v1674_v19 = vand.u32 2147483647, %v1663_v14  ;;  %vm1449_vm3 = vmor %vm1447_vm1, %vm1448_vm12 }
 0x54b   : > { %v1444_v13 = vsub.f32 1.0, %v1443_v22  ;;  %vm1670_vm13 = vweird.f32 %v1663_v14 }
 0x54c   : > { %v1459_v29 = vsub.f32 1.0, %v1458_v52  ;;  %v1677_v47 = vor.u32 1.1754944e-38, %v1676_v55  ;;  %vm1675_vm0 = vcmp.eq.f32.partialorder %v1674_v19, 8.507059e+37 }
 0x54d   : > { %v1445_v17 = vmul.f32 %v4175_v49, %v1444_v13 }
 0x54e   : > { %v1460_v0 = vmul.f32 %v5563_v15, %v1459_v29 }
 0x54f   : > { %v4179_v2 = vpop.eup %4178  ;;  %v1446_v41 = vadd.f32 %v4175_v49, %v1445_v17 }
 0x550   : > { %v4181_v33 = vpop.eup %4180  ;;  %v1664_v4 = vadd.f32 1.0, %v4179_v2  ;;  %v1461_v54 = vadd.f32 %v5563_v15, %v1460_v0 }
 0x551   : > { %v1666_v34 = vmul.f32 %v4181_v33, %v1663_v14  ;;  %vm1671_vm7 = vweird.f32 %v4181_v33  ;;  %v1450_v61 = vsel %vm1449_vm3, %v4175_v49, %v1446_v41 }
 0x552   : > { %4182 = vrcp.f32 %v1664_v4  ;;  %vm1672_vm5 = vmor %vm1670_vm13, %vm1671_vm7  ;;  %v1691_v48 = vand.u32 2147483648, %v1664_v4  ;;  %v1689_v50 = vand.u32 2147483647, %v1664_v4  ;;  %v1455_v9 = vsel %vm1452_vm6, %v1454_v42, %v1450_v61 }
 0x553   : > { %v1667_v51 = vsub.f32 1.0, %v1666_v34  ;;  %vm1463_vm13 = vweird.f32 %v5563_v15  ;;  %vm6705_vm6 = vcmask 261120  }
 0x554   : > { %v1692_v28 = vor.u32 1.1754944e-38, %v1691_v48  ;;  %vm1690_vm1 = vcmp.eq.f32.partialorder %v1689_v50, 8.507059e+37  ;;  %v4048_v50 = vld [vmem:[%s6596_s8 + $0x1e] ss:$0 sm:$0xff] }
 0x555   : > { %v1668_v36 = vmul.f32 %v4181_v33, %v1667_v51 }
 0x557   : > { %v1669_v6 = vadd.f32 %v4181_v33, %v1668_v36 }
 0x558   : > { %v4183_v31 = vpop.eup %4182 }
 0x559   : > { %v1673_v23 = vsel %vm1672_vm5, %v4181_v33, %v1669_v6  ;;  %v1681_v35 = vmul.f32 %v4183_v31, %v1664_v4  ;;  %vm1686_vm7 = vweird.f32 %v4183_v31  ;;  %vm1685_vm5 = vweird.f32 %v1664_v4  ;;  %v3894_v33 = vld [vmem:[%s6592_s4] sm:$0xff] }
 0x55a   : > { %v1678_v62 = vsel %vm1675_vm0, %v1677_v47, %v1673_v23  ;;  %vm1687_vm12 = vmor %vm1685_vm5, %vm1686_vm7  ;;  %vm1462_vm0 = vweird.f32 %v5557_v39  ;;  %vm1467_vm7 = vcmp.eq.f32.partialorder %v1466_v44, 8.507059e+37  ;;  %v4046_v23 = vld [vmem:[%s6596_s8 + $0x1a] ss:$0 sm:$0xff] }
 0x55b   : > { %v1695_v20 = vmul.f32 %v1678_v62, %v1655_v46  ;;  %v1682_v56 = vsub.f32 1.0, %v1681_v35  ;;  %vm1464_vm3 = vmor %vm1462_vm0, %vm1463_vm13 }
 0x55c   : > { %v1465_v27 = vsel %vm1464_vm3, %v5563_v15, %v1461_v54  ;;  %vm6706_vm5 = vmmov %vm6705_vm6  ;;  %v3895_v15 = vld [vmem:[%s6592_s4 + $0x8] sm:$0xff] }
 0x55d   : > { %v1697_v16 = vsub.f32 %v1695_v20, %v4336_v10  ;;  %v1683_v26 = vmul.f32 %v4183_v31, %v1682_v56  ;;  %v1470_v58 = vsel %vm1467_vm7, %v1469_v25, %v1465_v27  ;;  %vm6708_vm13 = vmmov %vm6706_vm5  ;;  %1783 = vmatpush.bf16.msra.mxu0 %v3895_v15  ;;  %v4047_v56 = vld [vmem:[%s6596_s8 + $0x1c] ss:$0 sm:$0xff] }
 0x55f   : > { %v1684_v37 = vadd.f32 %v4183_v31, %v1683_v26  ;;  %v1699_v59 = vmul.f32 %v1697_v16, %v1455_v9  ;;  %v3899_v26 = vld [vmem:[%s6593_s5 + $0x18] sm:$0xff] }
 0x560   : > { %1873 = vmatpush.bf16.msra.mxu1 %v3899_v26  ;;  %v3908_v26 = vld [vmem:[%s6590_s2 + $0x6c] sm:$0xf0] }
 0x561   : > { %v1688_v63 = vsel %vm1687_vm12, %v4183_v31, %v1684_v37  ;;  %v5574_v1 = vadd.f32 %v4336_v10, %v1699_v59  ;;  %vm6709_vm12 = vmmov %vm6706_vm5  ;;  %1784 = vmatpush.bf16.msra.mxu0 %v3894_v33  ;;  %v3898_v37 = vld [vmem:[%s6593_s5 + $0x10] sm:$0xff] }
 0x562   : > { %v1693_v5 = vsel %vm1690_vm1, %v1692_v28, %v1688_v63  ;;  %v3897_v28 = vld [vmem:[%s6593_s5 + $0x8] sm:$0xff]  ;;  %v3896_v63 = vld [vmem:[%s6593_s5] sm:$0xff] }
 0x563   : > { %v1696_v21 = vmul.f32 %v1693_v5, %v5559_v12  ;;  %v1705_v18 = vsel %vm6705_vm6, %v5574_v1, 0.0 }
 0x564   : > { %1706 = vadd.xlane.f32.xlu2 %v1705_v18  ;;  %1874 = vmatpush.bf16.msra.mxu1 %v3898_v37 }
 0x565   : > { %v1698_v30 = vsub.f32 %v1696_v21, %v4337_v53 }
 0x567   : > { %v1700_v60 = vmul.f32 %v1698_v30, %v1470_v58 }
 0x568   : > { %1875 = vmatpush.bf16.msra.mxu1 %v3897_v28  ;;  %v3909_v28 = vld [vmem:[%s6590_s2 + $0x74] sm:$0xf0] }
 0x569   : > { %v5582_v46 = vadd.f32 %v4337_v53, %v1700_v60 }
 0x56b   : > { %v1708_v7 = vsel %vm6706_vm5, %v5582_v46, 0.0 }
 0x56c   : > { %1709 = vadd.xlane.f32.xlu0 %v1708_v7  ;;  %1876 = vmatpush.bf16.msra.mxu1 %v3896_v63 }
 0x5d7   : > { %v1707_v8 = vpop.xlane.xlu2 %1706 }
 0x5d8   : > { %v1711_v11 = vmul.f32 %v1707_v8, %v6707_v40 }
 0x5da   : > { %v1713_v32 = vsub.f32 %v5574_v1, %v1711_v11 }
 0x5dc   : > { %v1715_v24 = vmul.f32 %v1713_v32, %v1713_v32 }
 0x5de   : > { %v1717_v39 = vsel %vm6708_vm13, %v1715_v24, 0.0  ;;  %vm6710_vm13 = vmmov %vm6709_vm12 }
 0x5df   : > { %1718 = vadd.xlane.f32.xlu1 %v1717_v39  ;;  %v1710_v12 = vpop.xlane.xlu0 %1709 }
 0x5e0   : > { %v1712_v57 = vmul.f32 %v1710_v12, %v6707_v40 }
 0x5e2   : > { %v1714_v45 = vsub.f32 %v5582_v46, %v1712_v57 }
 0x5e4   : > { %v1716_v49 = vmul.f32 %v1714_v45, %v1714_v45 }
 0x5e6   : > { %v1720_v14 = vsel %vm6709_vm12, %v1716_v49, 0.0 }
 0x5e7   : > { %1721 = vadd.xlane.f32.xlu2 %v1720_v14 }
 0x652   : > { %v1719_v22 = vpop.xlane.xlu1 %1718 }
 0x653   : > { %v1723_v2 = vmul.f32 %v1719_v22, %v6707_v40 }
 0x655   : > { %v1725_v13 = vadd.f32 1e-05, %v1723_v2 }
 0x657   : > { %4184 = vrsqrt.f32 %v1725_v13  ;;  %vm1733_vm1 = vweird.f32 %v1725_v13 }
 0x65a   : > { %v1722_v4 = vpop.xlane.xlu2 %1721 }
 0x65b   : > { %v1724_v34 = vmul.f32 %v1722_v4, %v6707_v40 }
 0x65d   : > { %v4185_v52 = vpop.eup %4184  ;;  %v1726_v51 = vadd.f32 1e-05, %v1724_v34 }
 0x65e   : > { %v1728_v17 = vmul.f32 %v4185_v52, %v1725_v13  ;;  %vm1734_vm0 = vweird.f32 %v4185_v52 }
 0x65f   : > { %4186 = vrsqrt.f32 %v1726_v51  ;;  %vm1735_vm3 = vmor %vm1733_vm1, %vm1734_vm0  ;;  %vm1743_vm7 = vweird.f32 %v1726_v51 }
 0x660   : > { %v1729_v55 = vmul.f32 %v4185_v52, %v1728_v17 }
 0x662   : > { %v1730_v36 = vmul.f32 0.5, %v1729_v55 }
 0x664   : > { %v1731_v19 = vsub.f32 1.5, %v1730_v36 }
 0x665   : > { %v4187_v29 = vpop.eup %4186 }
 0x666   : > { %v1732_v6 = vmul.f32 %v4185_v52, %v1731_v19  ;;  %v1738_v41 = vmul.f32 %v4187_v29, %v1726_v51  ;;  %vm1744_vm6 = vweird.f32 %v4187_v29  ;;  %v4049_v51 = vld [vmem:[%s6596_s8 + $0x20] ss:$0 sm:$0xff] }
 0x667   : > { %vm1745_vm5 = vmor %vm1743_vm7, %vm1744_vm6 }
 0x668   : > { %v1739_v31 = vmul.f32 %v4187_v29, %v1738_v41  ;;  %v1736_v47 = vsel %vm1735_vm3, %v4185_v52, %v1732_v6 }
 0x669   : > { %v1747_v35 = vmul.f32 %v1736_v47, %v1713_v32 }
 0x66a   : > { %v1740_v38 = vmul.f32 0.5, %v1739_v31 }
 0x66b   : > { %v1750_v61 = vmul.f32 %v4046_v23, %v1747_v35 }
 0x66c   : > { %v1741_v3 = vsub.f32 1.5, %v1740_v38 }
 0x66d   : > { %v1753_v42 = vadd.f32 %v4047_v56, %v1750_v61 }
 0x66e   : > { %v1742_v62 = vmul.f32 %v4187_v29, %v1741_v3 }
 0x670   : > { %v1746_v20 = vsel %vm1745_vm5, %v4187_v29, %v1742_v62 }
 0x671   : > { %v1748_v0 = vmul.f32 %v1746_v20, %v1714_v45 }
 0x673   : > { %v1751_v48 = vmul.f32 %v4046_v23, %v1748_v0  ;;  %v3901_v0 = vld [vmem:[#allocation5 + $0x18] sm:$0xff] }
 0x674   : > { %1968 = vmatpush.bf16.msra.mxu2 %v3901_v0  ;;  %v2037_v0 = vld [vmem:[#allocation7 + $0x1a0] sm:$0xff] }
 0x675   : > { %v1754_v10 = vadd.f32 %v4047_v56, %v1751_v48 }
 0x677   : > { %v1755_v16 = vpack.c.bf16 %v1754_v10, %v1753_v42  ;;  %v3900_v10 = vld [vmem:[#allocation5 + $0x10] sm:$0xff] }
 0x678   : > { %1969 = vmatpush.bf16.msra.mxu2 %v3900_v10 }
 0x679   : > { %3693 = vmatmul.msk.bf16.vlgmr.msra.gmra.mxu0 %vm6710_vm13, %v1755_v16  ;;  %v3767_v16 = vld [vmem:[%s6590_s2 + $0x60] sm:$0xf] }
 0x67a   : > { %v3768_v37 = vor.u32 %v3908_v26, %v3767_v16 }
 0x67c   : > { %2743 = vmatpush.bf16.msra.mxu3 %v3768_v37  ;;  %v2047_v37 = vld [vmem:[#allocation7 + $0x1f0] sm:$0xff] }
 0x6f6   : > { %v1786_v9 = vpop.f32.mrf.mxu0 }
 0x6f7   : > { %v1787_v59 = vadd.f32 %v4048_v50, %v1786_v9 }
 0x6f9   : > { %v3694_v54 = vmul.f32 -1.442695, %v1787_v59 }
 0x6fb   : > { %4188 = vpow2.f32 %v3694_v54  ;;  %v3775_v54 = vld [vmem:[%s6590_s2 + $0x68] sm:$0xf] }
 0x6fe   : > { %v1788_v43 = vpop.f32.mrf.mxu0 }
 0x6ff   : > { %v1789_v44 = vadd.f32 %v4048_v50, %v1788_v43  ;;  %v3906_v50 = vld [vmem:[%s6590_s2 + $0x64] sm:$0xf] }
 0x701   : > { %v4189_v5 = vpop.eup %4188  ;;  %v3695_v21 = vmul.f32 -1.442695, %v1789_v44 }
 0x702   : > { %v1797_v18 = vadd.f32 1.0, %v4189_v5  ;;  %v3907_v5 = vld [vmem:[%s6590_s2 + $0x6c] sm:$0xf] }
 0x703   : > { %4190 = vpow2.f32 %v3695_v21  ;;  %v3777_v21 = vld [vmem:[%s6590_s2 + $0x78] sm:$0xf0] }
 0x704   : > { %4192 = vrcp.f32 %v1797_v18  ;;  %v1810_v32 = vand.u32 2147483648, %v1797_v18  ;;  %vm1804_vm0 = vweird.f32 %v1797_v18  ;;  %v1808_v24 = vand.u32 2147483647, %v1797_v18 }
 0x706   : > { %v1811_v14 = vor.u32 1.1754944e-38, %v1810_v32  ;;  %vm1809_vm6 = vcmp.eq.f32.partialorder %v1808_v24, 8.507059e+37  ;;  %v3905_v32 = vld [vmem:[%s6590_s2 + $0x54] sm:$0xf0] }
 0x709   : > { %v4191_v27 = vpop.eup %4190 }
 0x70a   : > { %v4193_v25 = vpop.eup %4192  ;;  %v1798_v53 = vadd.f32 1.0, %v4191_v27  ;;  %v3780_v27 = vor.u32 %v3907_v5, %v3777_v21  ;;  %v2018_v21 = vld [vmem:[#allocation7 + $0x108] sm:$0xff] }
 0x70b   : > { %v1800_v30 = vmul.f32 %v4193_v25, %v1797_v18  ;;  %vm1805_vm12 = vweird.f32 %v4193_v25  ;;  %v3751_v18 = vld [vmem:[%s6590_s2 + $0x40] sm:$0xf] }
 0x70c   : > { %4194 = vrcp.f32 %v1798_v53  ;;  %vm1806_vm1 = vmor %vm1804_vm0, %vm1805_vm12  ;;  %v1825_v12 = vand.u32 2147483648, %v1798_v53  ;;  %v1823_v49 = vand.u32 2147483647, %v1798_v53  ;;  %vm1819_vm7 = vweird.f32 %v1798_v53  ;;  %2785 = vmatpush.bf16.msrb.mxu2 %v3780_v27 }
 0x70d   : > { %v1801_v58 = vsub.f32 1.0, %v1800_v30  ;;  %vm6712_vm12 = vcmask 261120   ;;  %v3753_v30 = vld [vmem:[%s6590_s2 + $0x50] sm:$0xf0] }
 0x70e   : > { %v1826_v2 = vor.u32 1.1754944e-38, %v1825_v12  ;;  %vm1824_vm13 = vcmp.eq.f32.partialorder %v1823_v49, 8.507059e+37  ;;  %vm6713_vm0 = vmmov %vm6712_vm12  ;;  %v3903_v12 = vld [vmem:[%s6590_s2 + $0x4c] sm:$0xf] }
 0x70f   : > { %v1802_v60 = vmul.f32 %v4193_v25, %v1801_v58 }
 0x711   : > { %v1803_v8 = vadd.f32 %v4193_v25, %v1802_v60 }
 0x712   : > { %v4195_v7 = vpop.eup %4194 }
 0x713   : > { %v1815_v11 = vmul.f32 %v4195_v7, %v1798_v53  ;;  %v1807_v57 = vsel %vm1806_vm1, %v4193_v25, %v1803_v8  ;;  %vm1820_vm3 = vweird.f32 %v4195_v7  ;;  %vm6715_vm1 = vmmov %vm6713_vm0  ;;  %v3904_v25 = vld [vmem:[%s6590_s2 + $0x4c] sm:$0xf0]  ;;  %v3902_v53 = vld [vmem:[%s6590_s2 + $0x44] sm:$0xf] }
 0x714   : > { %v1812_v15 = vsel %vm1809_vm6, %v1811_v14, %v1807_v57  ;;  %vm1821_vm5 = vmor %vm1819_vm7, %vm1820_vm3  ;;  %v3756_v8 = vor.u32 %v3902_v53, %v3753_v30  ;;  %v3761_v57 = vld [vmem:[%s6590_s2 + $0x58] sm:$0xf0] }
 0x715   : > { %v1816_v39 = vsub.f32 1.0, %v1815_v11  ;;  %v1829_v4 = vmul.f32 %v1812_v15, %v1787_v59  ;;  %vm6716_vm3 = vmmov %vm6713_vm0  ;;  %v3769_v59 = vld [vmem:[%s6590_s2 + $0x70] sm:$0xf0]  ;;  %v3759_v11 = vld [vmem:[%s6590_s2 + $0x48] sm:$0xf] }
 0x716   : > { %vm6717_vm6 = vmmov %vm6713_vm0  ;;  %v3772_v63 = vor.u32 %v3906_v50, %v3769_v59  ;;  %v2043_v50 = vld [vmem:[#allocation7 + $0x1d0] sm:$0xff] }
 0x717   : > { %v1817_v45 = vmul.f32 %v4195_v7, %v1816_v39  ;;  %vm6718_vm7 = vmmov %vm6713_vm0  ;;  %v3760_v39 = vor.u32 %v3905_v32, %v3759_v11  ;;  %v2026_v32 = vld [vmem:[#allocation7 + $0x148] sm:$0xff] }
 0x718   : > { %2757 = vmatpush.bf16.msrb.mxu0 %v3772_v63 }
 0x719   : > { %v1818_v22 = vadd.f32 %v4195_v7, %v1817_v45  ;;  %v3764_v45 = vor.u32 %v3903_v12, %v3761_v57 }
 0x71b   : > { %v1822_v13 = vsel %vm1821_vm5, %v4195_v7, %v1818_v22  ;;  %v3752_v7 = vor.u32 %v3904_v25, %v3751_v18  ;;  %2786 = vmatpush.bf16.msrb.mxu2 %v3764_v45 }
 0x71c   : > { %v1827_v33 = vsel %vm1824_vm13, %v1826_v2, %v1822_v13  ;;  %2758 = vmatpush.bf16.msrb.mxu0 %v3756_v8 }
 0x71d   : > { %v1830_v34 = vmul.f32 %v1827_v33, %v1789_v44  ;;  %v3776_v44 = vor.u32 %v3909_v28, %v3775_v54  ;;  %2744 = vmatpush.bf16.msra.mxu3 %v3752_v7  ;;  %v4050_v33 = vld [vmem:[%s6596_s8 + $0x1] ss:$0 sm:$0xff] }
 0x71f   : > { %v1831_v52 = vpack.c.bf16 %v1830_v34, %v1829_v4  ;;  %2771 = vmatpush.bf16.msrb.mxu1 %v3776_v44 }
 0x721   : > { %3712 = vmatmul.msk.bf16.vlgmr.msra.gmra.mxu1 %vm6611_vm11, %v1831_v52  ;;  %v4051_v52 = vld [vmem:[%s6596_s8 + $0x3] ss:$0 sm:$0xff] }
 0x723   : > { %2772 = vmatpush.bf16.msrb.mxu1 %v3760_v39 }
 0x79e   : > { %v1878_v17 = vpop.f32.mrf.mxu1 }
 0x79f   : > { %v1879_v55 = vadd.f32 %v4049_v51, %v1878_v17 }
 0x7a1   : > { %v5628_v36 = vadd.f32 %v1879_v55, %v5574_v1 }
 0x7a3   : > { %6711 = vst [vmem:[#allocation20_spill] sm:$0xff] %v5628_v36  ;;  %v1889_v19 = vsel %vm6713_vm0, %v5628_v36, 0.0 }
 0x7a4   : > { %1885 = vst.msk [vmem:[%s5630_s28] sm:$0xff] %vm6712_vm12, %v5628_v36  ;;  %1890 = vadd.xlane.f32.xlu0 %v1889_v19  ;;  %v2017_v19 = vld [vmem:[#allocation7 + $0x100] sm:$0xff] }
 0x7a6   : > { %v1880_v29 = vpop.f32.mrf.mxu1 }
 0x7a7   : > { %v1881_v6 = vadd.f32 %v4049_v51, %v1880_v29  ;;  %v2019_v29 = vld [vmem:[#allocation7 + $0x110] sm:$0xff] }
 0x7a9   : > { %v5638_v41 = vadd.f32 %v1881_v6, %v5582_v46 }
 0x7ab   : > { %6714 = vst [vmem:[#allocation21_spill] sm:$0xff] %v5638_v41  ;;  %v1892_v1 = vsel %vm6716_vm3, %v5638_v41, 0.0 }
 0x7ac   : > { %1886 = vst.msk [vmem:[%s5630_s28 + $0x8] sm:$0xff] %vm6715_vm1, %v5638_v41  ;;  %1893 = vadd.xlane.f32.xlu1 %v1892_v1  ;;  %v2021_v1 = vld [vmem:[#allocation7 + $0x120] sm:$0xff] }
 0x817   : > { %v1891_v31 = vpop.xlane.xlu0 %1890 }
 0x818   : > { %v1895_v47 = vmul.f32 %v1891_v31, %v6707_v40  ;;  %v2023_v31 = vld [vmem:[#allocation7 + $0x130] sm:$0xff] }
 0x81a   : > { %v5647_v38 = vsub.f32 %v5628_v36, %v1895_v47  ;;  %v2025_v47 = vld [vmem:[#allocation7 + $0x140] sm:$0xff] }
 0x81c   : > { %v1899_v3 = vmul.f32 %v5647_v38, %v5647_v38 }
 0x81e   : > { %v1901_v23 = vsel %vm6717_vm6, %v1899_v3, 0.0 }
 0x81f   : > { %v1894_v46 = vpop.xlane.xlu1 %1893  ;;  %1902 = vadd.xlane.f32.xlu2 %v1901_v23  ;;  %v2027_v23 = vld [vmem:[#allocation7 + $0x150] sm:$0xff] }
 0x820   : > { %v1896_v35 = vmul.f32 %v1894_v46, %v6707_v40  ;;  %v2029_v46 = vld [vmem:[#allocation7 + $0x160] sm:$0xff] }
 0x822   : > { %v5654_v62 = vsub.f32 %v5638_v41, %v1896_v35  ;;  %v2031_v35 = vld [vmem:[#allocation7 + $0x170] sm:$0xff] }
 0x824   : > { %v1900_v20 = vmul.f32 %v5654_v62, %v5654_v62 }
 0x826   : > { %v1904_v56 = vsel %vm6718_vm7, %v1900_v20, 0.0  ;;  %vm6719_vm7 = vmmov %vm6717_vm6 }
 0x827   : > { %1905 = vadd.xlane.f32.xlu0 %v1904_v56  ;;  %v2033_v56 = vld [vmem:[#allocation7 + $0x180] sm:$0xff] }
 0x892   : > { %v1903_v61 = vpop.xlane.xlu2 %1902 }
 0x893   : > { %v1907_v48 = vmul.f32 %v1903_v61, %v6707_v40  ;;  %v2035_v61 = vld [vmem:[#allocation7 + $0x190] sm:$0xff] }
 0x895   : > { %v1909_v42 = vadd.f32 1e-05, %v1907_v48  ;;  %v2041_v48 = vld [vmem:[#allocation7 + $0x1c0] sm:$0xff] }
 0x897   : > { %4196 = vrsqrt.f32 %v1909_v42  ;;  %vm1917_vm13 = vweird.f32 %v1909_v42 }
 0x89a   : > { %v1906_v9 = vpop.xlane.xlu0 %1905 }
 0x89b   : > { %v1908_v43 = vmul.f32 %v1906_v9, %v6707_v40  ;;  %v2045_v9 = vld [vmem:[#allocation7 + $0x1e0] sm:$0xff] }
 0x89d   : > { %v4197_v58 = vpop.eup %4196  ;;  %v1910_v60 = vadd.f32 1e-05, %v1908_v43 }
 0x89e   : > { %v1912_v24 = vmul.f32 %v4197_v58, %v1909_v42  ;;  %vm1918_vm5 = vweird.f32 %v4197_v58 }
 0x89f   : > { %4198 = vrsqrt.f32 %v1910_v60  ;;  %vm1919_vm12 = vmor %vm1917_vm13, %vm1918_vm5  ;;  %vm1927_vm1 = vweird.f32 %v1910_v60 }
 0x8a0   : > { %v1913_v49 = vmul.f32 %v4197_v58, %v1912_v24  ;;  %v2028_v24 = vld [vmem:[#allocation7 + $0x158] sm:$0xff]  ;;  %vm6720_vm5 = vmmov %vm6717_vm6 }
 0x8a1   : > { %vm6721_vm13 = vmmov %vm6720_vm5 }
 0x8a2   : > { %v1914_v14 = vmul.f32 0.5, %v1913_v49 }
 0x8a4   : > { %v1915_v22 = vsub.f32 1.5, %v1914_v14  ;;  %v2030_v14 = vld [vmem:[#allocation7 + $0x168] sm:$0xff] }
 0x8a5   : > { %v4199_v15 = vpop.eup %4198 }
 0x8a6   : > { %v1916_v2 = vmul.f32 %v4197_v58, %v1915_v22  ;;  %v1922_v13 = vmul.f32 %v4199_v15, %v1910_v60  ;;  %vm1928_vm0 = vweird.f32 %v4199_v15  ;;  %v2022_v60 = vld [vmem:[#allocation7 + $0x128] sm:$0xff]  ;;  %v2032_v22 = vld [vmem:[#allocation7 + $0x178] sm:$0xff] }
 0x8a7   : > { %vm1929_vm3 = vmor %vm1927_vm1, %vm1928_vm0 }
 0x8a8   : > { %v1920_v4 = vsel %vm1919_vm12, %v4197_v58, %v1916_v2  ;;  %v1923_v34 = vmul.f32 %v4199_v15, %v1922_v13  ;;  %v2020_v58 = vld [vmem:[#allocation7 + $0x118] sm:$0xff]  ;;  %vm6722_vm12 = vmmov %vm6720_vm5 }
 0x8a9   : > { %v1931_v51 = vmul.f32 %v1920_v4, %v5647_v38  ;;  %v2039_v38 = vld [vmem:[#allocation7 + $0x1b0] sm:$0xff]  ;;  %vm6723_vm0 = vmmov %vm6720_vm5  ;;  %v2036_v4 = vld [vmem:[#allocation7 + $0x198] sm:$0xff] }
 0x8aa   : > { %v1924_v17 = vmul.f32 0.5, %v1923_v34  ;;  %vm6724_vm1 = vmmov %vm6723_vm0  ;;  %v2038_v34 = vld [vmem:[#allocation7 + $0x1a8] sm:$0xff] }
 0x8ab   : > { %v1934_v55 = vmul.f32 %v4050_v33, %v1931_v51 }
 0x8ac   : > { %v1925_v6 = vsub.f32 1.5, %v1924_v17 }
 0x8ad   : > { %v5716_v3 = vadd.f32 %v4051_v52, %v1934_v55 }
 0x8ae   : > { %v1926_v20 = vmul.f32 %v4199_v15, %v1925_v6  ;;  %v2042_v6 = vld [vmem:[#allocation7 + $0x1c8] sm:$0xff] }
 0x8af   : > { %v2049_v42 = vmul.f32 %v2017_v19, %v5716_v3  ;;  %v2051_v10 = vmul.f32 %v2019_v29, %v5716_v3  ;;  %v2053_v16 = vmul.f32 %v2021_v1, %v5716_v3  ;;  %v2055_v59 = vmul.f32 %v2023_v31, %v5716_v3  ;;  %v2040_v29 = vld [vmem:[#allocation7 + $0x1b8] sm:$0xff] }
 0x8b0   : > { %v1930_v26 = vsel %vm1929_vm3, %v4199_v15, %v1926_v20  ;;  %v2057_v54 = vmul.f32 %v2025_v47, %v5716_v3  ;;  %v2059_v28 = vmul.f32 %v2027_v23, %v5716_v3  ;;  %v2061_v63 = vmul.f32 %v2029_v46, %v5716_v3  ;;  %v2034_v15 = vld [vmem:[#allocation7 + $0x188] sm:$0xff]  ;;  %vm6725_vm3 = vmmov %vm6723_vm0  ;;  %v2044_v1 = vld [vmem:[#allocation7 + $0x1d8] sm:$0xff] }
 0x8b1   : > { %v1932_v43 = vmul.f32 %v1930_v26, %v5654_v62  ;;  %v2063_v44 = vmul.f32 %v2031_v35, %v5716_v3  ;;  %v2065_v5 = vmul.f32 %v2033_v56, %v5716_v3  ;;  %v2067_v18 = vmul.f32 %v2035_v61, %v5716_v3  ;;  %v2024_v62 = vld [vmem:[#allocation7 + $0x138] sm:$0xff]  ;;  %v2046_v46 = vld [vmem:[#allocation7 + $0x1e8] sm:$0xff] }
 0x8b2   : > { %v2069_v27 = vmul.f32 %v2037_v0, %v5716_v3  ;;  %v2071_v25 = vmul.f32 %v2039_v38, %v5716_v3  ;;  %v5732_v53 = vmul.f32 %v2041_v48, %v5716_v3  ;;  %v5735_v7 = vmul.f32 %v2043_v50, %v5716_v3 }
 0x8b3   : > { %v1935_v30 = vmul.f32 %v4050_v33, %v1932_v43  ;;  %v5738_v8 = vmul.f32 %v2045_v9, %v5716_v3  ;;  %v5741_v11 = vmul.f32 %v2047_v37, %v5716_v3  ;;  %v2081_v39 = vsel %vm6717_vm6, %v2049_v42, 0.0  ;;  %vm6726_vm6 = vmmov %vm6723_vm0 }
 0x8b4   : > { %v2090_v12 = vsel %vm6719_vm7, %v2051_v10, 0.0  ;;  %v2099_v57 = vsel %vm6720_vm5, %v2053_v16, 0.0  ;;  %v2108_v45 = vsel %vm6721_vm13, %v2055_v59, 0.0  ;;  %v2117_v2 = vsel %vm6722_vm12, %v2057_v54, 0.0  ;;  %vm6727_vm7 = vmmov %vm6723_vm0 }
 0x8b5   : > { %v5747_v49 = vadd.f32 %v4051_v52, %v1935_v30  ;;  %v2126_v13 = vsel %vm6723_vm0, %v2059_v28, 0.0  ;;  %v2135_v33 = vsel %vm6724_vm1, %v2061_v63, 0.0  ;;  %v2144_v51 = vsel %vm6725_vm3, %v2063_v44, 0.0  ;;  %vm6728_vm5 = vmmov %vm6723_vm0 }
 0x8b6   : > { %v5754_v17 = vsel %vm6726_vm6, %v2065_v5, 0.0  ;;  %v5757_v55 = vsel %vm6727_vm7, %v2067_v18, 0.0  ;;  %v5760_v52 = vsel %vm6728_vm5, %v2069_v27, 0.0  ;;  %vm6729_vm13 = vmmov %vm6723_vm0 }
 0x8b7   : > { %v1939_v19 = vpack.c.bf16 %v5747_v49, %v5716_v3  ;;  %v2050_v31 = vmul.f32 %v2018_v21, %v5747_v49  ;;  %v2052_v47 = vmul.f32 %v2020_v58, %v5747_v49  ;;  %v2054_v23 = vmul.f32 %v2022_v60, %v5747_v49  ;;  %vm6730_vm12 = vmmov %vm6723_vm0 }
 0x8b8   : > { %v2056_v35 = vmul.f32 %v2024_v62, %v5747_v49  ;;  %v2058_v20 = vmul.f32 %v2026_v32, %v5747_v49  ;;  %v2060_v56 = vmul.f32 %v2028_v24, %v5747_v49  ;;  %v5771_v61 = vsel %vm6729_vm13, %v2071_v25, 0.0  ;;  %vm6731_vm1 = vmmov %vm6723_vm0 }
 0x8b9   : > { %3721 = vmatmul.msk.bf16.vlgmr.msra.gmra.mxu2 %vm6730_vm12, %v1939_v19  ;;  %v2062_v0 = vmul.f32 %v2030_v14, %v5747_v49  ;;  %v2064_v38 = vmul.f32 %v2032_v22, %v5747_v49  ;;  %v5777_v48 = vmul.f32 %v2034_v15, %v5747_v49  ;;  %v5780_v42 = vmul.f32 %v2036_v4, %v5747_v49  ;;  %vm6732_vm3 = vmmov %vm6723_vm0 }
 0x8ba   : > { %v5783_v10 = vmul.f32 %v2038_v34, %v5747_v49  ;;  %v5786_v16 = vmul.f32 %v2040_v29, %v5747_v49  ;;  %v5789_v26 = vmul.f32 %v2042_v6, %v5747_v49  ;;  %v5792_v50 = vmul.f32 %v2044_v1, %v5747_v49  ;;  %vm6733_vm6 = vmmov %vm6723_vm0 }
 0x8bb   : > { %v5795_v9 = vmul.f32 %v2046_v46, %v5747_v49  ;;  %v2082_v37 = vsel %vm6723_vm0, %v2050_v31, 0.0  ;;  %v2091_v59 = vsel %vm6731_vm1, %v2052_v47, 0.0  ;;  %v2100_v54 = vsel %vm6732_vm3, %v2054_v23, 0.0  ;;  %vm6734_vm7 = vmmov %vm6723_vm0 }
 0x8bc   : > { %v2083_v28 = vadd.f32 %v2082_v37, %v2081_v39  ;;  %v2092_v43 = vadd.f32 %v2091_v59, %v2090_v12  ;;  %v2101_v63 = vadd.f32 %v2100_v54, %v2099_v57  ;;  %v2109_v44 = vsel %vm6733_vm6, %v2056_v35, 0.0  ;;  %vm6735_vm5 = vmmov %vm6723_vm0 }
 0x8bd   : > { %v2110_v5 = vadd.f32 %v2109_v44, %v2108_v45  ;;  %v2118_v21 = vsel %vm6734_vm7, %v2058_v20, 0.0  ;;  %v2127_v18 = vsel %vm6735_vm5, %v2060_v56, 0.0  ;;  %vm6736_vm13 = vmmov %vm6723_vm0  ;;  %v2048_v20 = vld [vmem:[#allocation7 + $0x1f8] sm:$0xff] }
 0x8be   : > { %v2136_v27 = vsel %vm6736_vm13, %v2062_v0, 0.0  ;;  %v2084_v25 = vrot.slane %v2083_v28, 4  ;;  %v2093_v30 = vrot.slane %v2092_v43, 4  ;;  %v2102_v58 = vrot.slane %v2101_v63, 4  ;;  %vm6737_vm12 = vmmov %vm6723_vm0 }
 0x8bf   : > { %v2119_v60 = vadd.f32 %v2118_v21, %v2117_v2  ;;  %v2111_v62 = vrot.slane %v2110_v5, 4  ;;  %v2128_v32 = vadd.f32 %v2127_v18, %v2126_v13  ;;  %v2137_v24 = vadd.f32 %v2136_v27, %v2135_v33  ;;  %vm6738_vm1 = vmmov %vm6723_vm0 }
 0x8c0   : > { %v2145_v39 = vsel %vm6737_vm12, %v2064_v38, 0.0  ;;  %v2085_v12 = vadd.f32 %v2084_v25, %v2083_v28  ;;  %v2094_v57 = vadd.f32 %v2093_v30, %v2092_v43  ;;  %v2103_v14 = vadd.f32 %v2102_v58, %v2101_v63  ;;  %vm6739_vm3 = vmmov %vm6723_vm0 }
 0x8c1   : > { %v2120_v22 = vrot.slane %v2119_v60, 4  ;;  %v2112_v45 = vadd.f32 %v2111_v62, %v2110_v5  ;;  %v2129_v15 = vrot.slane %v2128_v32, 4  ;;  %v2138_v4 = vrot.slane %v2137_v24, 4  ;;  %vm6740_vm6 = vmmov %vm6723_vm0 }
 0x8c2   : > { %v2146_v34 = vadd.f32 %v2145_v39, %v2144_v51  ;;  %v2086_v19 = vrot.slane %v2085_v12, 2  ;;  %v2095_v29 = vrot.slane %v2094_v57, 2  ;;  %v2104_v6 = vrot.slane %v2103_v14, 2  ;;  %vm6741_vm7 = vmmov %vm6723_vm0 }
 0x8c3   : > { %v2121_v1 = vadd.f32 %v2120_v22, %v2119_v60  ;;  %v2113_v31 = vrot.slane %v2112_v45, 2  ;;  %v2130_v47 = vadd.f32 %v2129_v15, %v2128_v32  ;;  %v2139_v2 = vadd.f32 %v2138_v4, %v2137_v24  ;;  %vm6742_vm5 = vmmov %vm6723_vm0 }
 0x8c4   : > { %v2147_v23 = vrot.slane %v2146_v34, 4  ;;  %v2087_v13 = vadd.f32 %v2086_v19, %v2085_v12  ;;  %v2096_v33 = vadd.f32 %v2095_v29, %v2094_v57  ;;  %v2105_v46 = vadd.f32 %v2104_v6, %v2103_v14  ;;  %vm6743_vm13 = vmmov %vm6723_vm0 }
 0x8c5   : > { %v2122_v35 = vrot.slane %v2121_v1, 2  ;;  %v2114_v56 = vadd.f32 %v2113_v31, %v2112_v45  ;;  %v2131_v0 = vrot.slane %v2130_v47, 2  ;;  %v2140_v38 = vrot.slane %v2139_v2, 2  ;;  %vm6744_vm12 = vmmov %vm6723_vm0 }
 0x8c6   : > { %v2148_v37 = vadd.f32 %v2147_v23, %v2146_v34  ;;  %v2088_v59 = vrot.slane %v2087_v13, 1  ;;  %v2097_v54 = vrot.slane %v2096_v33, 1  ;;  %v2106_v51 = vrot.slane %v2105_v46, 1 }
 0x8c7   : > { %v2123_v28 = vadd.f32 %v2122_v35, %v2121_v1  ;;  %v2115_v43 = vrot.slane %v2114_v56, 1  ;;  %v2132_v63 = vadd.f32 %v2131_v0, %v2130_v47  ;;  %v2141_v44 = vadd.f32 %v2140_v38, %v2139_v2 }
 0x8c8   : > { %v2149_v5 = vrot.slane %v2148_v37, 2  ;;  %v2080_v21 = vmul.f32 %v2048_v20, %v5747_v49  ;;  %v5806_v18 = vadd.f32 %v2088_v59, %v2087_v13  ;;  %v5808_v27 = vadd.f32 %v2097_v54, %v2096_v33 }
 0x8c9   : > { %v2124_v25 = vrot.slane %v2123_v28, 1  ;;  %v5810_v30 = vadd.f32 %v2106_v51, %v2105_v46  ;;  %v2133_v58 = vrot.slane %v2132_v63, 1  ;;  %v2142_v60 = vrot.slane %v2141_v44, 1 }
 0x8ca   : > { %v2150_v62 = vadd.f32 %v2149_v5, %v2148_v37  ;;  %v5812_v32 = vadd.f32 %v2115_v43, %v2114_v56  ;;  %v2154_v24 = vsel %vm6723_vm0, %v5777_v48, 0.0  ;;  %v2163_v39 = vsel %vm6738_vm1, %v5780_v42, 0.0  ;;  %vm6745_vm1 = vmmov %vm6723_vm0 }
 0x8cb   : > { %v2172_v12 = vsel %vm6739_vm3, %v5783_v10, 0.0  ;;  %v5820_v57 = vadd.f32 %v2124_v25, %v2123_v28  ;;  %v5822_v14 = vadd.f32 %v2133_v58, %v2132_v63  ;;  %v5824_v22 = vadd.f32 %v2142_v60, %v2141_v44  ;;  %vm6746_vm3 = vmmov %vm6723_vm0 }
 0x8cc   : > { %v2155_v45 = vadd.f32 %v2154_v24, %v5754_v17  ;;  %v2151_v15 = vrot.slane %v2150_v62, 1  ;;  %v2164_v4 = vadd.f32 %v2163_v39, %v5757_v55  ;;  %v2173_v34 = vadd.f32 %v2172_v12, %v5760_v52 }
 0x8cd   : > { %v2181_v48 = vsel %vm6740_vm6, %v5786_v16, 0.0  ;;  %v2189_v10 = vsel %vm6741_vm7, %v5732_v53, 0.0  ;;  %v2190_v29 = vsel %vm6742_vm5, %v5789_v26, 0.0  ;;  %v2198_v55 = vsel %vm6743_vm13, %v5735_v7, 0.0  ;;  %vm6747_vm6 = vmmov %vm6723_vm0 }
 0x8ce   : > { %v2156_v42 = vrot.slane %v2155_v45, 4  ;;  %v2182_v19 = vadd.f32 %v2181_v48, %v5771_v61  ;;  %v2165_v6 = vrot.slane %v2164_v4, 4  ;;  %v2174_v1 = vrot.slane %v2173_v34, 4 }
 0x8cf   : > { %v2191_v17 = vadd.f32 %v2190_v29, %v2189_v10  ;;  %v2199_v16 = vsel %vm6744_vm12, %v5792_v50, 0.0  ;;  %v2207_v61 = vsel %vm6723_vm0, %v5738_v8, 0.0  ;;  %v2208_v33 = vsel %vm6745_vm1, %v5795_v9, 0.0 }
 0x8d0   : > { %v2157_v31 = vadd.f32 %v2156_v42, %v2155_v45  ;;  %v2183_v52 = vrot.slane %v2182_v19, 4  ;;  %v2166_v47 = vadd.f32 %v2165_v6, %v2164_v4  ;;  %v2175_v2 = vadd.f32 %v2174_v1, %v2173_v34 }
 0x8d1   : > { %v2192_v53 = vrot.slane %v2191_v17, 4  ;;  %v2200_v23 = vadd.f32 %v2199_v16, %v2198_v55  ;;  %v2216_v7 = vsel %vm6746_vm3, %v5741_v11, 0.0  ;;  %v2209_v38 = vadd.f32 %v2208_v33, %v2207_v61  ;;  %v4052_v11 = vld [vmem:[%s6596_s8 + $0x7] ss:$0 sm:$0xff] }
 0x8d2   : > { %v2158_v13 = vrot.slane %v2157_v31, 2  ;;  %v2184_v26 = vadd.f32 %v2183_v52, %v2182_v19  ;;  %v2167_v46 = vrot.slane %v2166_v47, 2  ;;  %v2176_v35 = vrot.slane %v2175_v2, 2 }
 0x8d3   : > { %v2193_v20 = vadd.f32 %v2192_v53, %v2191_v17  ;;  %v2201_v56 = vrot.slane %v2200_v23, 4  ;;  %v2217_v8 = vsel %vm6747_vm6, %v2080_v21, 0.0  ;;  %v2210_v63 = vrot.slane %v2209_v38, 4 }
 0x8d4   : > { %v2159_v50 = vadd.f32 %v2158_v13, %v2157_v31  ;;  %v2185_v0 = vrot.slane %v2184_v26, 2  ;;  %v2168_v37 = vadd.f32 %v2167_v46, %v2166_v47  ;;  %v2177_v59 = vadd.f32 %v2176_v35, %v2175_v2 }
 0x8d5   : > { %v2194_v54 = vrot.slane %v2193_v20, 2  ;;  %v2202_v51 = vadd.f32 %v2201_v56, %v2200_v23  ;;  %v2218_v9 = vadd.f32 %v2217_v8, %v2216_v7  ;;  %v2152_v60 = vadd.f32 %v2151_v15, %v2150_v62 }
 0x8d6   : > { %v2160_v28 = vrot.slane %v2159_v50, 1  ;;  %v2186_v43 = vadd.f32 %v2185_v0, %v2184_v26  ;;  %v2169_v44 = vrot.slane %v2168_v37, 1  ;;  %v2178_v5 = vrot.slane %v2177_v59, 1 }
 0x8d7   : > { %v2195_v25 = vadd.f32 %v2194_v54, %v2193_v20  ;;  %v2203_v58 = vrot.slane %v2202_v51, 2  ;;  %v2211_v39 = vadd.f32 %v2210_v63, %v2209_v38  ;;  %v2219_v21 = vrot.slane %v2218_v9, 4 }
 0x8d8   : > { %v2187_v24 = vrot.slane %v2186_v43, 1  ;;  %v2161_v12 = vadd.f32 %v2160_v28, %v2159_v50  ;;  %v2170_v45 = vadd.f32 %v2169_v44, %v2168_v37  ;;  %v2179_v48 = vadd.f32 %v2178_v5, %v2177_v59 }
 0x8d9   : > { %v2196_v4 = vrot.slane %v2195_v25, 1  ;;  %v2204_v34 = vadd.f32 %v2203_v58, %v2202_v51  ;;  %v2212_v42 = vrot.slane %v2211_v39, 2  ;;  %v2220_v19 = vadd.f32 %v2219_v21, %v2218_v9 }
 0x8da   : > { %v2227_v10 = vmul.f32 %v4052_v11, %v5716_v3  ;;  %v2188_v29 = vadd.f32 %v2187_v24, %v2186_v43  ;;  %v2228_v17 = vmul.f32 %v4052_v11, %v5747_v49 }
 0x8db   : > { %v2197_v6 = vadd.f32 %v2196_v4, %v2195_v25  ;;  %v2205_v1 = vrot.slane %v2204_v34, 1  ;;  %v2213_v55 = vadd.f32 %v2212_v42, %v2211_v39  ;;  %v2221_v31 = vrot.slane %v2220_v19, 2 }
 0x8dc   : > { %v2231_v62 = vrot.slane %v2227_v10, 1  ;;  %v2232_v15 = vrot.slane %v2227_v10, 2  ;;  %v2233_v16 = vrot.slane %v2227_v10, 3  ;;  %v2234_v61 = vrot.slane %v2227_v10, 4 }
 0x8dd   : > { %v2206_v52 = vadd.f32 %v2205_v1, %v2204_v34  ;;  %v2235_v47 = vrot.slane %v2227_v10, 5  ;;  %v2214_v2 = vrot.slane %v2213_v55, 1  ;;  %v2222_v53 = vadd.f32 %v2221_v31, %v2220_v19 }
 0x8de   : > { %v2236_v23 = vrot.slane %v2227_v10, 6  ;;  %v2237_v13 = vrot.slane %v2227_v10, 7  ;;  %v2238_v26 = vrot.slane %v2228_v17, 1  ;;  %v2239_v33 = vrot.slane %v2228_v17, 2 }
 0x8df   : > { %v2240_v3 = vrot.slane %v2228_v17, 3  ;;  %v2241_v7 = vrot.slane %v2228_v17, 4  ;;  %v2215_v46 = vadd.f32 %v2214_v2, %v2213_v55  ;;  %v2223_v35 = vrot.slane %v2222_v53, 1 }
 0x8e0   : > { %v2242_v20 = vrot.slane %v2228_v17, 5  ;;  %v2243_v49 = vrot.slane %v2228_v17, 6  ;;  %v2244_v56 = vrot.slane %v2228_v17, 7  ;;  %v5853_v50 = vadd.f32 %v2227_v10, %v5806_v18 }
 0x8e1   : > { %v5856_v0 = vadd.f32 %v2231_v62, %v5808_v27  ;;  %v5859_v38 = vadd.f32 %v2232_v15, %v5810_v30  ;;  %v2224_v8 = vadd.f32 %v2223_v35, %v2222_v53  ;;  %v5862_v37 = vadd.f32 %v2233_v16, %v5812_v32 }
 0x8e2   : > { %v5865_v59 = vadd.f32 %v2234_v61, %v5820_v57  ;;  %v5868_v54 = vadd.f32 %v2235_v47, %v5822_v14  ;;  %v5871_v51 = vadd.f32 %v2236_v23, %v5824_v22  ;;  %v5873_v18 = vadd.f32 %v2237_v13, %v2152_v60 }
 0x8e3   : > { %v5875_v27 = vadd.f32 %v2228_v17, %v2161_v12  ;;  %v5877_v28 = vadd.f32 %v2238_v26, %v2170_v45  ;;  %v5879_v30 = vadd.f32 %v2239_v33, %v2179_v48  ;;  %v5881_v43 = vadd.f32 %v2240_v3, %v2188_v29 }
 0x8e4   : > { %v5883_v32 = vadd.f32 %v2241_v7, %v2197_v6  ;;  %v5885_v57 = vadd.f32 %v2242_v20, %v2206_v52  ;;  %v5887_v63 = vadd.f32 %v2243_v49, %v2215_v46  ;;  %v5889_v14 = vadd.f32 %v2244_v56, %v2224_v8 }
 0x8e5   : > { %v3724_v22 = vmul.f32 -1.442695, %v5853_v50  ;;  %v3725_v9 = vmul.f32 -1.442695, %v5856_v0  ;;  %v3726_v11 = vmul.f32 -1.442695, %v5859_v38 }
 0x8e6   : > { %6748 = vst [vmem:[#allocation22_spill] sm:$0xff] %v5887_v63  ;;  %v3727_v44 = vmul.f32 -1.442695, %v5862_v37  ;;  %v3728_v5 = vmul.f32 -1.442695, %v5865_v59 }
 0x8e7   : > { %6749 = vst [vmem:[#allocation23_spill] sm:$0xff] %v5889_v14  ;;  %4200 = vpow2.f32 %v3724_v22  ;;  %v3729_v25 = vmul.f32 -1.442695, %v5868_v54  ;;  %v3730_v58 = vmul.f32 -1.442695, %v5871_v51 }
 0x8e8   : > { %4202 = vpow2.f32 %v3725_v9  ;;  %v3731_v60 = vmul.f32 -1.442695, %v5873_v18  ;;  %v3732_v24 = vmul.f32 -1.442695, %v5875_v27  ;;  %v3733_v39 = vmul.f32 -1.442695, %v5877_v28 }
 0x8e9   : > { %4204 = vpow2.f32 %v3726_v11  ;;  %v3734_v12 = vmul.f32 -1.442695, %v5879_v30  ;;  %v3735_v4 = vmul.f32 -1.442695, %v5881_v43  ;;  %v3736_v48 = vmul.f32 -1.442695, %v5883_v32 }
 0x8ea   : > { %4206 = vpow2.f32 %v3727_v44  ;;  %v3737_v19 = vmul.f32 -1.442695, %v5885_v57  ;;  %v3738_v29 = vmul.f32 -1.442695, %v5887_v63  ;;  %v3739_v1 = vmul.f32 -1.442695, %v5889_v14 }
 0x8eb   : > { %4208 = vpow2.f32 %v3728_v5 }
 0x8ec   : > { %4210 = vpow2.f32 %v3729_v25 }
 0x8ed   : > { %v4201_v21 = vpop.eup %4200  ;;  %4212 = vpow2.f32 %v3730_v58 }
 0x8ee   : > { %v4203_v45 = vpop.eup %4202  ;;  %4214 = vpow2.f32 %v3731_v60  ;;  %v5907_v55 = vadd.f32 1.0, %v4201_v21 }
 0x8ef   : > { %v4205_v34 = vpop.eup %4204  ;;  %4216 = vpow2.f32 %v3732_v24  ;;  %v5909_v62 = vadd.f32 1.0, %v4203_v45 }
 0x8f0   : > { %v4207_v42 = vpop.eup %4206  ;;  %4218 = vpow2.f32 %v3733_v39  ;;  %v5911_v52 = vadd.f32 1.0, %v4205_v34  ;;  %v2352_v13 = vand.u32 2147483648, %v5907_v55  ;;  %v2350_v35 = vand.u32 2147483647, %v5907_v55 }
 0x8f1   : > { %v4209_v10 = vpop.eup %4208  ;;  %4220 = vpow2.f32 %v3734_v12  ;;  %v5913_v61 = vadd.f32 1.0, %v4207_v42  ;;  %v2367_v3 = vand.u32 2147483648, %v5909_v62  ;;  %v2365_v8 = vand.u32 2147483647, %v5909_v62 }
 0x8f2   : > { %v4211_v6 = vpop.eup %4210  ;;  %4222 = vpow2.f32 %v3735_v4  ;;  %v5915_v2 = vadd.f32 1.0, %v4209_v10  ;;  %v2382_v20 = vand.u32 2147483648, %v5911_v52  ;;  %v5930_v56 = vor.u32 1.1754944e-38, %v2352_v13 }
 0x8f3   : > { %v4213_v17 = vpop.eup %4212  ;;  %4224 = vpow2.f32 %v3736_v48  ;;  %v5918_v23 = vadd.f32 1.0, %v4211_v6  ;;  %v2397_v22 = vand.u32 2147483648, %v5913_v61  ;;  %v5939_v44 = vor.u32 1.1754944e-38, %v2367_v3 }
 0x8f4   : > { %v4215_v31 = vpop.eup %4214  ;;  %4226 = vpow2.f32 %v3737_v19  ;;  %v5922_v33 = vadd.f32 1.0, %v4213_v17  ;;  %v2380_v5 = vand.u32 2147483647, %v5911_v52  ;;  %v2395_v39 = vand.u32 2147483647, %v5913_v61 }
 0x8f5   : > { %v4217_v15 = vpop.eup %4216  ;;  %4228 = vpow2.f32 %v3738_v29  ;;  %v5937_v11 = vadd.f32 1.0, %v4215_v31  ;;  %vm2346_vm7 = vweird.f32 %v5907_v55  ;;  %v5961_v34 = vor.u32 1.1754944e-38, %v2382_v20 }
 0x8f6   : > { %v4219_v16 = vpop.eup %4218  ;;  %4230 = vpow2.f32 %v3739_v1  ;;  %v5945_v58 = vadd.f32 1.0, %v4217_v15  ;;  %vm2361_vm5 = vweird.f32 %v5909_v62  ;;  %v5970_v29 = vor.u32 1.1754944e-38, %v2397_v22 }
 0x8f7   : > { %v4221_v47 = vpop.eup %4220  ;;  %4232 = vrcp.f32 %v5907_v55  ;;  %v5947_v60 = vadd.f32 1.0, %v4219_v16  ;;  %vm2376_vm13 = vweird.f32 %v5911_v52  ;;  %v2410_v15 = vand.u32 2147483647, %v5915_v2 }
 0x8f8   : > { %v4223_v53 = vpop.eup %4222  ;;  %4234 = vrcp.f32 %v5909_v62  ;;  %v5954_v12 = vadd.f32 1.0, %v4221_v47  ;;  %vm2391_vm12 = vweird.f32 %v5913_v61  ;;  %vm2406_vm0 = vweird.f32 %v5915_v2 }
 0x8f9   : > { %v4225_v26 = vpop.eup %4224  ;;  %4236 = vrcp.f32 %v5911_v52  ;;  %v5956_v45 = vadd.f32 1.0, %v4223_v53  ;;  %vm6003_vm6 = vcmp.eq.f32.partialorder %v2350_v35, 8.507059e+37  ;;  %vm6007_vm11 = vcmp.eq.f32.partialorder %v2365_v8, 8.507059e+37 }
 0x8fa   : > { %v4227_v7 = vpop.eup %4226  ;;  %4238 = vrcp.f32 %v5913_v61  ;;  %v5965_v42 = vadd.f32 1.0, %v4225_v26  ;;  %v2412_v26 = vand.u32 2147483648, %v5915_v2  ;;  %vm6013_vm9 = vcmp.eq.f32.partialorder %v2380_v5, 8.507059e+37 }
 0x8fb   : > { %v4229_v46 = vpop.eup %4228  ;;  %4240 = vrcp.f32 %v5915_v2  ;;  %v5974_v1 = vadd.f32 1.0, %v4227_v7  ;;  %vm6021_vm4 = vcmp.eq.f32.partialorder %v2395_v39, 8.507059e+37  ;;  %vm6025_vm2 = vcmp.eq.f32.partialorder %v2410_v15, 8.507059e+37 }
 0x8fc   : > { %v4231_v49 = vpop.eup %4230  ;;  %4242 = vrcp.f32 %v5918_v23  ;;  %v5982_v47 = vadd.f32 1.0, %v4229_v46  ;;  %v2413_v36 = vor.u32 1.1754944e-38, %v2412_v26  ;;  %v2427_v39 = vand.u32 2147483648, %v5918_v23 }
 0x8fd   : > { %v5935_v9 = vpop.eup %4232  ;;  %4244 = vrcp.f32 %v5922_v33  ;;  %v6000_v41 = vadd.f32 1.0, %v4231_v49  ;;  %v2455_v63 = vand.u32 2147483647, %v5937_v11 }
 0x8fe   : > { %v5943_v25 = vpop.eup %4234  ;;  %v2342_v24 = vmul.f32 %v5935_v9, %v5907_v55  ;;  %vm2347_vm3 = vweird.f32 %v5935_v9  ;;  %4246 = vrcp.f32 %v5937_v11 }
 0x8ff   : > { %v5952_v21 = vpop.eup %4236  ;;  %v2357_v4 = vmul.f32 %v5943_v25, %v5909_v62  ;;  %vm2362_vm10 = vweird.f32 %v5943_v25  ;;  %vm6034_vm15 = vmor %vm2346_vm7, %vm2347_vm3  ;;  %4248 = vrcp.f32 %v5945_v58 }
 0x900   : > { %v5963_v48 = vpop.eup %4238  ;;  %v2343_v19 = vsub.f32 1.0, %v2342_v24  ;;  %v2372_v10 = vmul.f32 %v5952_v21, %v5911_v52  ;;  %vm2377_vm14 = vweird.f32 %v5952_v21  ;;  %vm6046_vm1 = vmor %vm2361_vm5, %vm2362_vm10  ;;  %4250 = vrcp.f32 %v5947_v60 }
 0x901   : > { %v5972_v6 = vpop.eup %4240  ;;  %v2358_v17 = vsub.f32 1.0, %v2357_v4  ;;  %v2387_v31 = vmul.f32 %v5963_v48, %v5913_v61  ;;  %vm2392_vm8 = vweird.f32 %v5963_v48  ;;  %vm6056_vm3 = vmor %vm2376_vm13, %vm2377_vm14  ;;  %4252 = vrcp.f32 %v5954_v12 }
 0x902   : > { %v5980_v16 = vpop.eup %4242  ;;  %v2373_v53 = vsub.f32 1.0, %v2372_v10  ;;  %v2402_v13 = vmul.f32 %v5972_v6, %v5915_v2  ;;  %v2344_v7 = vmul.f32 %v5935_v9, %v2343_v19  ;;  %v2425_v10 = vand.u32 2147483647, %v5918_v23  ;;  %vm6074_vm14 = vmor %vm2391_vm12, %vm2392_vm8 }
 0x903   : > { %v5988_v3 = vpop.eup %4244  ;;  %v2359_v20 = vmul.f32 %v5943_v25, %v2358_v17  ;;  %v2388_v22 = vsub.f32 1.0, %v2387_v31  ;;  %v2417_v46 = vmul.f32 %v5980_v16, %v5918_v23  ;;  %vm2407_vm7 = vweird.f32 %v5972_v6 }
 0x904   : > { %v2374_v24 = vmul.f32 %v5952_v21, %v2373_v53  ;;  %v2403_v4 = vsub.f32 1.0, %v2402_v13  ;;  %v2432_v40 = vmul.f32 %v5988_v3, %v5922_v33  ;;  %v2345_v14 = vadd.f32 %v5935_v9, %v2344_v7  ;;  %v6140_v17 = vpop.eup %4246 }
 0x905   : > { %v2389_v31 = vmul.f32 %v5963_v48, %v2388_v22  ;;  %v2418_v53 = vsub.f32 1.0, %v2417_v46  ;;  %v2360_v8 = vadd.f32 %v5943_v25, %v2359_v20  ;;  %v2440_v46 = vand.u32 2147483647, %v5922_v33 }
 0x906   : > { %v2404_v49 = vmul.f32 %v5972_v6, %v2403_v4  ;;  %v2433_v35 = vsub.f32 1.0, %v2432_v40  ;;  %v2375_v26 = vadd.f32 %v5952_v21, %v2374_v24  ;;  %vm2422_vm10 = vweird.f32 %v5980_v16 }
 0x907   : > { %v2419_v5 = vmul.f32 %v5980_v16, %v2418_v53  ;;  %v2390_v55 = vadd.f32 %v5963_v48, %v2389_v31  ;;  %v2442_v4 = vand.u32 2147483648, %v5922_v33  ;;  %v2349_v31 = vsel %vm6034_vm15, %v5935_v9, %v2345_v14  ;;  %vm6085_vm15 = vmor %vm2406_vm0, %vm2407_vm7 }
 0x908   : > { %v2434_v15 = vmul.f32 %v5988_v3, %v2433_v35  ;;  %v2405_v20 = vadd.f32 %v5972_v6, %v2404_v49  ;;  %v2364_v52 = vsel %vm6046_vm1, %v5943_v25, %v2360_v8  ;;  %vm2437_vm5 = vweird.f32 %v5988_v3 }
 0x909   : > { %v2420_v62 = vadd.f32 %v5980_v16, %v2419_v5  ;;  %v2379_v14 = vsel %vm6056_vm3, %v5952_v21, %v2375_v26  ;;  %vm6089_vm13 = vcmp.eq.f32.partialorder %v2425_v10, 8.507059e+37  ;;  %vm2436_vm8 = vweird.f32 %v5922_v33 }
 0x90a   : > { %v2435_v49 = vadd.f32 %v5988_v3, %v2434_v15  ;;  %v2394_v25 = vsel %vm6074_vm14, %v5963_v48, %v2390_v55  ;;  %v2409_v2 = vsel %vm6085_vm15, %v5972_v6, %v2405_v20  ;;  %vm6772_vm12 = vweird.f32 %v5918_v23  ;;  %vm6126_vm7 = vmor %vm2436_vm8, %vm2437_vm5 }
 0x90b   : > { %vm6105_vm0 = vmor %vm6772_vm12, %vm2422_vm10  ;;  %v2428_v10 = vor.u32 1.1754944e-38, %v2427_v39  ;;  %vm6109_vm1 = vcmp.eq.f32.partialorder %v2440_v46, 8.507059e+37  ;;  %v6116_v48 = vsel %vm6003_vm6, %v5930_v56, %v2349_v31  ;;  %v6121_v6 = vsel %vm6007_vm11, %v5939_v44, %v2364_v52 }
 0x90c   : > { %v2424_v23 = vsel %vm6105_vm0, %v5980_v16, %v2420_v62  ;;  %v6134_v56 = vsel %vm6013_vm9, %v5961_v34, %v2379_v14  ;;  %v2439_v44 = vsel %vm6126_vm7, %v5988_v3, %v2435_v49  ;;  %v2443_v19 = vor.u32 1.1754944e-38, %v2442_v4 }
 0x90d   : > { %v6145_v16 = vsel %vm6021_vm4, %v5970_v29, %v2394_v25  ;;  %v6149_v8 = vsel %vm6025_vm2, %v2413_v36, %v2409_v2  ;;  %v2457_v34 = vand.u32 2147483648, %v5937_v11  ;;  %v2472_v13 = vand.u32 2147483648, %v5945_v58  ;;  %v6161_v29 = vpop.eup %4248 }
 0x90e   : > { %v6155_v3 = vsel %vm6089_vm13, %v2428_v10, %v2424_v23  ;;  %v2447_v5 = vmul.f32 %v6140_v17, %v5937_v11  ;;  %vm2451_vm9 = vweird.f32 %v5937_v11  ;;  %v6165_v36 = vsel %vm6109_vm1, %v2443_v19, %v2439_v44  ;;  %v6174_v7 = vpop.eup %4250 }
 0x90f   : > { %v2487_v22 = vand.u32 2147483648, %v5947_v60  ;;  %v2502_v40 = vand.u32 2147483648, %v5954_v12  ;;  %4254 = vrcp.f32 %v5956_v45  ;;  %v2462_v39 = vmul.f32 %v6161_v29, %v5945_v58  ;;  %v6180_v24 = vpop.eup %4252 }
 0x910   : > { %v2448_v26 = vsub.f32 1.0, %v2447_v5  ;;  %vm2466_vm2 = vweird.f32 %v5945_v58  ;;  %v2470_v15 = vand.u32 2147483647, %v5945_v58  ;;  %v2458_v55 = vor.u32 1.1754944e-38, %v2457_v34 }
 0x911   : > { %v6176_v20 = vor.u32 1.1754944e-38, %v2472_v13  ;;  %v2485_v46 = vand.u32 2147483647, %v5947_v60  ;;  %4256 = vrcp.f32 %v5965_v42  ;;  %vm6183_vm4 = vcmp.eq.f32.partialorder %v2455_v63, 8.507059e+37 }
 0x912   : > { %v2449_v62 = vmul.f32 %v6140_v17, %v2448_v26  ;;  %v2463_v31 = vsub.f32 1.0, %v2462_v39  ;;  %v2477_v52 = vmul.f32 %v6174_v7, %v5947_v60  ;;  %vm2481_vm11 = vweird.f32 %v5947_v60 }
 0x913   : > { %v2500_v53 = vand.u32 2147483647, %v5954_v12  ;;  %vm2452_vm6 = vweird.f32 %v6140_v17  ;;  %v6192_v49 = vor.u32 1.1754944e-38, %v2487_v22  ;;  %v2492_v14 = vmul.f32 %v6180_v24, %v5954_v12 }
 0x914   : > { %vm2496_vm3 = vweird.f32 %v5954_v12  ;;  %v6197_v9 = vor.u32 1.1754944e-38, %v2502_v40  ;;  %v2450_v61 = vadd.f32 %v6140_v17, %v2449_v62  ;;  %v2464_v25 = vmul.f32 %v6161_v29, %v2463_v31  ;;  %vm6225_vm13 = vmor %vm2451_vm9, %vm2452_vm6 }
 0x915   : > { %vm2467_vm10 = vweird.f32 %v6161_v29  ;;  %vm6202_vm14 = vcmp.eq.f32.partialorder %v2470_v15, 8.507059e+37  ;;  %v2478_v21 = vsub.f32 1.0, %v2477_v52  ;;  %vm2511_vm5 = vweird.f32 %v5956_v45  ;;  %v6207_v10 = vpop.eup %4254 }
 0x916   : > { %v2493_v33 = vsub.f32 1.0, %v2492_v14  ;;  %v2515_v23 = vand.u32 2147483647, %v5956_v45  ;;  %v2517_v35 = vand.u32 2147483648, %v5956_v45  ;;  %4258 = vrcp.f32 %v5974_v1  ;;  %vm6246_vm7 = vmor %vm2466_vm2, %vm2467_vm10 }
 0x917   : > { %v2465_v44 = vadd.f32 %v6161_v29, %v2464_v25  ;;  %v2479_v19 = vmul.f32 %v6174_v7, %v2478_v21  ;;  %vm6214_vm15 = vcmp.eq.f32.partialorder %v2485_v46, 8.507059e+37  ;;  %v2507_v13 = vmul.f32 %v6207_v10, %v5956_v45  ;;  %v4257_v63 = vpop.eup %4256 }
 0x918   : > { %v2530_v5 = vand.u32 2147483647, %v5965_v42  ;;  %vm2482_vm8 = vweird.f32 %v6174_v7  ;;  %v2494_v40 = vmul.f32 %v6180_v24, %v2493_v33  ;;  %vm2497_vm12 = vweird.f32 %v6180_v24 }
 0x919   : > { %vm6232_vm0 = vcmp.eq.f32.partialorder %v2500_v53, 8.507059e+37  ;;  %vm2526_vm1 = vweird.f32 %v5965_v42  ;;  %v2454_v11 = vsel %vm6225_vm13, %v6140_v17, %v2450_v61  ;;  %v2480_v39 = vadd.f32 %v6174_v7, %v2479_v19  ;;  %vm6272_vm13 = vmor %vm2481_vm11, %vm2482_vm8 }
 0x91a   : > { %v2508_v15 = vsub.f32 1.0, %v2507_v13  ;;  %v2522_v46 = vmul.f32 %v4257_v63, %v5965_v42  ;;  %v2495_v31 = vadd.f32 %v6180_v24, %v2494_v40  ;;  %vm6251_vm9 = vcmp.eq.f32.partialorder %v2515_v23, 8.507059e+37 }
 0x91b   : > { %v2518_v17 = vor.u32 1.1754944e-38, %v2517_v35  ;;  %v2532_v53 = vand.u32 2147483648, %v5965_v42  ;;  %v2469_v14 = vsel %vm6246_vm7, %v6161_v29, %v2465_v44  ;;  %vm2512_vm2 = vweird.f32 %v6207_v10 }
 0x91c   : > { %v2509_v61 = vmul.f32 %v6207_v10, %v2508_v15  ;;  %v2523_v58 = vsub.f32 1.0, %v2522_v46  ;;  %vm6261_vm6 = vcmp.eq.f32.partialorder %v2530_v5, 8.507059e+37  ;;  %vm2541_vm10 = vweird.f32 %v5974_v1  ;;  %v4259_v21 = vpop.eup %4258  ;;  %vm6301_vm11 = vmor %vm2511_vm5, %vm2512_vm2 }
 0x91d   : > { %v2459_v33 = vsel %vm6183_vm4, %v2458_v55, %v2454_v11  ;;  %vm2527_vm7 = vweird.f32 %v4257_v63  ;;  %v2545_v23 = vand.u32 2147483647, %v5974_v1  ;;  %4260 = vrcp.f32 %v5982_v47  ;;  %vm6285_vm4 = vmor %vm2496_vm3, %vm2497_vm12 }
 0x91e   : > { %v2484_v35 = vsel %vm6272_vm13, %v6174_v7, %v2480_v39  ;;  %v2510_v60 = vadd.f32 %v6207_v10, %v2509_v61  ;;  %v2524_v4 = vmul.f32 %v4257_v63, %v2523_v58  ;;  %v2537_v44 = vmul.f32 %v4259_v21, %v5974_v1  ;;  %vm6316_vm3 = vmor %vm2526_vm1, %vm2527_vm7 }
 0x91f   : > { %v2474_v19 = vsel %vm6202_vm14, %v6176_v20, %v2469_v14  ;;  %v2499_v7 = vsel %vm6285_vm4, %v6180_v24, %v2495_v31  ;;  %v2533_v13 = vor.u32 1.1754944e-38, %v2532_v53  ;;  %v2547_v5 = vand.u32 2147483648, %v5974_v1 }
 0x920   : > { %v2514_v2 = vsel %vm6301_vm11, %v6207_v10, %v2510_v60  ;;  %v2525_v20 = vadd.f32 %v4257_v63, %v2524_v4  ;;  %v2538_v22 = vsub.f32 1.0, %v2537_v44  ;;  %v2560_v40 = vand.u32 2147483647, %v5982_v47 }
 0x921   : > { %v2489_v24 = vsel %vm6214_vm15, %v6192_v49, %v2484_v35  ;;  %vm6320_vm14 = vcmp.eq.f32.partialorder %v2545_v23, 8.507059e+37  ;;  %v2562_v10 = vand.u32 2147483648, %v5982_v47  ;;  %4262 = vrcp.f32 %v6000_v41 }
 0x922   : > { %v2504_v34 = vsel %vm6232_vm0, %v6197_v9, %v2499_v7  ;;  %v2529_v49 = vsel %vm6316_vm3, %v4257_v63, %v2525_v20  ;;  %v2539_v42 = vmul.f32 %v4259_v21, %v2538_v22  ;;  %vm2542_vm5 = vweird.f32 %v4259_v21  ;;  %v6809_v7 = vld [vmem:[#allocation22_spill] sm:$0xff] }
 0x923   : > { %v4261_v39 = vpop.eup %4260  ;;  %v2519_v15 = vsel %vm6251_vm9, %v2518_v17, %v2514_v2  ;;  %v2548_v46 = vor.u32 1.1754944e-38, %v2547_v5  ;;  %vm2556_vm15 = vweird.f32 %v5982_v47  ;;  %v2577_v62 = vand.u32 2147483648, %v6000_v41  ;;  %vm2543_vm12 = vmor %vm2541_vm10, %vm2542_vm5 }
 0x924   : > { %v2540_v31 = vadd.f32 %v4259_v21, %v2539_v42  ;;  %v2552_v53 = vmul.f32 %v4261_v39, %v5982_v47  ;;  %vm6336_vm8 = vcmp.eq.f32.partialorder %v2560_v40, 8.507059e+37  ;;  %v2575_v9 = vand.u32 2147483647, %v6000_v41 }
 0x925   : > { %v2534_v63 = vsel %vm6261_vm6, %v2533_v13, %v2529_v49  ;;  %v2563_v52 = vor.u32 1.1754944e-38, %v2562_v10  ;;  %v2581_v17 = vmul.f32 %v6116_v48, %v5853_v50  ;;  %v2582_v14 = vmul.f32 %v6121_v6, %v5856_v0  ;;  %v6810_v49 = vld [vmem:[#allocation23_spill] sm:$0xff] }
 0x926   : > { %v2544_v61 = vsel %vm2543_vm12, %v4259_v21, %v2540_v31  ;;  %v2553_v58 = vsub.f32 1.0, %v2552_v53  ;;  %vm2557_vm0 = vweird.f32 %v4261_v39  ;;  %vm2571_vm1 = vweird.f32 %v6000_v41 }
 0x927   : > { %v2578_v29 = vor.u32 1.1754944e-38, %v2577_v62  ;;  %v4263_v23 = vpop.eup %4262  ;;  %v2583_v25 = vmul.f32 %v6134_v56, %v5859_v38  ;;  %v2584_v1 = vmul.f32 %v6145_v16, %v5862_v37  ;;  %v2585_v35 = vmul.f32 %v6149_v8, %v5865_v59  ;;  %vm2558_vm6 = vmor %vm2556_vm15, %vm2557_vm0 }
 0x928   : > { %v2586_v50 = vmul.f32 %v6155_v3, %v5868_v54  ;;  %v2549_v0 = vsel %vm6320_vm14, %v2548_v46, %v2544_v61  ;;  %v2554_v48 = vmul.f32 %v4261_v39, %v2553_v58  ;;  %v2567_v6 = vmul.f32 %v4263_v23, %v6000_v41 }
 0x929   : > { %vm6361_vm9 = vcmp.eq.f32.partialorder %v2575_v9, 8.507059e+37  ;;  %v2587_v38 = vmul.f32 %v6165_v36, %v5871_v51  ;;  %vm2572_vm2 = vweird.f32 %v4263_v23  ;;  %v2588_v37 = vmul.f32 %v2459_v33, %v5873_v18 }
 0x92a   : > { %v2589_v59 = vmul.f32 %v2474_v19, %v5875_v27  ;;  %v2590_v54 = vmul.f32 %v2489_v24, %v5877_v28  ;;  %v2555_v56 = vadd.f32 %v4261_v39, %v2554_v48  ;;  %v2568_v16 = vsub.f32 1.0, %v2567_v6  ;;  %vm2573_vm10 = vmor %vm2571_vm1, %vm2572_vm2 }
 0x92b   : > { %v2591_v8 = vmul.f32 %v2504_v34, %v5879_v30  ;;  %v2592_v3 = vmul.f32 %v2519_v15, %v5881_v43  ;;  %v2593_v55 = vmul.f32 %v2534_v63, %v5883_v32  ;;  %v2594_v51 = vmul.f32 %v2549_v0, %v5885_v57 }
 0x92c   : > { %v2597_v36 = vpack.c.bf16 %v2581_v17, %v2581_v17  ;;  %v2598_v18 = vpack.c.bf16 %v2582_v14, %v2582_v14  ;;  %v2559_v33 = vsel %vm2558_vm6, %v4261_v39, %v2555_v56  ;;  %v2569_v27 = vmul.f32 %v4263_v23, %v2568_v16 }
 0x92d   : > { %v2599_v60 = vpack.c.bf16 %v2583_v25, %v2583_v25  ;;  %v2600_v28 = vpack.c.bf16 %v2584_v1, %v2584_v1  ;;  %v2564_v4 = vsel %vm6336_vm8, %v2563_v52, %v2559_v33  ;;  %v2601_v30 = vpack.c.bf16 %v2585_v35, %v2585_v35 }
 0x92e   : > { %v2602_v44 = vpack.c.bf16 %v2586_v50, %v2586_v50  ;;  %v2603_v43 = vpack.c.bf16 %v2587_v38, %v2587_v38  ;;  %v2570_v19 = vadd.f32 %v4263_v23, %v2569_v27  ;;  %v2595_v47 = vmul.f32 %v2564_v4, %v6809_v7 }
 0x92f   : > { %v2606_v12 = vpack.c.bf16 %v2590_v54, %v2590_v54  ;;  %v2607_v13 = vpack.c.bf16 %v2591_v8, %v2591_v8  ;;  %v2604_v32 = vpack.c.bf16 %v2588_v37, %v2588_v37  ;;  %v2605_v57 = vpack.c.bf16 %v2589_v59, %v2589_v59  ;;  %v4053_v8 = vld [vmem:[%s6596_s8 + $0x5] ss:$0 sm:$0xff] }
 0x930   : > { %v2608_v5 = vpack.c.bf16 %v2592_v3, %v2592_v3  ;;  %v2650_v2 = vunpack.c.l.b16 %v2598_v18  ;;  %v2574_v20 = vsel %vm2573_vm10, %v4263_v23, %v2570_v19  ;;  %v2609_v22 = vpack.c.bf16 %v2593_v55, %v2593_v55 }
 0x931   : > { %v2610_v40 = vpack.c.bf16 %v2594_v51, %v2594_v51  ;;  %v2651_v24 = vunpack.c.l.b16 %v2599_v60  ;;  %v2579_v45 = vsel %vm6361_vm9, %v2578_v29, %v2574_v20  ;;  %v2611_v11 = vpack.c.bf16 %v2595_v47, %v2595_v47 }
 0x932   : > { %v2649_v10 = vunpack.c.l.b16 %v2597_v36  ;;  %v2652_v34 = vunpack.c.l.b16 %v2600_v28  ;;  %v2596_v42 = vmul.f32 %v2579_v45, %v6810_v49  ;;  %v2653_v39 = vunpack.c.l.b16 %v2601_v30 }
 0x933   : > { %v2658_v15 = vunpack.c.l.b16 %v2606_v12  ;;  %v2659_v41 = vunpack.c.l.b16 %v2607_v13  ;;  %v2654_v46 = vunpack.c.l.b16 %v2602_v44  ;;  %v2655_v62 = vunpack.c.l.b16 %v2603_v43 }
 0x934   : > { %v2656_v31 = vunpack.c.l.b16 %v2604_v32  ;;  %v2665_v53 = vrot.slane %v2650_v2, 7  ;;  %v2612_v26 = vpack.c.bf16 %v2596_v42, %v2596_v42  ;;  %v2657_v9 = vunpack.c.l.b16 %v2605_v57 }
 0x935   : > { %v2660_v63 = vunpack.c.l.b16 %v2608_v5  ;;  %v2667_v52 = vrot.slane %v2651_v24, 6  ;;  %v2661_v17 = vunpack.c.l.b16 %v2609_v22  ;;  %v2662_v14 = vunpack.c.l.b16 %v2610_v40 }
 0x936   : > { %vm6811_vm13 = vcmask 1041409   ;;  %v2669_v58 = vrot.slane %v2652_v34, 5  ;;  %vm6812_vm7 = vcmask 1042434   ;;  %v2671_v23 = vrot.slane %v2653_v39, 4 }
 0x937   : > { %v2666_v61 = vsel %vm6811_vm13, %v2665_v53, %v2649_v10  ;;  %v2679_v25 = vrot.slane %v2658_v15, 7  ;;  %v2681_v1 = vrot.slane %v2659_v41, 6  ;;  %v2663_v35 = vunpack.c.l.b16 %v2611_v11  ;;  %vm6815_vm3 = vmmov %vm6811_vm13 }
 0x938   : > { %v2668_v29 = vsel %vm6812_vm7, %v2667_v52, %v2666_v61  ;;  %vm6813_vm4 = vcmask 1043459   ;;  %v2673_v0 = vrot.slane %v2654_v46, 3  ;;  %v2675_v48 = vrot.slane %v2655_v62, 2  ;;  %vm6817_vm5 = vmmov %vm6812_vm7 }
 0x939   : > { %v2670_v50 = vsel %vm6813_vm4, %v2669_v58, %v2668_v29  ;;  %v2664_v6 = vunpack.c.l.b16 %v2612_v26  ;;  %vm6814_vm11 = vcmask 1044484   ;;  %v2680_v38 = vsel %vm6815_vm3, %v2679_v25, %v2657_v9  ;;  %vm6819_vm8 = vmmov %vm6813_vm4 }
 0x93a   : > { %v2672_v21 = vsel %vm6814_vm11, %v2671_v23, %v2670_v50  ;;  %v2683_v37 = vrot.slane %v2660_v63, 5  ;;  %vm6816_vm14 = vcmask 1045509   ;;  %v2677_v54 = vrot.slane %v2656_v31, 1  ;;  %vm6821_vm0 = vmmov %vm6814_vm11 }
 0x93b   : > { %v2674_v59 = vsel %vm6816_vm14, %v2673_v0, %v2672_v21  ;;  %v2682_v56 = vsel %vm6817_vm5, %v2681_v1, %v2680_v38  ;;  %v2685_v16 = vrot.slane %v2661_v17, 4  ;;  %vm6818_vm15 = vcmask 1046534   ;;  %vm6822_vm1 = vmmov %vm6816_vm14 }
 0x93c   : > { %v2676_v3 = vsel %vm6818_vm15, %v2675_v48, %v2674_v59  ;;  %v2684_v55 = vsel %vm6819_vm8, %v2683_v37, %v2682_v56  ;;  %v2687_v51 = vrot.slane %v2662_v14, 3  ;;  %vm6820_vm12 = vcmask 1047559   ;;  %v1971_v28 = vpop.f32.mrf.mxu2  ;;  %vm6823_vm9 = vmmov %vm6818_vm15  ;;  %v6410_v14 = vld [vmem:[%s6596_s8 + $0x9] ss:$2 sm:$0xf] }
 0x93d   : > { %v2678_v36 = vsel %vm6820_vm12, %v2677_v54, %v2676_v3  ;;  %v2686_v18 = vsel %vm6821_vm0, %v2685_v16, %v2684_v55  ;;  %v2689_v33 = vrot.slane %v2663_v35, 2  ;;  %v2691_v60 = vrot.slane %v2664_v6, 1  ;;  %vm6824_vm2 = vmmov %vm6820_vm12 }
 0x93e   : > { %v2688_v27 = vsel %vm6822_vm1, %v2687_v51, %v2686_v18  ;;  %v1972_v30 = vadd.f32 %v4053_v8, %v1971_v28  ;;  %vm6825_vm6 = vcmask 261120   ;;  %v2628_v61 = vperm.slane %v6410_v14, 3 }
 0x93f   : > { %v2690_v4 = vsel %vm6823_vm9, %v2689_v33, %v2688_v27  ;;  %vm6826_vm10 = vmmov %vm6825_vm6 }
 0x940   : > { %v2692_v44 = vsel %vm6824_vm2, %v2691_v60, %v2690_v4  ;;  %v3722_v19 = vmul.f32 -1.442695, %v1972_v30  ;;  %vm6827_vm13 = vmmov %vm6825_vm6  ;;  %v4056_v4 = vld [vmem:[%s6596_s8 + $0x15] ss:$0 sm:$0xff] }
 0x941   : > { %v2693_v43 = vpack.c.b16 %v2692_v44, %v2678_v36  ;;  %vm6828_vm7 = vmmov %vm6825_vm6 }
 0x942   : > { %4264 = vpow2.f32 %v3722_v19 }
 0x943   : > { %3781 = vmatmul.msk.bf16.vlgmr.msra.gmra.mxu3 %vm6825_vm6, %v2693_v43  ;;  %3782 = vmatmul.msk.bf16.vlgmr.msrb.gmra.mxu0 %vm6826_vm10, %v2693_v43 }
 0x944   : > { %3783 = vmatmul.msk.bf16.vlgmr.msrb.gmra.mxu1 %vm6827_vm13, %v2693_v43  ;;  %3784 = vmatmul.msk.bf16.vlgmr.msrb.gmra.mxu2 %vm6828_vm7, %v2693_v43  ;;  %v1973_v7 = vpop.f32.mrf.mxu2 }
 0x945   : > { %v1974_v47 = vadd.f32 %v4053_v8, %v1973_v7  ;;  %v4054_v7 = vld [vmem:[%s6596_s8 + $0x11] ss:$0 sm:$0xff] }
 0x947   : > { %v3723_v13 = vmul.f32 -1.442695, %v1974_v47 }
 0x948   : > { %v4265_v12 = vpop.eup %4264 }
 0x949   : > { %v1982_v32 = vadd.f32 1.0, %v4265_v12  ;;  %4266 = vpow2.f32 %v3723_v13  ;;  %v4057_v12 = vld [vmem:[%s6596_s8 + $0x17] ss:$0 sm:$0xff] }
 0x94b   : > { %4268 = vrcp.f32 %v1982_v32  ;;  %v1995_v10 = vand.u32 2147483648, %v1982_v32  ;;  %vm1989_vm11 = vweird.f32 %v1982_v32  ;;  %v1993_v34 = vand.u32 2147483647, %v1982_v32 }
 0x94d   : > { %v1996_v46 = vor.u32 1.1754944e-38, %v1995_v10  ;;  %vm1994_vm5 = vcmp.eq.f32.partialorder %v1993_v34, 8.507059e+37 }
 0x94f   : > { %v4267_v57 = vpop.eup %4266 }
 0x950   : > { %v1983_v2 = vadd.f32 1.0, %v4267_v57 }
 0x951   : > { %v4269_v5 = vpop.eup %4268 }
 0x952   : > { %v1985_v20 = vmul.f32 %v4269_v5, %v1982_v32  ;;  %4270 = vrcp.f32 %v1983_v2  ;;  %vm1990_vm4 = vweird.f32 %v4269_v5  ;;  %v2010_v42 = vand.u32 2147483648, %v1983_v2 }
 0x953   : > { %vm1991_vm3 = vmor %vm1989_vm11, %vm1990_vm4  ;;  %v2008_v41 = vand.u32 2147483647, %v1983_v2  ;;  %vm2004_vm15 = vweird.f32 %v1983_v2  ;;  %vm6829_vm4 = vcmask 130048  }
 0x954   : > { %v1986_v22 = vsub.f32 1.0, %v1985_v20  ;;  %v2011_v53 = vor.u32 1.1754944e-38, %v2010_v42  ;;  %vm6830_vm11 = vmmov %vm6829_vm4 }
 0x955   : > { %vm2009_vm12 = vcmp.eq.f32.partialorder %v2008_v41, 8.507059e+37 }
 0x956   : > { %v1987_v40 = vmul.f32 %v4269_v5, %v1986_v22 }
 0x958   : > { %v4271_v24 = vpop.eup %4270  ;;  %v1988_v45 = vadd.f32 %v4269_v5, %v1987_v40 }
 0x959   : > { %v2000_v11 = vmul.f32 %v4271_v24, %v1983_v2  ;;  %vm2005_vm14 = vweird.f32 %v4271_v24  ;;  %v4055_v2 = vld [vmem:[%s6596_s8 + $0x13] ss:$0 sm:$0xff] }
 0x95a   : > { %v1992_v39 = vsel %vm1991_vm3, %v4269_v5, %v1988_v45  ;;  %vm2006_vm8 = vmor %vm2004_vm15, %vm2005_vm14 }
 0x95b   : > { %v2001_v49 = vsub.f32 1.0, %v2000_v11  ;;  %v1997_v31 = vsel %vm1994_vm5, %v1996_v46, %v1992_v39  ;;  %vm6831_vm3 = vmmov %vm6829_vm4 }
 0x95c   : > { %v2014_v63 = vmul.f32 %v1997_v31, %v1972_v30  ;;  %vm6832_vm14 = vmmov %vm6831_vm3 }
 0x95d   : > { %v2002_v15 = vmul.f32 %v4271_v24, %v2001_v49  ;;  %vm6833_vm5 = vmmov %vm6831_vm3 }
 0x95e   : > { %vm6834_vm15 = vmmov %vm6831_vm3 }
 0x95f   : > { %v2003_v62 = vadd.f32 %v4271_v24, %v2002_v15  ;;  %v3928_v15 = vld [vmem:[#allocation8 + $0x8] sm:$0xff]  }
 0x960   : > { %v3929_v41 = vunpack.c.l.bf16 %v3928_v15 }
 0x961   : > { %v2007_v26 = vsel %vm2006_vm8, %v4271_v24, %v2003_v62  ;;  %vm6835_vm8 = vmmov %vm6831_vm3 }
 0x962   : > { %v2012_v9 = vsel %vm2009_vm12, %v2011_v53, %v2007_v26  ;;  %v3930_v53 = vunpack.c.h.bf16 %v3928_v15 }
 0x963   : > { %v2015_v52 = vmul.f32 %v2012_v9, %v1974_v47 }
 0x965   : > { %v2979_v17 = vpack.c.bf16 %v2015_v52, %v2014_v63 }
 0x967   : > { %2990 = vmatpush.bf16.msra.mxu0 %v2979_v17 }
 0x9c6   : > { %v2746_v42 = vpop.f32.mrf.mxu3 }
 0x9c7   : > { %v2788_v58 = vpop.f32.mrf.mxu2 }
 0x9c8   : > { %v2789_v29 = vadd.f32 %v2788_v58, %v2628_v61 }
 0x9ca   : > { %v3789_v23 = vmul.f32 -1.442695, %v2789_v29 }
 0x9cc   : > { %4272 = vpow2.f32 %v3789_v23 }
 0x9ce   : > { %v2748_v39 = vpop.f32.mrf.mxu3 }
 0x9cf   : > { %v2790_v25 = vpop.f32.mrf.mxu2 }
 0x9d0   : > { %v2791_v1 = vadd.f32 %v2790_v25, %v2628_v61 }
 0x9d2   : > { %v4273_v35 = vpop.eup %4272  ;;  %v3790_v0 = vmul.f32 -1.442695, %v2791_v1 }
 0x9d3   : > { %v2877_v50 = vadd.f32 1.0, %v4273_v35 }
 0x9d5   : > { %4274 = vrcp.f32 %v2877_v50  ;;  %v2890_v56 = vand.u32 2147483648, %v2877_v50  ;;  %vm2884_vm1 = vweird.f32 %v2877_v50  ;;  %v2888_v16 = vand.u32 2147483647, %v2877_v50 }
 0x9d6   : > { %4276 = vpow2.f32 %v3790_v0  ;;  %v3913_v0 = vld [vmem:[%s6591_s3 + $0x38] sm:$0xff] }
 0x9d7   : > { %v2891_v51 = vor.u32 1.1754944e-38, %v2890_v56  ;;  %vm2889_vm2 = vcmp.eq.f32.partialorder %v2888_v16, 8.507059e+37  ;;  %3040 = vmatpush.bf16.msra.mxu1 %v3913_v0  ;;  %v2625_v56 = vperm.slane %v6410_v14, 0 }
 0x9d9   : > { %v2747_v16 = vadd.f32 %v2746_v42, %v2625_v56 }
 0x9db   : > { %v4275_v48 = vpop.eup %4274 }
 0x9dc   : > { %v2880_v6 = vmul.f32 %v4275_v48, %v2877_v50  ;;  %v4277_v21 = vpop.eup %4276  ;;  %vm2885_vm0 = vweird.f32 %v4275_v48 }
 0x9dd   : > { %v2878_v37 = vadd.f32 1.0, %v4277_v21  ;;  %vm2886_vm9 = vmor %vm2884_vm1, %vm2885_vm0 }
 0x9de   : > { %v2881_v38 = vsub.f32 1.0, %v2880_v6 }
 0x9df   : > { %4278 = vrcp.f32 %v2878_v37  ;;  %v2905_v33 = vand.u32 2147483648, %v2878_v37  ;;  %v2903_v60 = vand.u32 2147483647, %v2878_v37  ;;  %vm2899_vm10 = vweird.f32 %v2878_v37 }
 0x9e0   : > { %v2882_v59 = vmul.f32 %v4275_v48, %v2881_v38 }
 0x9e1   : > { %v2906_v44 = vor.u32 1.1754944e-38, %v2905_v33  ;;  %vm2904_vm7 = vcmp.eq.f32.partialorder %v2903_v60, 8.507059e+37 }
 0x9e2   : > { %v2883_v54 = vadd.f32 %v4275_v48, %v2882_v59 }
 0x9e4   : > { %v2887_v3 = vsel %vm2886_vm9, %v4275_v48, %v2883_v54 }
 0x9e5   : > { %v4279_v8 = vpop.eup %4278  ;;  %v2892_v18 = vsel %vm2889_vm2, %v2891_v51, %v2887_v3  ;;  %v3785_v3 = vmul.f32 -1.442695, %v2747_v16 }
 0x9e6   : > { %v2895_v55 = vmul.f32 %v4279_v8, %v2878_v37  ;;  %vm2900_vm6 = vweird.f32 %v4279_v8  ;;  %v2909_v28 = vmul.f32 %v2892_v18, %v2789_v29  ;;  %v3912_v18 = vld [vmem:[%s6591_s3 + $0x30] sm:$0xff] }
 0x9e7   : > { %vm2901_vm13 = vmor %vm2899_vm10, %vm2900_vm6  ;;  %3041 = vmatpush.bf16.msra.mxu1 %v3912_v18 }
 0x9e8   : > { %v2896_v36 = vsub.f32 1.0, %v2895_v55  ;;  %v2921_v47 = vmul.f32 %v4056_v4, %v2909_v28  ;;  %v2913_v5 = vmul.f32 %v4054_v7, %v2909_v28  ;;  %v3910_v28 = vld [vmem:[%s6591_s3 + $0x20] sm:$0xff] }
 0x9ea   : > { %v2897_v27 = vmul.f32 %v4279_v8, %v2896_v36  ;;  %v2925_v20 = vadd.f32 %v4057_v12, %v2921_v47  ;;  %v2917_v45 = vadd.f32 %v4055_v2, %v2913_v5 }
 0x9ec   : > { %v2898_v30 = vadd.f32 %v4279_v8, %v2897_v27  ;;  %v2927_v34 = vmul.f32 0.25, %v2917_v45  ;;  %v3911_v27 = vld [vmem:[%s6591_s3 + $0x28] sm:$0xff] }
 0x9ed   : > { %3042 = vmatpush.bf16.msra.mxu1 %v3911_v27 }
 0x9ee   : > { %v2902_v43 = vsel %vm2901_vm13, %v4279_v8, %v2898_v30  ;;  %v2749_v8 = vadd.f32 %v2748_v39, %v2625_v56 }
 0x9ef   : > { %v2907_v19 = vsel %vm2904_vm7, %v2906_v44, %v2902_v43  ;;  %v2760_v44 = vpop.f32.mrf.mxu0  ;;  %vm6836_vm7 = vcmask 523264  }
 0x9f0   : > { %v2910_v13 = vmul.f32 %v2907_v19, %v2791_v1  ;;  %v3786_v55 = vmul.f32 -1.442695, %v2749_v8 }
 0x9f1   : > { %3043 = vmatpush.bf16.msra.mxu1 %v3910_v28 }
 0x9f2   : > { %v2914_v32 = vmul.f32 %v4054_v7, %v2910_v13  ;;  %v2922_v57 = vmul.f32 %v4056_v4, %v2910_v13 }
 0x9f4   : > { %v2926_v22 = vadd.f32 %v4057_v12, %v2922_v57  ;;  %v2918_v40 = vadd.f32 %v4055_v2, %v2914_v32 }
 0x9f6   : > { %v2930_v24 = vpack.c.bf16 %v2926_v22, %v2925_v20  ;;  %v2928_v10 = vmul.f32 0.25, %v2918_v40 }
 0x9f7   : > { %v2762_v12 = vpop.f32.mrf.mxu0 }
 0x9f8   : > { %v2940_v11 = vsel %vm6829_vm4, %v2930_v24, 0  ;;  %v2929_v49 = vpack.c.bf16 %v2928_v10, %v2927_v34 }
 0x9f9   : > { %2949 = vmatpush.bf16.xpose.msrb.mxu3 %v2940_v11 }
 0xa00   : > { %3791 = vmatmul.msk.bf16.vlgmr.msrb.gmra.mxu3 %vm6830_vm11, %v2929_v49 }
 0xa83   : > { %v2951_v46 = vpop.f32.mrf.mxu3 }
 0xa84   : > { %v2952_v62 = vadd.f32 %v3929_v41, %v2951_v46 }
 0xa86   : > { %v2956_v31 = vsel %vm6831_vm3, %v2952_v62, -inf }
 0xa87   : > { %2957 = vmax.xlane.f32.xlu1 %v2956_v31 }
 0xa8b   : > { %v2953_v26 = vpop.f32.mrf.mxu3 }
 0xa8c   : > { %v2954_v9 = vadd.f32 %v3930_v53, %v2953_v26  ;;  %v2774_v53 = vpop.f32.mrf.mxu1  ;;  %v2626_v26 = vperm.slane %v6410_v14, 1 }
 0xa8e   : > { %v2959_v63 = vsel %vm6832_vm14, %v2954_v9, -inf }
 0xa8f   : > { %2960 = vmax.xlane.f32.xlu2 %v2959_v63 }
 0xafa   : > { %v2958_v52 = vpop.xlane.xlu1 %2957 }
 0xafb   : > { %v2962_v17 = vsub.f32 %v2952_v62, %v2958_v52  ;;  %v2776_v52 = vpop.f32.mrf.mxu1 }
 0xafd   : > { %v2964_v61 = vmul.f32 1.442695, %v2962_v17  ;;  %v2763_v17 = vadd.f32 %v2762_v12, %v2626_v26 }
 0xaff   : > { %4280 = vpow2.f32 %v2964_v61  ;;  %v2627_v61 = vperm.slane %v6410_v14, 2 }
 0xb02   : > { %v2961_v58 = vpop.xlane.xlu2 %2960 }
 0xb03   : > { %v2963_v29 = vsub.f32 %v2954_v9, %v2961_v58  ;;  %v2761_v9 = vadd.f32 %v2760_v44, %v2626_v26  ;;  %v3788_v58 = vmul.f32 -1.442695, %v2763_v17 }
 0xb05   : > { %v4281_v23 = vpop.eup %4280  ;;  %v2966_v25 = vmul.f32 1.442695, %v2963_v29  ;;  %v3787_v63 = vmul.f32 -1.442695, %v2761_v9  ;;  %v2775_v29 = vadd.f32 %v2774_v53, %v2627_v61 }
 0xb06   : > { %v2968_v1 = vsel %vm6833_vm5, %v4281_v23, 0.0 }
 0xb07   : > { %4282 = vpow2.f32 %v2966_v25  ;;  %2969 = vadd.xlane.f32.xlu0 %v2968_v1 }
 0xb0d   : > { %v4283_v35 = vpop.eup %4282 }
 0xb0e   : > { %v2971_v50 = vsel %vm6834_vm15, %v4283_v35, 0.0 }
 0xb0f   : > { %2972 = vadd.xlane.f32.xlu1 %v2971_v50 }
 0xb7a   : > { %v2970_v48 = vpop.xlane.xlu0 %2969 }
 0xb7b   : > { %4284 = vrcp.f32 %v2970_v48 }
 0xb81   : > { %v4285_v21 = vpop.eup %4284 }
 0xb82   : > { %v2973_v6 = vpop.xlane.xlu1 %2972  ;;  %v2976_v37 = vmul.f32 %v4285_v21, %v4281_v23  ;;  %v4058_v23 = vld [vmem:[%s6596_s8 + $0x19] ss:$0 sm:$0xff]  ;;  %v2777_v21 = vadd.f32 %v2776_v52, %v2627_v61 }
 0xb83   : > { %4286 = vrcp.f32 %v2973_v6 }
 0xb84   : > { %4288 = vpow2.f32 %v3785_v3 }
 0xb85   : > { %4290 = vpow2.f32 %v3786_v55 }
 0xb89   : > { %v4287_v38 = vpop.eup %4286 }
 0xb8a   : > { %v2977_v59 = vmul.f32 %v4287_v38, %v4283_v35  ;;  %v4289_v51 = vpop.eup %4288 }
 0xb8b   : > { %v4291_v36 = vpop.eup %4290  ;;  %v2799_v33 = vadd.f32 1.0, %v4289_v51 }
 0xb8c   : > { %v2978_v54 = vpack.c.bf16 %v2977_v59, %v2976_v37  ;;  %v2800_v60 = vadd.f32 1.0, %v4291_v36 }
 0xb8d   : > { %4292 = vrcp.f32 %v2799_v33  ;;  %vm2806_vm1 = vweird.f32 %v2799_v33  ;;  %v2812_v2 = vand.u32 2147483648, %v2799_v33  ;;  %v2810_v22 = vand.u32 2147483647, %v2799_v33 }
 0xb8e   : > { %3792 = vmatmul.msk.bf16.vlgmr.msra.gmra.mxu0 %vm6835_vm8, %v2978_v54  ;;  %4294 = vrcp.f32 %v2800_v60  ;;  %v2827_v20 = vand.u32 2147483648, %v2800_v60  ;;  %vm2821_vm2 = vweird.f32 %v2800_v60  ;;  %v2825_v40 = vand.u32 2147483647, %v2800_v60 }
 0xb8f   : > { %v2813_v10 = vor.u32 1.1754944e-38, %v2812_v2  ;;  %vm2811_vm10 = vcmp.eq.f32.partialorder %v2810_v22, 8.507059e+37  ;;  %4296 = vpow2.f32 %v3787_v63 }
 0xb90   : > { %v2828_v34 = vor.u32 1.1754944e-38, %v2827_v20  ;;  %vm2826_vm13 = vcmp.eq.f32.partialorder %v2825_v40, 8.507059e+37  ;;  %4298 = vpow2.f32 %v3788_v58 }
 0xb93   : > { %v4293_v4 = vpop.eup %4292 }
 0xb94   : > { %v4295_v30 = vpop.eup %4294  ;;  %v2802_v43 = vmul.f32 %v4293_v4, %v2799_v33  ;;  %vm2807_vm12 = vweird.f32 %v4293_v4 }
 0xb95   : > { %v2817_v19 = vmul.f32 %v4295_v30, %v2800_v60  ;;  %vm2822_vm0 = vweird.f32 %v4295_v30  ;;  %vm2808_vm9 = vmor %vm2806_vm1, %vm2807_vm12  ;;  %v4297_v1 = vpop.eup %4296 }
 0xb96   : > { %v2803_v7 = vsub.f32 1.0, %v2802_v43  ;;  %vm2823_vm6 = vmor %vm2821_vm2, %vm2822_vm0  ;;  %v2839_v0 = vadd.f32 1.0, %v4297_v1  ;;  %v4299_v6 = vpop.eup %4298 }
 0xb97   : > { %v2818_v47 = vsub.f32 1.0, %v2817_v19  ;;  %v6451_v14 = vadd.f32 1.0, %v4299_v6  ;;  %v6841_v6 = vld [vmem:[#allocation19_spill] sm:$0xff] }
 0xb98   : > { %v2804_v13 = vmul.f32 %v4293_v4, %v2803_v7  ;;  %vm2846_vm15 = vweird.f32 %v2839_v0 }
 0xb99   : > { %v2819_v32 = vmul.f32 %v4295_v30, %v2818_v47  ;;  %v2867_v53 = vand.u32 2147483648, %v6451_v14  ;;  %v2865_v63 = vand.u32 2147483647, %v6451_v14 }
 0xb9a   : > { %v2805_v57 = vadd.f32 %v4293_v4, %v2804_v13 }
 0xb9b   : > { %v2820_v5 = vadd.f32 %v4295_v30, %v2819_v32  ;;  %v2850_v32 = vand.u32 2147483647, %v2839_v0 }
 0xb9c   : > { %v2809_v45 = vsel %vm2808_vm9, %v4293_v4, %v2805_v57  ;;  %v2852_v57 = vand.u32 2147483648, %v2839_v0 }
 0xb9d   : > { %v2824_v11 = vsel %vm2823_vm6, %v4295_v30, %v2820_v5  ;;  %v2814_v49 = vsel %vm2811_vm10, %v2813_v10, %v2809_v45  ;;  %vm2851_vm12 = vcmp.eq.f32.partialorder %v2850_v32, 8.507059e+37  ;;  %vm2861_vm6 = vweird.f32 %v6451_v14 }
 0xb9e   : > { %v2829_v42 = vsel %vm2826_vm13, %v2828_v34, %v2824_v11  ;;  %v2831_v39 = vmul.f32 %v2814_v49, %v2747_v16  ;;  %v2853_v10 = vor.u32 1.1754944e-38, %v2852_v57  ;;  %v6837_v34 = vld [vmem:[#allocation20_spill] sm:$0xff] }
 0xb9f   : > { %v2832_v15 = vmul.f32 %v2829_v42, %v2749_v8 }
 0xc0b   : > { %v2992_v24 = vpop.f32.mrf.mxu0 }
 0xc0c   : > { %v2997_v46 = vmul.f32 %v2992_v24, %v2831_v39 }
 0xc13   : > { %v2994_v41 = vpop.f32.mrf.mxu0 }
 0xc14   : > { %v2998_v62 = vmul.f32 %v2994_v41, %v2832_v15 }
 0xc16   : > { %v2999_v31 = vpack.c.bf16 %v2998_v62, %v2997_v46 }
 0xc18   : > { %3817 = vmatmul.msk.bf16.vlgmr.msra.gmra.mxu1 %vm6836_vm7, %v2999_v31  ;;  %vm6838_vm7 = vcmask 261120  }
 0xc95   : > { %v3045_v25 = vpop.f32.mrf.mxu1 }
 0xc96   : > { %v3050_v35 = vadd.f32 %v3045_v25, %v2775_v29  ;;  %v2868_v29 = vor.u32 1.1754944e-38, %v2867_v53  ;;  %v3916_v53 = vld [vmem:[%s6593_s5 + $0x20] sm:$0xff] }
 0xc98   : > { %v3054_v50 = vadd.f32 %v4058_v23, %v3050_v35 }
 0xc9a   : > { %v3818_v48 = vmul.f32 -1.442695, %v3054_v50 }
 0xc9c   : > { %4300 = vpow2.f32 %v3818_v48 }
 0xc9d   : > { %4302 = vrcp.f32 %v2839_v0  ;;  %v3047_v38 = vpop.f32.mrf.mxu1 }
 0xc9e   : > { %v3051_v37 = vadd.f32 %v3047_v38, %v2777_v21  ;;  %4304 = vrcp.f32 %v6451_v14 }
 0xca0   : > { %v6453_v59 = vadd.f32 %v4058_v23, %v3051_v37  ;;  %v6839_v23 = vld [vmem:[#allocation21_spill] sm:$0xff] }
 0xca2   : > { %v4301_v54 = vpop.eup %4300  ;;  %v3819_v56 = vmul.f32 -1.442695, %v6453_v59 }
 0xca3   : > { %v4303_v16 = vpop.eup %4302  ;;  %v3062_v8 = vadd.f32 1.0, %v4301_v54 }
 0xca4   : > { %4306 = vpow2.f32 %v3819_v56  ;;  %v2842_v3 = vmul.f32 %v4303_v16, %v2839_v0  ;;  %v6457_v55 = vpop.eup %4304  ;;  %vm2847_vm11 = vweird.f32 %v4303_v16 }
 0xca5   : > { %4308 = vrcp.f32 %v3062_v8  ;;  %v2857_v60 = vmul.f32 %v6457_v55, %v6451_v14  ;;  %v3075_v30 = vand.u32 2147483648, %v3062_v8  ;;  %v3073_v43 = vand.u32 2147483647, %v3062_v8  ;;  %vm2848_vm8 = vmor %vm2846_vm15, %vm2847_vm11 }
 0xca6   : > { %v2843_v36 = vsub.f32 1.0, %v2842_v3  ;;  %vm3069_vm3 = vweird.f32 %v3062_v8  ;;  %vm2862_vm1 = vweird.f32 %v6457_v55  ;;  %vm6840_vm11 = vmmov %vm6838_vm7  ;;  %v3915_v3 = vld [vmem:[%s6592_s4 + $0x18] sm:$0xff] }
 0xca7   : > { %v2858_v19 = vsub.f32 1.0, %v2857_v60  ;;  %v3076_v13 = vor.u32 1.1754944e-38, %v3075_v30  ;;  %vm3074_vm5 = vcmp.eq.f32.partialorder %v3073_v43, 8.507059e+37  ;;  %vm2863_vm13 = vmor %vm2861_vm6, %vm2862_vm1  ;;  %3183 = vmatpush.bf16.msra.mxu2 %v3915_v3 }
 0xca8   : > { %v2844_v4 = vmul.f32 %v4303_v16, %v2843_v36 }
 0xca9   : > { %v2859_v45 = vmul.f32 %v6457_v55, %v2858_v19 }
 0xcaa   : > { %v4307_v51 = vpop.eup %4306  ;;  %v2845_v47 = vadd.f32 %v4303_v16, %v2844_v4 }
 0xcab   : > { %v4309_v18 = vpop.eup %4308  ;;  %v3063_v33 = vadd.f32 1.0, %v4307_v51  ;;  %v2860_v62 = vadd.f32 %v6457_v55, %v2859_v45 }
 0xcac   : > { %v3065_v27 = vmul.f32 %v4309_v18, %v3062_v8  ;;  %vm3070_vm4 = vweird.f32 %v4309_v18  ;;  %v2849_v24 = vsel %vm2848_vm8, %v4303_v16, %v2845_v47 }
 0xcad   : > { %4310 = vrcp.f32 %v3063_v33  ;;  %vm3071_vm14 = vmor %vm3069_vm3, %vm3070_vm4  ;;  %v3090_v11 = vand.u32 2147483648, %v3063_v33  ;;  %v3088_v39 = vand.u32 2147483647, %v3063_v33  ;;  %v2854_v15 = vsel %vm2851_vm12, %v2853_v10, %v2849_v24 }
 0xcae   : > { %v3066_v28 = vsub.f32 1.0, %v3065_v27  ;;  %vm3084_vm9 = vweird.f32 %v3063_v33  ;;  %v2864_v58 = vsel %vm2863_vm13, %v6457_v55, %v2860_v62  ;;  %vm2866_vm4 = vcmp.eq.f32.partialorder %v2865_v63, 8.507059e+37  ;;  %vm6842_vm3 = vmmov %vm6838_vm7 }
 0xcaf   : > { %v3091_v31 = vor.u32 1.1754944e-38, %v3090_v11  ;;  %vm3089_vm10 = vcmp.eq.f32.partialorder %v3088_v39, 8.507059e+37  ;;  %v2869_v1 = vsel %vm2866_vm4, %v2868_v29, %v2864_v58  ;;  %v4061_v39 = vld [vmem:[%s6596_s8 + $0x1f] ss:$0 sm:$0xff] }
 0xcb0   : > { %v3067_v44 = vmul.f32 %v4309_v18, %v3066_v28 }
 0xcb2   : > { %v3068_v7 = vadd.f32 %v4309_v18, %v3067_v44 }
 0xcb3   : > { %v4311_v12 = vpop.eup %4310 }
 0xcb4   : > { %v3072_v5 = vsel %vm3071_vm14, %v4309_v18, %v3068_v7  ;;  %v3080_v2 = vmul.f32 %v4311_v12, %v3063_v33  ;;  %vm3085_vm0 = vweird.f32 %v4311_v12  ;;  %vm6843_vm14 = vmmov %vm6842_vm3  ;;  %v3914_v18 = vld [vmem:[%s6592_s4 + $0x10] sm:$0xff] }
 0xcb5   : > { %v3077_v20 = vsel %vm3074_vm5, %v3076_v13, %v3072_v5  ;;  %vm3086_vm2 = vmor %vm3084_vm9, %vm3085_vm0  ;;  %3184 = vmatpush.bf16.msra.mxu2 %v3914_v18  ;;  %v4059_v5 = vld [vmem:[%s6596_s8 + $0x1b] ss:$0 sm:$0xff] }
 0xcb6   : > { %v3094_v22 = vmul.f32 %v3077_v20, %v3054_v50  ;;  %v3081_v40 = vsub.f32 1.0, %v3080_v2  ;;  %vm6844_vm9 = vmmov %vm6842_vm3 }
 0xcb8   : > { %v3096_v49 = vsub.f32 %v3094_v22, %v6837_v34  ;;  %v3082_v42 = vmul.f32 %v4311_v12, %v3081_v40  ;;  %v4060_v40 = vld [vmem:[%s6596_s8 + $0x1d] ss:$0 sm:$0xff] }
 0xcba   : > { %v3083_v41 = vadd.f32 %v4311_v12, %v3082_v42  ;;  %v3098_v46 = vmul.f32 %v3096_v49, %v2854_v15  ;;  %v3919_v42 = vld [vmem:[%s6593_s5 + $0x38] sm:$0xff]  ;;  %v3918_v15 = vld [vmem:[%s6593_s5 + $0x30] sm:$0xff] }
 0xcbb   : > { %3274 = vmatpush.bf16.msra.mxu3 %v3919_v42 }
 0xcbc   : > { %v3087_v26 = vsel %vm3086_vm2, %v4311_v12, %v3083_v41  ;;  %v6469_v9 = vadd.f32 %v3098_v46, %v6837_v34 }
 0xcbd   : > { %v3092_v52 = vsel %vm3089_vm10, %v3091_v31, %v3087_v26  ;;  %v3917_v31 = vld [vmem:[%s6593_s5 + $0x28] sm:$0xff] }
 0xcbe   : > { %v3095_v17 = vmul.f32 %v3092_v52, %v6453_v59  ;;  %v3104_v61 = vsel %vm6838_vm7, %v6469_v9, 0.0 }
 0xcbf   : > { %3105 = vadd.xlane.f32.xlu2 %v3104_v61  ;;  %3275 = vmatpush.bf16.msra.mxu3 %v3918_v15 }
 0xcc0   : > { %v3097_v25 = vsub.f32 %v3095_v17, %v6839_v23 }
 0xcc2   : > { %v3099_v35 = vmul.f32 %v3097_v25, %v2869_v1 }
 0xcc3   : > { %3276 = vmatpush.bf16.msra.mxu3 %v3917_v31 }
 0xcc4   : > { %v6478_v50 = vadd.f32 %v3099_v35, %v6839_v23 }
 0xcc6   : > { %v3107_v0 = vsel %vm6840_vm11, %v6478_v50, 0.0 }
 0xcc7   : > { %3108 = vadd.xlane.f32.xlu0 %v3107_v0  ;;  %3277 = vmatpush.bf16.msra.mxu3 %v3916_v53 }
 0xd32   : > { %v3106_v48 = vpop.xlane.xlu2 %3105 }
 0xd33   : > { %v3110_v21 = vmul.f32 %v3106_v48, %v6841_v6 }
 0xd35   : > { %v3112_v38 = vsub.f32 %v6469_v9, %v3110_v21 }
 0xd37   : > { %v3114_v37 = vmul.f32 %v3112_v38, %v3112_v38 }
 0xd39   : > { %v3116_v14 = vsel %vm6842_vm3, %v3114_v37, 0.0 }
 0xd3a   : > { %3117 = vadd.xlane.f32.xlu1 %v3116_v14  ;;  %v3109_v59 = vpop.xlane.xlu0 %3108 }
 0xd3b   : > { %v3111_v54 = vmul.f32 %v3109_v59, %v6841_v6 }
 0xd3d   : > { %v3113_v56 = vsub.f32 %v6478_v50, %v3111_v54 }
 0xd3f   : > { %v3115_v16 = vmul.f32 %v3113_v56, %v3113_v56 }
 0xd41   : > { %v3119_v8 = vsel %vm6843_vm14, %v3115_v16, 0.0  ;;  %vm6845_vm14 = vcmask 523264  }
 0xd42   : > { %3120 = vadd.xlane.f32.xlu2 %v3119_v8 }
 0xdad   : > { %v3118_v55 = vpop.xlane.xlu1 %3117 }
 0xdae   : > { %v3122_v51 = vmul.f32 %v3118_v55, %v6841_v6 }
 0xdb0   : > { %v3124_v36 = vadd.f32 1e-05, %v3122_v51 }
 0xdb2   : > { %4312 = vrsqrt.f32 %v3124_v36  ;;  %vm3132_vm15 = vweird.f32 %v3124_v36 }
 0xdb5   : > { %v3121_v33 = vpop.xlane.xlu2 %3120 }
 0xdb6   : > { %v3123_v27 = vmul.f32 %v3121_v33, %v6841_v6 }
 0xdb8   : > { %v4313_v60 = vpop.eup %4312  ;;  %v3125_v28 = vadd.f32 1e-05, %v3123_v27 }
 0xdb9   : > { %v3127_v4 = vmul.f32 %v4313_v60, %v3124_v36  ;;  %vm3133_vm5 = vweird.f32 %v4313_v60 }
 0xdba   : > { %4314 = vrsqrt.f32 %v3125_v28  ;;  %vm3134_vm8 = vmor %vm3132_vm15, %vm3133_vm5  ;;  %vm3142_vm0 = vweird.f32 %v3125_v28 }
 0xdbb   : > { %v3128_v30 = vmul.f32 %v4313_v60, %v3127_v4  ;;  %vm6846_vm5 = vmmov %vm6844_vm9 }
 0xdbc   : > { %vm6847_vm15 = vmmov %vm6846_vm5 }
 0xdbd   : > { %v3129_v44 = vmul.f32 0.5, %v3128_v30 }
 0xdbf   : > { %v3130_v43 = vsub.f32 1.5, %v3129_v44 }
 0xdc0   : > { %v4315_v19 = vpop.eup %4314 }
 0xdc1   : > { %v3131_v7 = vmul.f32 %v4313_v60, %v3130_v43  ;;  %v3137_v47 = vmul.f32 %v4315_v19, %v3125_v28  ;;  %vm3143_vm12 = vweird.f32 %v4315_v19  ;;  %v4062_v28 = vld [vmem:[%s6596_s8 + $0x21] ss:$0 sm:$0xff] }
 0xdc2   : > { %vm3144_vm1 = vmor %vm3142_vm0, %vm3143_vm12 }
 0xdc3   : > { %v3138_v12 = vmul.f32 %v4315_v19, %v3137_v47  ;;  %v3135_v13 = vsel %vm3134_vm8, %v4313_v60, %v3131_v7  ;;  %vm6848_vm8 = vmmov %vm6846_vm5 }
 0xdc4   : > { %v3146_v2 = vmul.f32 %v3135_v13, %v3112_v38  ;;  %vm6849_vm12 = vmmov %vm6846_vm5 }
 0xdc5   : > { %v3139_v32 = vmul.f32 0.5, %v3138_v12  ;;  %vm6850_vm0 = vmmov %vm6846_vm5 }
 0xdc6   : > { %v3149_v24 = vmul.f32 %v4059_v5, %v3146_v2 }
 0xdc7   : > { %v3140_v57 = vsub.f32 1.5, %v3139_v32 }
 0xdc8   : > { %v3152_v10 = vadd.f32 %v4060_v40, %v3149_v24  ;;  %v3921_v24 = vld [vmem:[#allocation10 + $0x8] sm:$0xff] }
 0xdc9   : > { %v3141_v20 = vmul.f32 %v4315_v19, %v3140_v57  ;;  %3375 = vmatpush.bf16.msrb.mxu0 %v3921_v24 }
 0xdcb   : > { %v3145_v22 = vsel %vm3144_vm1, %v4315_v19, %v3141_v20  ;;  %vm6851_vm1 = vmmov %vm6850_vm0 }
 0xdcc   : > { %v3147_v45 = vmul.f32 %v3145_v22, %v3113_v56 }
 0xdce   : > { %v3150_v11 = vmul.f32 %v4059_v5, %v3147_v45 }
 0xdd0   : > { %v3153_v34 = vadd.f32 %v4060_v40, %v3150_v11 }
 0xdd2   : > { %v3154_v49 = vpack.c.bf16 %v3153_v34, %v3152_v10  ;;  %v3920_v34 = vld [vmem:[#allocation10] sm:$0xff] }
 0xdd3   : > { %3376 = vmatpush.bf16.msrb.mxu0 %v3920_v34 }
 0xdd4   : > { %3832 = vmatmul.msk.bf16.vlgmr.msra.gmra.mxu2 %vm6844_vm9, %v3154_v49 }
 0xe57   : > { %v3186_v41 = vpop.f32.mrf.mxu2 }
 0xe58   : > { %v3187_v46 = vadd.f32 %v4061_v39, %v3186_v41 }
 0xe5a   : > { %v3833_v62 = vmul.f32 -1.442695, %v3187_v46 }
 0xe5c   : > { %4316 = vpow2.f32 %v3833_v62 }
 0xe5f   : > { %v3188_v26 = vpop.f32.mrf.mxu2 }
 0xe60   : > { %v3189_v63 = vadd.f32 %v4061_v39, %v3188_v26 }
 0xe62   : > { %v4317_v52 = vpop.eup %4316  ;;  %v3834_v17 = vmul.f32 -1.442695, %v3189_v63 }
 0xe63   : > { %v3197_v61 = vadd.f32 1.0, %v4317_v52 }
 0xe64   : > { %4318 = vpow2.f32 %v3834_v17 }
 0xe65   : > { %4320 = vrcp.f32 %v3197_v61  ;;  %v3210_v38 = vand.u32 2147483648, %v3197_v61  ;;  %vm3204_vm6 = vweird.f32 %v3197_v61  ;;  %v3208_v37 = vand.u32 2147483647, %v3197_v61 }
 0xe67   : > { %v3211_v8 = vor.u32 1.1754944e-38, %v3210_v38  ;;  %vm3209_vm7 = vcmp.eq.f32.partialorder %v3208_v37, 8.507059e+37 }
 0xe6a   : > { %v4319_v58 = vpop.eup %4318 }
 0xe6b   : > { %v4321_v29 = vpop.eup %4320  ;;  %v3198_v23 = vadd.f32 1.0, %v4319_v58 }
 0xe6c   : > { %v3200_v25 = vmul.f32 %v4321_v29, %v3197_v61  ;;  %vm3205_vm2 = vweird.f32 %v4321_v29 }
 0xe6d   : > { %4322 = vrcp.f32 %v3198_v23  ;;  %vm3206_vm10 = vmor %vm3204_vm6, %vm3205_vm2  ;;  %v3225_v59 = vand.u32 2147483648, %v3198_v23  ;;  %v3223_v16 = vand.u32 2147483647, %v3198_v23  ;;  %vm3219_vm4 = vweird.f32 %v3198_v23 }
 0xe6e   : > { %v3201_v1 = vsub.f32 1.0, %v3200_v25 }
 0xe6f   : > { %v3226_v51 = vor.u32 1.1754944e-38, %v3225_v59  ;;  %vm3224_vm3 = vcmp.eq.f32.partialorder %v3223_v16, 8.507059e+37 }
 0xe70   : > { %v3202_v35 = vmul.f32 %v4321_v29, %v3201_v1  ;;  %v4064_v1 = vld [vmem:[%s6598_s10 + $0x1] ss:$0 sm:$0xff] }
 0xe72   : > { %v3203_v48 = vadd.f32 %v4321_v29, %v3202_v35 }
 0xe73   : > { %v4323_v0 = vpop.eup %4322 }
 0xe74   : > { %v3215_v21 = vmul.f32 %v4323_v0, %v3198_v23  ;;  %v3207_v54 = vsel %vm3206_vm10, %v4321_v29, %v3203_v48  ;;  %vm3220_vm13 = vweird.f32 %v4323_v0 }
 0xe75   : > { %v3212_v55 = vsel %vm3209_vm7, %v3211_v8, %v3207_v54  ;;  %vm3221_vm11 = vmor %vm3219_vm4, %vm3220_vm13 }
 0xe76   : > { %v3216_v14 = vsub.f32 1.0, %v3215_v21  ;;  %v3229_v33 = vmul.f32 %v3212_v55, %v3187_v46  ;;  %vm6852_vm4 = vmmov %vm6850_vm0 }
 0xe78   : > { %v3217_v56 = vmul.f32 %v4323_v0, %v3216_v14  ;;  %v4065_v14 = vld [vmem:[%s6598_s10 + $0x2] ss:$0 sm:$0xff] }
 0xe7a   : > { %v3218_v3 = vadd.f32 %v4323_v0, %v3217_v56 }
 0xe7c   : > { %v3222_v36 = vsel %vm3221_vm11, %v4323_v0, %v3218_v3 }
 0xe7d   : > { %v3227_v18 = vsel %vm3224_vm3, %v3226_v51, %v3222_v36 }
 0xe7e   : > { %v3230_v27 = vmul.f32 %v3227_v18, %v3189_v63 }
 0xe80   : > { %v3231_v60 = vpack.c.bf16 %v3230_v27, %v3229_v33 }
 0xe82   : > { %3859 = vmatmul.msk.bf16.vlgmr.msra.gmra.mxu3 %vm6845_vm14, %v3231_v60 }
 0xf05   : > { %v3279_v4 = vpop.f32.mrf.mxu3 }
 0xf06   : > { %v3280_v30 = vadd.f32 %v4062_v28, %v3279_v4 }
 0xf08   : > { %v3284_v44 = vadd.f32 %v3280_v30, %v6469_v9 }
 0xf0a   : > { %3860 = vst.msk [vmem:[%s5630_s28 + $0x10] sm:$0xff] %vm6846_vm5, %v3284_v44  ;;  %v3292_v43 = vsel %vm6847_vm15, %v3284_v44, 0.0  ;;  %vm6853_vm15 = vmmov %vm6850_vm0 }
 0xf0b   : > { %3293 = vadd.xlane.f32.xlu0 %v3292_v43 }
 0xf0d   : > { %v3281_v19 = vpop.f32.mrf.mxu3 }
 0xf0e   : > { %v3282_v7 = vadd.f32 %v4062_v28, %v3281_v19 }
 0xf10   : > { %v3285_v47 = vadd.f32 %v3282_v7, %v6478_v50 }
 0xf12   : > { %3861 = vst.msk [vmem:[%s5630_s28 + $0x18] sm:$0xff] %vm6848_vm8, %v3285_v47  ;;  %v3295_v12 = vsel %vm6849_vm12, %v3285_v47, 0.0 }
 0xf13   : > { %3296 = vadd.xlane.f32.xlu1 %v3295_v12 }
 0xf7e   : > { %v3294_v13 = vpop.xlane.xlu0 %3293 }
 0xf7f   : > { %v3298_v32 = vmul.f32 %v3294_v13, %v6841_v6 }
 0xf81   : > { %v3300_v57 = vsub.f32 %v3284_v44, %v3298_v32 }
 0xf83   : > { %v3302_v5 = vmul.f32 %v3300_v57, %v3300_v57 }
 0xf85   : > { %v3304_v9 = vsel %vm6850_vm0, %v3302_v5, 0.0 }
 0xf86   : > { %v3297_v2 = vpop.xlane.xlu1 %3296  ;;  %3305 = vadd.xlane.f32.xlu2 %v3304_v9 }
 0xf87   : > { %v3299_v20 = vmul.f32 %v3297_v2, %v6841_v6 }
 0xf89   : > { %v3301_v22 = vsub.f32 %v3285_v47, %v3299_v20 }
 0xf8b   : > { %v3303_v40 = vmul.f32 %v3301_v22, %v3301_v22 }
 0xf8d   : > { %v3307_v50 = vsel %vm6851_vm1, %v3303_v40, 0.0 }
 0xf8e   : > { %3308 = vadd.xlane.f32.xlu0 %v3307_v50 }
 0xff9   : > { %v3306_v45 = vpop.xlane.xlu2 %3305 }
 0xffa   : > { %v3310_v11 = vmul.f32 %v3306_v45, %v6841_v6 }
 0xffc   : > { %v3312_v10 = vadd.f32 1e-05, %v3310_v11 }
 0xffe   : > { %4324 = vrsqrt.f32 %v3312_v10  ;;  %vm3320_vm2 = vweird.f32 %v3312_v10 }
0x1001   : > { %v3309_v49 = vpop.xlane.xlu0 %3308 }
0x1002   : > { %v3311_v42 = vmul.f32 %v3309_v49, %v6841_v6  ;;  %v4063_v6 = vld [vmem:[%s6598_s10] ss:$0 sm:$0xff] }
0x1004   : > { %v4325_v39 = vpop.eup %4324  ;;  %v3313_v15 = vadd.f32 1e-05, %v3311_v42 }
0x1005   : > { %v3315_v41 = vmul.f32 %v4325_v39, %v3312_v10  ;;  %vm3321_vm9 = vweird.f32 %v4325_v39 }
0x1006   : > { %4326 = vrsqrt.f32 %v3313_v15  ;;  %vm3322_vm6 = vmor %vm3320_vm2, %vm3321_vm9  ;;  %vm3330_vm13 = vweird.f32 %v3313_v15 }
0x1007   : > { %v3316_v46 = vmul.f32 %v4325_v39, %v3315_v41  ;;  %vm6854_vm9 = vmmov %vm6852_vm4 }
0x1009   : > { %v3317_v62 = vmul.f32 0.5, %v3316_v46 }
0x100b   : > { %v3318_v31 = vsub.f32 1.5, %v3317_v62 }
0x100c   : > { %v4327_v53 = vpop.eup %4326 }
0x100d   : > { %v3319_v26 = vmul.f32 %v4325_v39, %v3318_v31  ;;  %v3325_v63 = vmul.f32 %v4327_v53, %v3313_v15  ;;  %vm3331_vm10 = vweird.f32 %v4327_v53 }
0x100e   : > { %vm3332_vm7 = vmor %vm3330_vm13, %vm3331_vm10 }
0x100f   : > { %v3326_v52 = vmul.f32 %v4327_v53, %v3325_v63  ;;  %v3323_v17 = vsel %vm3322_vm6, %v4325_v39, %v3319_v26 }
0x1010   : > { %v3334_v29 = vmul.f32 %v3323_v17, %v3300_v57 }
0x1011   : > { %v3327_v61 = vmul.f32 0.5, %v3326_v52 }
0x1012   : > { %v3339_v35 = vmul.f32 %v4063_v6, %v3334_v29 }
0x1013   : > { %v3328_v58 = vsub.f32 1.5, %v3327_v61 }
0x1014   : > { %v3344_v21 = vadd.f32 %v4064_v1, %v3339_v35 }
0x1015   : > { %v3329_v23 = vmul.f32 %v4327_v53, %v3328_v58 }
0x1017   : > { %v3333_v25 = vsel %vm3332_vm7, %v4327_v53, %v3329_v23 }
0x1018   : > { %v3335_v0 = vmul.f32 %v3333_v25, %v3301_v22 }
0x101a   : > { %v3340_v48 = vmul.f32 %v4063_v6, %v3335_v0 }
0x101c   : > { %v3345_v38 = vadd.f32 %v4064_v1, %v3340_v48 }
0x101e   : > { %v3346_v37 = vpack.c.bf16 %v3345_v38, %v3344_v21 }
0x1020   : > { %3870 = vmatmul.msk.bf16.vlgmr.msrb.gmra.mxu0 %vm6852_vm4, %v3346_v37 }
0x109d   : > { %v3378_v59 = vpop.f32.mrf.mxu0 }
0x109e   : > { %v3379_v54 = vadd.f32 %v4065_v14, %v3378_v59 }
0x10a0   : > { %v3383_v56 = vadd.f32 %v3379_v54, %v3344_v21 }
0x10a2   : > { %v3871_v16 = vmul.f32 -1.442695, %v3383_v56 }
0x10a4   : > { %4328 = vpow2.f32 %v3871_v16 }
0x10a5   : > { %v3380_v8 = vpop.f32.mrf.mxu0 }
0x10a6   : > { %v3381_v3 = vadd.f32 %v4065_v14, %v3380_v8 }
0x10a8   : > { %v3384_v55 = vadd.f32 %v3381_v3, %v3345_v38 }
0x10aa   : > { %v4329_v51 = vpop.eup %4328  ;;  %v3872_v36 = vmul.f32 -1.442695, %v3384_v55 }
0x10ab   : > { %v3391_v18 = vadd.f32 1.0, %v4329_v51 }
0x10ac   : > { %4330 = vpow2.f32 %v3872_v36 }
0x10ad   : > { %4332 = vrcp.f32 %v3391_v18  ;;  %v3404_v30 = vand.u32 2147483648, %v3391_v18  ;;  %v3402_v43 = vand.u32 2147483647, %v3391_v18  ;;  %vm3398_vm3 = vweird.f32 %v3391_v18 }
0x10af   : > { %v3405_v47 = vor.u32 1.1754944e-38, %v3404_v30  ;;  %vm3403_vm5 = vcmp.eq.f32.partialorder %v3402_v43, 8.507059e+37 }
0x10b2   : > { %v4331_v33 = vpop.eup %4330 }
0x10b3   : > { %v4333_v27 = vpop.eup %4332  ;;  %v3392_v60 = vadd.f32 1.0, %v4331_v33 }
0x10b4   : > { %v3394_v28 = vmul.f32 %v4333_v27, %v3391_v18  ;;  %vm3399_vm11 = vweird.f32 %v4333_v27 }
0x10b5   : > { %4334 = vrcp.f32 %v3392_v60  ;;  %vm3400_vm14 = vmor %vm3398_vm3, %vm3399_vm11  ;;  %v3419_v9 = vand.u32 2147483648, %v3392_v60  ;;  %v3417_v20 = vand.u32 2147483647, %v3392_v60  ;;  %vm3413_vm12 = vweird.f32 %v3392_v60 }
0x10b6   : > { %v3395_v4 = vsub.f32 1.0, %v3394_v28 }
0x10b7   : > { %v3420_v40 = vor.u32 1.1754944e-38, %v3419_v9  ;;  %vm3418_vm1 = vcmp.eq.f32.partialorder %v3417_v20, 8.507059e+37 }
0x10b8   : > { %v3396_v44 = vmul.f32 %v4333_v27, %v3395_v4 }
0x10ba   : > { %v3397_v19 = vadd.f32 %v4333_v27, %v3396_v44 }
0x10bb   : > { %v4335_v7 = vpop.eup %4334 }
0x10bc   : > { %v3401_v12 = vsel %vm3400_vm14, %v4333_v27, %v3397_v19  ;;  %v3409_v13 = vmul.f32 %v4335_v7, %v3392_v60  ;;  %vm3414_vm8 = vweird.f32 %v4335_v7 }
0x10bd   : > { %v3406_v32 = vsel %vm3403_vm5, %v3405_v47, %v3401_v12  ;;  %vm3415_vm0 = vmor %vm3413_vm12, %vm3414_vm8 }
0x10be   : > { %v3423_v57 = vmul.f32 %v3406_v32, %v3383_v56  ;;  %v3410_v5 = vsub.f32 1.0, %v3409_v13 }
0x10c0   : > { %3873 = vst.msk [vmem:[%s5630_s28 + $0x20] sm:$0xff] %vm6853_vm15, %v3423_v57  ;;  %v3411_v2 = vmul.f32 %v4335_v7, %v3410_v5 }
0x10c2   : > { %v3412_v22 = vadd.f32 %v4335_v7, %v3411_v2 }
0x10c4   : > { %v3416_v50 = vsel %vm3415_vm0, %v4335_v7, %v3412_v22 }
0x10c5   : > { %v3421_v24 = vsel %vm3418_vm1, %v3420_v40, %v3416_v50 }
0x10c6   : > { %v3424_v45 = vmul.f32 %v3421_v24, %v3384_v55 }
0x10c8   : > { %3874 = vst.msk [vmem:[%s5630_s28 + $0x28] sm:$0xff] %vm6854_vm9, %v3424_v45 }
0x10c9   : > { %s3922_s26 = sshll.u32 %s4633_s21, 4  ;;  %s3451_s7 = sshll.u32 %s5630_s28, 4  ;;  %s3452_s7 = int_to_ptr.vmem [resolvable:$true] %s3451_s7 }
0x10ca   : > { %s3440_s25 = scalar_lea.hbm %s6599_s11, %s3922_s26  ;;  %s4545_s30 = smov 256  }
0x10cb   : > { %s3453_s29 = sshll.u32 %s3440_s25, 4  ;;  %3950 = sst [smem:[#allocation13]] (%p4699_p3), %s4545_s30  ;;  %s3454_s29 = int_to_ptr.hbm [resolvable:$true] %s3453_s29 }
0x10cc   : > { %s4546_s16 = smov 512   ;;  %s4547_s27 = smov 2  }
0x10cd   : > { %3951 = sst [smem:[#allocation13 + $0x1]] (%p4699_p3), %s4546_s16  ;;  %s4548_s21 = smov 128  }
0x10ce   : > { %3952 = sst [smem:[#allocation13 + $0x2]] (%p4699_p3), %s4547_s27  ;;  %s4549_s28 = smov 8  }
0x10cf   : > { %3953 = sst [smem:[#allocation13 + $0x3]] (%p4699_p3), %s4548_s21  ;;  %s4550_s22 = smov [#allocation12]  }
0x10d0   : > { %3954 = sst [smem:[#allocation13 + $0x4]] (%p4699_p3), %s4548_s21  ;;  %s4551_s1 = smov 0  }
0x10d1   : > { %3955 = sst [smem:[#allocation13 + $0x5]] (%p4699_p3), %s4549_s28 }
0x10d2   : > { %3956 = dma.general (%p4699_p3), %s3452_s7, 768, %s3454_s29, %s3429_s14, %s4550_s22, [#allocation13], %s4551_s1, 0  }
0x10d3 PF: > { %s3481_s15 = sand.u32 1, %s4522_s17   ;;  %p6856_p1 = scmp.ge.s32.totalorder %s4534_s20, 2 }
0x10d4   : > { %s3482_s26 = scalar_lea.sflag [#allocation4], %s3481_s15 }
0x10d5   : > { %p3976_p4 = pnand %p6856_p1, %p4647_p6 }
0x10d7   : > { %p3977_p8 = pneg %p3976_p4 }
0x10d9   : > { %4517 = dma.done.wait (%p3977_p8), %s3482_s26, 768  }
0x10da   : > { %4519 = vsyncadd (%p3977_p8), %s3482_s26, 4294966528  ;;  %p26_p11 = scmp.ge.s32.totalorder %s4689_s13, 4   ;;  %s6857_s17 = smov %s4526_s18 }
0x10db   : > { %s6858_s18 = smov %s4530_s19  ;;  %s6859_s19 = smov %s4705_s24 }
0x10dc   : > { %s6860_s20 = smov %s4689_s13  ;;  %28 = sbr.rel (!%p26_p11) target bundleno = 12 (0xc), region = 141 }
0x10e1   :  { %3488 = vsyncpa [#allocation3], 1 }
0x10e2   :  { %3490 = vsyncpa [#allocation3 + $0x1], 1 }
0x10e3   :  { %3491 = vsyncpa [#allocation6], 1 }
0x10e4   :  { %3492 = vsyncpa [#allocation9], 1 }
0x10e5   :  { %3493 = vsyncpa [#allocation4], 1 }
0x10e6   :  { %3495 = vsyncpa [#allocation4 + $0x1], 1 }

</bundles_post_ra>
